<compile_context>
chip_gen: v6e
topology: v6e:2x2x1
jax: 0.10.0
libtpu: 0.0.40
codegen_flags: <defaults>
</compile_context>

<pallas_src>
import functools
import math

import numpy as np
import jax
import jax.numpy as jnp
from jax import lax
from jax.experimental import pallas as pl
from jax.experimental.pallas import tpu as pltpu


def _layer_norm(h, w, b, eps=1e-12):
    # TF-style LayerNorm (epsilon inside the sqrt) exactly as the module defines it.
    u = jnp.mean(h, axis=-1, keepdims=True)
    s = jnp.mean((h - u) ** 2, axis=-1, keepdims=True)
    return w * ((h - u) / jnp.sqrt(s + eps)) + b


def _block_kernel(x_ref, small_ref, bqkv_ref, bfc_ref,
                  wqkv_ref, wo_ref, wfc_ref, wproj_ref,
                  o_ref, *, n_head: int, approx_recip: bool):
    Bb, S, D = x_ref.shape
    H = n_head
    hd = D // H
    hd3 = 3 * hd
    BS = Bb * S
    cdt = wqkv_ref.dtype                      # matmul compute dtype (bf16 by default)

    # Activations kept in f32 for LN / softmax / residual adds.
    x = x_ref[...].astype(jnp.float32).reshape(BS, D)

    small = small_ref[...]                    # (6, D): ln1 w/b, ln2 w/b, bo, bproj
    ln1_w, ln1_b = small[0:1], small[1:2]
    ln2_w, ln2_b = small[2:3], small[3:4]
    bo, bproj = small[4:5], small[5:6]

    # ---- LN1 + fused QKV projection (single MXU pass, N = 3D) ----
    # 1/sqrt(hd) is folded into the Q columns/bias on the host side.
    h1 = _layer_norm(x, ln1_w, ln1_b)
    qkv = jnp.dot(h1.astype(cdt), wqkv_ref[...],
                  preferred_element_type=jnp.float32) + bqkv_ref[...]    # (BS, 3D) f32
    qkv = qkv.astype(cdt)

    # ---- head split: wqkv columns are head-major ([q_h | k_h | v_h] per head) ----
    # One lane slice per head + a single stack (instead of 3*H slice/stack relayouts).
    heads = jnp.stack([qkv[:, h * hd3:(h + 1) * hd3] for h in range(H)], axis=0)
    heads = heads.reshape(H * Bb, S, hd3)     # major-dim regroup only
    q = heads[:, :, 0:hd]                     # already scaled by 1/sqrt(hd)
    k = heads[:, :, hd:2 * hd]
    v = heads[:, :, 2 * hd:hd3]

    # Scores: contract the last dims of q and k directly (no explicit K transpose).
    sc = lax.dot_general(q, k, (((2,), (2,)), ((0,), (0,))),
                         preferred_element_type=jnp.float32)             # (H*Bb, S, S)
    sc = sc - jnp.max(sc, axis=-1, keepdims=True)
    p = jnp.exp(sc)
    denom = jnp.sum(p, axis=-1, keepdims=True)
    r = pl.reciprocal(denom, approx=True) if approx_recip else 1.0 / denom

    # Un-normalized PV matmul first; softmax normalizer applied to the small
    # (H*Bb, S, hd) output rather than the (H*Bb, S, S) probabilities.
    ao = lax.dot_general(p.astype(cdt), v, (((2,), (1,)), ((0,), (0,))),
                         preferred_element_type=jnp.float32)             # (H*Bb, S, hd)
    ao = (ao * r).reshape(H, BS, hd).astype(cdt)

    # Output projection: per-head (BS,hd)x(hd,D) matmuls accumulated into a single
    # (BS, D) f32 accumulator -- no (H, BS, D) intermediate, no sum-over-heads.
    attn = jnp.dot(ao[0], wo_ref[0], preferred_element_type=jnp.float32)
    for h in range(1, H):
        attn = attn + jnp.dot(ao[h], wo_ref[h], preferred_element_type=jnp.float32)

    x = x + attn + bo                                                    # residual 1

    # ---- MLP: LN2 -> c_fc -> QuickGELU -> c_proj ----
    # TODO(synk): chunk the 4D hidden dim (and consider fp8/int8 weights) if VMEM
    # gets tight at large D on v7x.
    h2 = _layer_norm(x, ln2_w, ln2_b)
    f = jnp.dot(h2.astype(cdt), wfc_ref[...],
                preferred_element_type=jnp.float32) + bfc_ref[...]       # (BS, 4D)
    f = f * jax.nn.sigmoid(1.702 * f)                                    # QuickGELU
    f = jnp.dot(f.astype(cdt), wproj_ref[...],
                preferred_element_type=jnp.float32) + bproj              # (BS, D)

    o_ref[...] = (x + f).reshape(Bb, S, D).astype(o_ref.dtype)           # residual 2


def _vmem_limit_bytes():
    """~75% of this chip's per-core VMEM (leave compiler headroom); safe fallback."""
    try:
        cap = getattr(pltpu.get_tpu_info(), "vmem_capacity_bytes", None)
        if cap:
            return (int(cap) * 3) // 4        # ~48 MiB on v7x, ~96 MiB on v5e/v6e
    except Exception:
        pass
    return 48 * 1024 * 1024                   # conservative: fits every generation


def _pick_block_batch(B, S, D, H, cbytes, vmem_budget):
    """Largest divisor of B whose per-step working set fits ~70% of the VMEM budget,
    stopping once the MXU M dimension (block_batch*S rows) is comfortably full."""
    w_bytes = (3 * D * D + D * D + 4 * D * D + 4 * D * D) * cbytes + 13 * D * 4
    best = 1
    for bb in range(1, B + 1):
        if B % bb:
            continue
        bs = bb * S
        act = bs * 3 * D * (4 + cbytes)            # qkv (f32 + cdt copy)
        act += H * bb * S * S * (4 + cbytes)       # scores f32 + probs cdt
        act += bs * 4 * D * (4 + cbytes)           # MLP hidden (f32 + cdt copy)
        act += 4 * bs * D * 4                      # x / attn / h2 / out (f32)
        io = 2 * 2 * bs * D * 4                    # x & out tiles, double-buffered
        if w_bytes + act + io > 0.7 * vmem_budget:
            break
        best = bb
        if bs >= 512:                              # enough rows to fill the MXU
            break
    return best


def residual_attention_block(x_sbd, params, *, n_head: int,
                             block_batch=None,
                             compute_dtype=jnp.bfloat16):
    """x_sbd: (S, B, D) float32 — same (seq, batch, d_model) convention as PyTorch."""
    S, B, D = x_sbd.shape
    H = n_head
    assert D % H == 0
    hd = D // H
    cdt = np.dtype(compute_dtype)
    vmem_limit = _vmem_limit_bytes()

    if block_batch is None:
        block_batch = _pick_block_batch(B, S, D, H, cdt.itemsize, vmem_limit)
    assert B % block_batch == 0

    # TODO(synk): fold these two HBM round-trip transposes away by reading/writing
    # (S, B, D) tiles directly (needs sublane-aligned mid-axis batch tiling).
    x = jnp.transpose(x_sbd, (1, 0, 2))              # (B, S, D) for the kernel

    scale = 1.0 / math.sqrt(hd)
    wq_t = params["wq"].T * scale                    # fold 1/sqrt(hd) into Q weights
    wk_t = params["wk"].T
    wv_t = params["wv"].T
    # Head-major fused QKV weight: columns [q_h | k_h | v_h] per head.
    wqkv = jnp.concatenate(
        [jnp.concatenate([wq_t[:, h * hd:(h + 1) * hd],
                          wk_t[:, h * hd:(h + 1) * hd],
                          wv_t[:, h * hd:(h + 1) * hd]], axis=1)
         for h in range(H)], axis=1).astype(cdt)                          # (D, 3D)
    bq_s = params["bq"] * scale
    bqkv = jnp.concatenate(
        [jnp.concatenate([bq_s[h * hd:(h + 1) * hd],
                          params["bk"][h * hd:(h + 1) * hd],
                          params["bv"][h * hd:(h + 1) * hd]])
         for h in range(H)]).reshape(1, 3 * D).astype(jnp.float32)

    wo_heads = params["wo"].T.reshape(H, hd, D).astype(cdt)               # (H, hd, D)
    wfc_t = params["wfc"].T.astype(cdt)                                   # (D, 4D)
    wproj_t = params["wproj"].T.astype(cdt)                               # (4D, D)
    bfc = params["bfc"].reshape(1, 4 * D).astype(jnp.float32)
    # Packed per-feature parameters: LN1 w/b, LN2 w/b, bo, bproj.
    small = jnp.stack([params["ln1_w"], params["ln1_b"],
                       params["ln2_w"], params["ln2_b"],
                       params["bo"], params["bproj"]], axis=0).astype(jnp.float32)

    kernel = functools.partial(_block_kernel, n_head=H,
                               approx_recip=(cdt != np.dtype(np.float32)))

    def run(single_buffer_weights: bool):
        def const_spec(shape):
            nd = len(shape)

            def idx(b):
                return (0,) * nd

            if single_buffer_weights:
                # Constant-index operands: one VMEM buffer is enough (double-buffering
                # resident weights just wastes VMEM, esp. under v7x's 64 MiB).
                return pl.BlockSpec(shape, idx, pipeline_mode=pl.Buffered(1))
            return pl.BlockSpec(shape, idx)

        return pl.pallas_call(
            kernel,
            out_shape=jax.ShapeDtypeStruct((B, S, D), x.dtype),
            grid=(B // block_batch,),
            in_specs=[
                pl.BlockSpec((block_batch, S, D), lambda b: (b, 0, 0)),   # x tile
                const_spec((6, D)),          # LN params + attn/proj output biases
                const_spec((1, 3 * D)),      # fused QKV bias (head-major, Q pre-scaled)
                const_spec((1, 4 * D)),      # c_fc bias
                const_spec((D, 3 * D)),      # fused QKV weight (head-major, cdt)
                const_spec((H, hd, D)),      # out-proj weight per head (cdt)
                const_spec((D, 4 * D)),      # c_fc weight (cdt)
                const_spec((4 * D, D)),      # c_proj weight (cdt)
            ],
            out_specs=pl.BlockSpec((block_batch, S, D), lambda b: (b, 0, 0)),
            compiler_params=pltpu.CompilerParams(
                dimension_semantics=("parallel",),
                vmem_limit_bytes=int(vmem_limit)),
        )(x, small, bqkv, bfc, wqkv, wo_heads, wfc_t, wproj_t)

    try:
        out = run(single_buffer_weights=True)
    except Exception:
        # Fallback for jax versions without BlockSpec(pipeline_mode=pl.Buffered(1)).
        out = run(single_buffer_weights=False)

    return jnp.transpose(out, (1, 0, 2))             # back to (S, B, D)


# --------- pure-JAX f32 reference (correctness check) ---------
def reference_block(x_sbd, params, *, n_head: int):
    S, B, D = x_sbd.shape
    hd = D // n_head

    def ln(h, w, b):
        u = jnp.mean(h, axis=-1, keepdims=True)
        s = jnp.mean((h - u) ** 2, axis=-1, keepdims=True)
        return w * ((h - u) / jnp.sqrt(s + 1e-12)) + b

    x = x_sbd
    h1 = ln(x, params["ln1_w"], params["ln1_b"])
    q = h1 @ params["wq"].T + params["bq"]
    k = h1 @ params["wk"].T + params["bk"]
    v = h1 @ params["wv"].T + params["bv"]

    def split(t):  # (S, B, D) -> (B, H, S, hd)
        return jnp.transpose(t.reshape(S, B, n_head, hd), (1, 2, 0, 3))

    qh, kh, vh = split(q), split(k), split(v)
    sc = jnp.einsum("bhqd,bhkd->bhqk", qh, kh) / math.sqrt(hd)
    p = jax.nn.softmax(sc, axis=-1)
    o = jnp.einsum("bhqk,bhkd->bhqd", p, vh)
    o = jnp.transpose(o, (2, 0, 1, 3)).reshape(S, B, D)
    o = o @ params["wo"].T + params["bo"]
    x = x + o
    h2 = ln(x, params["ln2_w"], params["ln2_b"])
    f = h2 @ params["wfc"].T + params["bfc"]
    f = f * jax.nn.sigmoid(1.702 * f)
    f = f @ params["wproj"].T + params["bproj"]
    return x + f


if __name__ == "__main__":
    S, B, D, H = 8, 4, 32, 4          # n_seg=8, b=4, d_model=32, n_head=4

    key = jax.random.PRNGKey(0)
    ks = jax.random.split(key, 13)
    scw = 0.05
    params = {
        "ln1_w": jnp.ones((D,), jnp.float32),
        "ln1_b": jnp.zeros((D,), jnp.float32),
        "wq": scw * jax.random.normal(ks[0], (D, D), jnp.float32),
        "wk": scw * jax.random.normal(ks[1], (D, D), jnp.float32),
        "wv": scw * jax.random.normal(ks[2], (D, D), jnp.float32),
        "bq": scw * jax.random.normal(ks[3], (D,), jnp.float32),
        "bk": scw * jax.random.normal(ks[4], (D,), jnp.float32),
        "bv": scw * jax.random.normal(ks[5], (D,), jnp.float32),
        "wo": scw * jax.random.normal(ks[6], (D, D), jnp.float32),
        "bo": scw * jax.random.normal(ks[7], (D,), jnp.float32),
        "ln2_w": jnp.ones((D,), jnp.float32),
        "ln2_b": jnp.zeros((D,), jnp.float32),
        "wfc": scw * jax.random.normal(ks[8], (4 * D, D), jnp.float32),
        "bfc": scw * jax.random.normal(ks[9], (4 * D,), jnp.float32),
        "wproj": scw * jax.random.normal(ks[10], (D, 4 * D), jnp.float32),
        "bproj": scw * jax.random.normal(ks[11], (D,), jnp.float32),
    }

    x = jax.random.normal(ks[12], (S, B, D), jnp.float32)
    ref = reference_block(x, params, n_head=H)

    # f32 compute path + exact reciprocal: tight check of the kernel math.
    out_f32 = jax.block_until_ready(
        residual_attention_block(x, params, n_head=H, compute_dtype=jnp.float32))
    assert out_f32.shape == (S, B, D)
    assert jnp.allclose(out_f32, ref, rtol=2e-3, atol=2e-3), \
        f"f32 path max abs err = {jnp.max(jnp.abs(out_f32 - ref))}"

    # default bf16 matmul path (production config): looser tolerance for bf16 rounding.
    out_bf16 = jax.block_until_ready(
        residual_attention_block(x, params, n_head=H))
    assert jnp.allclose(out_bf16, ref, rtol=2e-2, atol=2e-2), \
        f"bf16 path max abs err = {jnp.max(jnp.abs(out_bf16 - ref))}"

    # explicit block_batch=2 -> grid of 2 steps, exercises the batch tiling path.
    out_tiled = jax.block_until_ready(
        residual_attention_block(x, params, n_head=H, block_batch=2))
    assert jnp.allclose(out_tiled, ref, rtol=2e-2, atol=2e-2), \
        f"tiled path max abs err = {jnp.max(jnp.abs(out_tiled - ref))}"

    print("KERNEL_OK")
</pallas_src>

<mosaic_0001>
module attributes {stable_mosaic.version = 11 : i64} {
  func.func @_block_kernel(%arg0: i32, %arg1: memref<4x8x32xf32, #tpu.memory_space<vmem>>, %arg2: memref<6x32xf32, #tpu.memory_space<vmem>>, %arg3: memref<1x96xf32, #tpu.memory_space<vmem>>, %arg4: memref<1x128xf32, #tpu.memory_space<vmem>>, %arg5: memref<32x96xf32, #tpu.memory_space<vmem>>, %arg6: memref<4x8x32xf32, #tpu.memory_space<vmem>>, %arg7: memref<32x128xf32, #tpu.memory_space<vmem>>, %arg8: memref<128x32xf32, #tpu.memory_space<vmem>>, %arg9: memref<4x8x32xf32, #tpu.memory_space<vmem>>) attributes {dimension_semantics = [#tpu.dimension_semantics<parallel>], iteration_bounds = array<i64: 1>, scalar_prefetch = 0 : i64, scratch_operands = 0 : i64, tpu.core_type = #tpu.core_type<tc>, window_params = [{transform_indices = @transform_0, window_bounds = array<i64: 4, 8, 32>}, {pipeline_mode = #tpu.pipeline_mode<synchronous>, transform_indices = @transform_1, window_bounds = array<i64: 6, 32>}, {pipeline_mode = #tpu.pipeline_mode<synchronous>, transform_indices = @transform_2, window_bounds = array<i64: 1, 96>}, {pipeline_mode = #tpu.pipeline_mode<synchronous>, transform_indices = @transform_3, window_bounds = array<i64: 1, 128>}, {pipeline_mode = #tpu.pipeline_mode<synchronous>, transform_indices = @transform_4, window_bounds = array<i64: 32, 96>}, {pipeline_mode = #tpu.pipeline_mode<synchronous>, transform_indices = @transform_5, window_bounds = array<i64: 4, 8, 32>}, {pipeline_mode = #tpu.pipeline_mode<synchronous>, transform_indices = @transform_6, window_bounds = array<i64: 32, 128>}, {pipeline_mode = #tpu.pipeline_mode<synchronous>, transform_indices = @transform_7, window_bounds = array<i64: 128, 32>}, {transform_indices = @transform_8, window_bounds = array<i64: 4, 8, 32>}]} {
    %c0 = arith.constant 0 : index
    %c0_0 = arith.constant 0 : index
    %c0_1 = arith.constant 0 : index
    %0 = vector.load %arg1[%c0, %c0_0, %c0_1] : memref<4x8x32xf32, #tpu.memory_space<vmem>>, vector<4x8x32xf32>
    %1 = vector.shape_cast %0 : vector<4x8x32xf32> to vector<32x32xf32>
    %c0_2 = arith.constant 0 : index
    %c0_3 = arith.constant 0 : index
    %2 = vector.load %arg2[%c0_2, %c0_3] : memref<6x32xf32, #tpu.memory_space<vmem>>, vector<6x32xf32>
    %3 = vector.extract_strided_slice %2 {offsets = [0, 0], sizes = [1, 32], strides = [1, 1]} : vector<6x32xf32> to vector<1x32xf32>
    %4 = vector.extract_strided_slice %2 {offsets = [1, 0], sizes = [1, 32], strides = [1, 1]} : vector<6x32xf32> to vector<1x32xf32>
    %5 = vector.extract_strided_slice %2 {offsets = [2, 0], sizes = [1, 32], strides = [1, 1]} : vector<6x32xf32> to vector<1x32xf32>
    %6 = vector.extract_strided_slice %2 {offsets = [3, 0], sizes = [1, 32], strides = [1, 1]} : vector<6x32xf32> to vector<1x32xf32>
    %7 = vector.extract_strided_slice %2 {offsets = [4, 0], sizes = [1, 32], strides = [1, 1]} : vector<6x32xf32> to vector<1x32xf32>
    %8 = vector.extract_strided_slice %2 {offsets = [5, 0], sizes = [1, 32], strides = [1, 1]} : vector<6x32xf32> to vector<1x32xf32>
    %cst = arith.constant dense<0.000000e+00> : vector<32xf32>
    %9 = vector.multi_reduction <add>, %1, %cst [1] : vector<32x32xf32> to vector<32xf32>
    %10 = vector.shape_cast %9 : vector<32xf32> to vector<32x1xf32>
    %cst_4 = arith.constant 3.200000e+01 : f32
    %11 = vector.broadcast %cst_4 : f32 to vector<32x1xf32>
    %12 = arith.divf %10, %11 : vector<32x1xf32>
    %13 = vector.broadcast %12 : vector<32x1xf32> to vector<32x32xf32>
    %14 = arith.subf %1, %13 : vector<32x32xf32>
    %15 = arith.mulf %14, %14 : vector<32x32xf32>
    %cst_5 = arith.constant dense<0.000000e+00> : vector<32xf32>
    %16 = vector.multi_reduction <add>, %15, %cst_5 [1] : vector<32x32xf32> to vector<32xf32>
    %17 = vector.shape_cast %16 : vector<32xf32> to vector<32x1xf32>
    %cst_6 = arith.constant 3.200000e+01 : f32
    %18 = vector.broadcast %cst_6 : f32 to vector<32x1xf32>
    %19 = arith.divf %17, %18 : vector<32x1xf32>
    %20 = vector.broadcast %12 : vector<32x1xf32> to vector<32x32xf32>
    %21 = arith.subf %1, %20 : vector<32x32xf32>
    %cst_7 = arith.constant 9.99999996E-13 : f32
    %22 = vector.broadcast %cst_7 : f32 to vector<32x1xf32>
    %23 = arith.addf %19, %22 : vector<32x1xf32>
    %24 = math.sqrt %23 : vector<32x1xf32>
    %25 = vector.broadcast %24 : vector<32x1xf32> to vector<32x32xf32>
    %26 = arith.divf %21, %25 : vector<32x32xf32>
    %27 = vector.broadcast %3 : vector<1x32xf32> to vector<32x32xf32>
    %28 = arith.mulf %27, %26 : vector<32x32xf32>
    %29 = vector.broadcast %4 : vector<1x32xf32> to vector<32x32xf32>
    %30 = arith.addf %28, %29 : vector<32x32xf32>
    %c0_8 = arith.constant 0 : index
    %c0_9 = arith.constant 0 : index
    %31 = vector.load %arg5[%c0_8, %c0_9] : memref<32x96xf32, #tpu.memory_space<vmem>>, vector<32x96xf32>
    %cst_10 = arith.constant dense<0.000000e+00> : vector<32x96xf32>
    %32 = tpu.matmul %30, %31, %cst_10 {dimension_numbers = #tpu.dot_dimension_numbers<[1], [0], [0], [1], [0, 0, 1, 1], [], []>} : vector<32x32xf32>, vector<32x96xf32>, vector<32x96xf32> -> vector<32x96xf32>
    %c0_11 = arith.constant 0 : index
    %c0_12 = arith.constant 0 : index
    %33 = vector.load %arg3[%c0_11, %c0_12] : memref<1x96xf32, #tpu.memory_space<vmem>>, vector<1x96xf32>
    %34 = vector.broadcast %33 : vector<1x96xf32> to vector<32x96xf32>
    %35 = arith.addf %32, %34 : vector<32x96xf32>
    %36 = vector.extract_strided_slice %35 {offsets = [0, 0], sizes = [32, 24], strides = [1, 1]} : vector<32x96xf32> to vector<32x24xf32>
    %37 = vector.extract_strided_slice %35 {offsets = [0, 24], sizes = [32, 24], strides = [1, 1]} : vector<32x96xf32> to vector<32x24xf32>
    %38 = vector.extract_strided_slice %35 {offsets = [0, 48], sizes = [32, 24], strides = [1, 1]} : vector<32x96xf32> to vector<32x24xf32>
    %39 = vector.extract_strided_slice %35 {offsets = [0, 72], sizes = [32, 24], strides = [1, 1]} : vector<32x96xf32> to vector<32x24xf32>
    %40 = vector.shape_cast %36 : vector<32x24xf32> to vector<1x32x24xf32>
    %41 = vector.shape_cast %37 : vector<32x24xf32> to vector<1x32x24xf32>
    %42 = vector.shape_cast %38 : vector<32x24xf32> to vector<1x32x24xf32>
    %43 = vector.shape_cast %39 : vector<32x24xf32> to vector<1x32x24xf32>
    %44 = tpu.concatenate %40, %41, %42, %43 in 0 : vector<1x32x24xf32>, vector<1x32x24xf32>, vector<1x32x24xf32>, vector<1x32x24xf32> -> vector<4x32x24xf32>
    %45 = vector.shape_cast %44 : vector<4x32x24xf32> to vector<16x8x24xf32>
    %46 = vector.extract_strided_slice %45 {offsets = [0, 0, 0], sizes = [16, 8, 8], strides = [1, 1, 1]} : vector<16x8x24xf32> to vector<16x8x8xf32>
    %47 = vector.extract_strided_slice %45 {offsets = [0, 0, 8], sizes = [16, 8, 8], strides = [1, 1, 1]} : vector<16x8x24xf32> to vector<16x8x8xf32>
    %48 = vector.extract_strided_slice %45 {offsets = [0, 0, 16], sizes = [16, 8, 8], strides = [1, 1, 1]} : vector<16x8x24xf32> to vector<16x8x8xf32>
    %cst_13 = arith.constant dense<0.000000e+00> : vector<16x8x8xf32>
    %49 = tpu.matmul %46, %47, %cst_13 {dimension_numbers = #tpu.dot_dimension_numbers<[2], [2], [1], [1], [0, 0, 0, 1, 1, 1], [0], [0]>} : vector<16x8x8xf32>, vector<16x8x8xf32>, vector<16x8x8xf32> -> vector<16x8x8xf32>
    %cst_14 = arith.constant dense<0xFF800000> : vector<16x8xf32>
    %50 = vector.multi_reduction <maximumf>, %49, %cst_14 [2] : vector<16x8x8xf32> to vector<16x8xf32>
    %51 = vector.shape_cast %50 : vector<16x8xf32> to vector<16x8x1xf32>
    %52 = vector.broadcast %51 : vector<16x8x1xf32> to vector<16x8x8xf32>
    %53 = arith.subf %49, %52 : vector<16x8x8xf32>
    %54 = math.exp %53 : vector<16x8x8xf32>
    %cst_15 = arith.constant dense<0.000000e+00> : vector<16x8xf32>
    %55 = vector.multi_reduction <add>, %54, %cst_15 [2] : vector<16x8x8xf32> to vector<16x8xf32>
    %56 = vector.shape_cast %55 : vector<16x8xf32> to vector<16x8x1xf32>
    %cst_16 = arith.constant 1.000000e+00 : f32
    %57 = vector.broadcast %cst_16 : f32 to vector<16x8x1xf32>
    %58 = arith.divf %57, %56 : vector<16x8x1xf32>
    %cst_17 = arith.constant dense<0.000000e+00> : vector<16x8x8xf32>
    %59 = tpu.matmul %54, %48, %cst_17 {dimension_numbers = #tpu.dot_dimension_numbers<[2], [1], [1], [2], [0, 0, 0, 1, 1, 2], [0], [0]>} : vector<16x8x8xf32>, vector<16x8x8xf32>, vector<16x8x8xf32> -> vector<16x8x8xf32>
    %60 = vector.broadcast %58 : vector<16x8x1xf32> to vector<16x8x8xf32>
    %61 = arith.mulf %59, %60 : vector<16x8x8xf32>
    %62 = vector.shape_cast %61 : vector<16x8x8xf32> to vector<4x32x8xf32>
    %63 = vector.extract_strided_slice %62 {offsets = [0, 0, 0], sizes = [1, 32, 8], strides = [1, 1, 1]} : vector<4x32x8xf32> to vector<1x32x8xf32>
    %64 = vector.shape_cast %63 : vector<1x32x8xf32> to vector<32x8xf32>
    %c0_18 = arith.constant 0 : index
    %c0_19 = arith.constant 0 : index
    %c0_20 = arith.constant 0 : index
    %65 = vector.load %arg6[%c0_18, %c0_19, %c0_20] : memref<4x8x32xf32, #tpu.memory_space<vmem>>, vector<1x8x32xf32>
    %66 = vector.shape_cast %65 : vector<1x8x32xf32> to vector<8x32xf32>
    %cst_21 = arith.constant dense<0.000000e+00> : vector<32x32xf32>
    %67 = tpu.matmul %64, %66, %cst_21 {dimension_numbers = #tpu.dot_dimension_numbers<[1], [0], [0], [1], [0, 0, 1, 1], [], []>} : vector<32x8xf32>, vector<8x32xf32>, vector<32x32xf32> -> vector<32x32xf32>
    %68 = vector.extract_strided_slice %62 {offsets = [1, 0, 0], sizes = [1, 32, 8], strides = [1, 1, 1]} : vector<4x32x8xf32> to vector<1x32x8xf32>
    %69 = vector.shape_cast %68 : vector<1x32x8xf32> to vector<32x8xf32>
    %c1 = arith.constant 1 : index
    %c0_22 = arith.constant 0 : index
    %c0_23 = arith.constant 0 : index
    %70 = vector.load %arg6[%c1, %c0_22, %c0_23] : memref<4x8x32xf32, #tpu.memory_space<vmem>>, vector<1x8x32xf32>
    %71 = vector.shape_cast %70 : vector<1x8x32xf32> to vector<8x32xf32>
    %cst_24 = arith.constant dense<0.000000e+00> : vector<32x32xf32>
    %72 = tpu.matmul %69, %71, %cst_24 {dimension_numbers = #tpu.dot_dimension_numbers<[1], [0], [0], [1], [0, 0, 1, 1], [], []>} : vector<32x8xf32>, vector<8x32xf32>, vector<32x32xf32> -> vector<32x32xf32>
    %73 = arith.addf %67, %72 : vector<32x32xf32>
    %74 = vector.extract_strided_slice %62 {offsets = [2, 0, 0], sizes = [1, 32, 8], strides = [1, 1, 1]} : vector<4x32x8xf32> to vector<1x32x8xf32>
    %75 = vector.shape_cast %74 : vector<1x32x8xf32> to vector<32x8xf32>
    %c2 = arith.constant 2 : index
    %c0_25 = arith.constant 0 : index
    %c0_26 = arith.constant 0 : index
    %76 = vector.load %arg6[%c2, %c0_25, %c0_26] : memref<4x8x32xf32, #tpu.memory_space<vmem>>, vector<1x8x32xf32>
    %77 = vector.shape_cast %76 : vector<1x8x32xf32> to vector<8x32xf32>
    %cst_27 = arith.constant dense<0.000000e+00> : vector<32x32xf32>
    %78 = tpu.matmul %75, %77, %cst_27 {dimension_numbers = #tpu.dot_dimension_numbers<[1], [0], [0], [1], [0, 0, 1, 1], [], []>} : vector<32x8xf32>, vector<8x32xf32>, vector<32x32xf32> -> vector<32x32xf32>
    %79 = arith.addf %73, %78 : vector<32x32xf32>
    %80 = vector.extract_strided_slice %62 {offsets = [3, 0, 0], sizes = [1, 32, 8], strides = [1, 1, 1]} : vector<4x32x8xf32> to vector<1x32x8xf32>
    %81 = vector.shape_cast %80 : vector<1x32x8xf32> to vector<32x8xf32>
    %c3 = arith.constant 3 : index
    %c0_28 = arith.constant 0 : index
    %c0_29 = arith.constant 0 : index
    %82 = vector.load %arg6[%c3, %c0_28, %c0_29] : memref<4x8x32xf32, #tpu.memory_space<vmem>>, vector<1x8x32xf32>
    %83 = vector.shape_cast %82 : vector<1x8x32xf32> to vector<8x32xf32>
    %cst_30 = arith.constant dense<0.000000e+00> : vector<32x32xf32>
    %84 = tpu.matmul %81, %83, %cst_30 {dimension_numbers = #tpu.dot_dimension_numbers<[1], [0], [0], [1], [0, 0, 1, 1], [], []>} : vector<32x8xf32>, vector<8x32xf32>, vector<32x32xf32> -> vector<32x32xf32>
    %85 = arith.addf %79, %84 : vector<32x32xf32>
    %86 = arith.addf %1, %85 : vector<32x32xf32>
    %87 = vector.broadcast %7 : vector<1x32xf32> to vector<32x32xf32>
    %88 = arith.addf %86, %87 : vector<32x32xf32>
    %cst_31 = arith.constant dense<0.000000e+00> : vector<32xf32>
    %89 = vector.multi_reduction <add>, %88, %cst_31 [1] : vector<32x32xf32> to vector<32xf32>
    %90 = vector.shape_cast %89 : vector<32xf32> to vector<32x1xf32>
    %cst_32 = arith.constant 3.200000e+01 : f32
    %91 = vector.broadcast %cst_32 : f32 to vector<32x1xf32>
    %92 = arith.divf %90, %91 : vector<32x1xf32>
    %93 = vector.broadcast %92 : vector<32x1xf32> to vector<32x32xf32>
    %94 = arith.subf %88, %93 : vector<32x32xf32>
    %95 = arith.mulf %94, %94 : vector<32x32xf32>
    %cst_33 = arith.constant dense<0.000000e+00> : vector<32xf32>
    %96 = vector.multi_reduction <add>, %95, %cst_33 [1] : vector<32x32xf32> to vector<32xf32>
    %97 = vector.shape_cast %96 : vector<32xf32> to vector<32x1xf32>
    %cst_34 = arith.constant 3.200000e+01 : f32
    %98 = vector.broadcast %cst_34 : f32 to vector<32x1xf32>
    %99 = arith.divf %97, %98 : vector<32x1xf32>
    %100 = vector.broadcast %92 : vector<32x1xf32> to vector<32x32xf32>
    %101 = arith.subf %88, %100 : vector<32x32xf32>
    %cst_35 = arith.constant 9.99999996E-13 : f32
    %102 = vector.broadcast %cst_35 : f32 to vector<32x1xf32>
    %103 = arith.addf %99, %102 : vector<32x1xf32>
    %104 = math.sqrt %103 : vector<32x1xf32>
    %105 = vector.broadcast %104 : vector<32x1xf32> to vector<32x32xf32>
    %106 = arith.divf %101, %105 : vector<32x32xf32>
    %107 = vector.broadcast %5 : vector<1x32xf32> to vector<32x32xf32>
    %108 = arith.mulf %107, %106 : vector<32x32xf32>
    %109 = vector.broadcast %6 : vector<1x32xf32> to vector<32x32xf32>
    %110 = arith.addf %108, %109 : vector<32x32xf32>
    %c0_36 = arith.constant 0 : index
    %c0_37 = arith.constant 0 : index
    %111 = vector.load %arg7[%c0_36, %c0_37] : memref<32x128xf32, #tpu.memory_space<vmem>>, vector<32x128xf32>
    %cst_38 = arith.constant dense<0.000000e+00> : vector<32x128xf32>
    %112 = tpu.matmul %110, %111, %cst_38 {dimension_numbers = #tpu.dot_dimension_numbers<[1], [0], [0], [1], [0, 0, 1, 1], [], []>} : vector<32x32xf32>, vector<32x128xf32>, vector<32x128xf32> -> vector<32x128xf32>
    %c0_39 = arith.constant 0 : index
    %c0_40 = arith.constant 0 : index
    %113 = vector.load %arg4[%c0_39, %c0_40] : memref<1x128xf32, #tpu.memory_space<vmem>>, vector<1x128xf32>
    %114 = vector.broadcast %113 : vector<1x128xf32> to vector<32x128xf32>
    %115 = arith.addf %112, %114 : vector<32x128xf32>
    %cst_41 = arith.constant 1.702000e+00 : f32
    %116 = vector.broadcast %cst_41 : f32 to vector<32x128xf32>
    %117 = arith.mulf %116, %115 : vector<32x128xf32>
    %118 = arith.negf %117 : vector<32x128xf32>
    %119 = math.exp %118 : vector<32x128xf32>
    %cst_42 = arith.constant 1.000000e+00 : f32
    %120 = vector.broadcast %cst_42 : f32 to vector<32x128xf32>
    %121 = arith.addf %120, %119 : vector<32x128xf32>
    %122 = arith.divf %120, %121 : vector<32x128xf32>
    %123 = arith.mulf %115, %122 : vector<32x128xf32>
    %c0_43 = arith.constant 0 : index
    %c0_44 = arith.constant 0 : index
    %124 = vector.load %arg8[%c0_43, %c0_44] : memref<128x32xf32, #tpu.memory_space<vmem>>, vector<128x32xf32>
    %cst_45 = arith.constant dense<0.000000e+00> : vector<32x32xf32>
    %125 = tpu.matmul %123, %124, %cst_45 {dimension_numbers = #tpu.dot_dimension_numbers<[1], [0], [0], [1], [0, 0, 1, 1], [], []>} : vector<32x128xf32>, vector<128x32xf32>, vector<32x32xf32> -> vector<32x32xf32>
    %126 = vector.broadcast %8 : vector<1x32xf32> to vector<32x32xf32>
    %127 = arith.addf %125, %126 : vector<32x32xf32>
    %128 = arith.addf %88, %127 : vector<32x32xf32>
    %129 = vector.shape_cast %128 : vector<32x32xf32> to vector<4x8x32xf32>
    %c0_46 = arith.constant 0 : index
    %c0_47 = arith.constant 0 : index
    %c0_48 = arith.constant 0 : index
    %130 = vector.load %arg9[%c0_46, %c0_47, %c0_48] : memref<4x8x32xf32, #tpu.memory_space<vmem>>, vector<4x8x32xf32>
    tpu.vector_store %arg9[%c0_46, %c0_47, %c0_48], %129 {strides = array<i32>} : memref<4x8x32xf32, #tpu.memory_space<vmem>>, vector<4x8x32xf32>,
    return
  }
  func.func @transform_0(%arg0: i32) -> (i32, i32, i32) {
    %c0_i32 = arith.constant 0 : i32
    %c0_i32_0 = arith.constant 0 : i32
    %c0_i32_1 = arith.constant 0 : i32
    return %arg0, %c0_i32, %c0_i32_0 : i32, i32, i32
  }
  func.func @transform_1(%arg0: i32) -> (i32, i32) {
    %c0_i32 = arith.constant 0 : i32
    %c0_i32_0 = arith.constant 0 : i32
    %c0_i32_1 = arith.constant 0 : i32
    return %c0_i32, %c0_i32_0 : i32, i32
  }
  func.func @transform_2(%arg0: i32) -> (i32, i32) {
    %c0_i32 = arith.constant 0 : i32
    %c0_i32_0 = arith.constant 0 : i32
    %c0_i32_1 = arith.constant 0 : i32
    return %c0_i32, %c0_i32_0 : i32, i32
  }
  func.func @transform_3(%arg0: i32) -> (i32, i32) {
    %c0_i32 = arith.constant 0 : i32
    %c0_i32_0 = arith.constant 0 : i32
    %c0_i32_1 = arith.constant 0 : i32
    return %c0_i32, %c0_i32_0 : i32, i32
  }
  func.func @transform_4(%arg0: i32) -> (i32, i32) {
    %c0_i32 = arith.constant 0 : i32
    %c0_i32_0 = arith.constant 0 : i32
    %c0_i32_1 = arith.constant 0 : i32
    return %c0_i32, %c0_i32_0 : i32, i32
  }
  func.func @transform_5(%arg0: i32) -> (i32, i32, i32) {
    %c0_i32 = arith.constant 0 : i32
    %c0_i32_0 = arith.constant 0 : i32
    %c0_i32_1 = arith.constant 0 : i32
    %c0_i32_2 = arith.constant 0 : i32
    return %c0_i32, %c0_i32_0, %c0_i32_1 : i32, i32, i32
  }
  func.func @transform_6(%arg0: i32) -> (i32, i32) {
    %c0_i32 = arith.constant 0 : i32
    %c0_i32_0 = arith.constant 0 : i32
    %c0_i32_1 = arith.constant 0 : i32
    return %c0_i32, %c0_i32_0 : i32, i32
  }
  func.func @transform_7(%arg0: i32) -> (i32, i32) {
    %c0_i32 = arith.constant 0 : i32
    %c0_i32_0 = arith.constant 0 : i32
    %c0_i32_1 = arith.constant 0 : i32
    return %c0_i32, %c0_i32_0 : i32, i32
  }
  func.func @transform_8(%arg0: i32) -> (i32, i32, i32) {
    %c0_i32 = arith.constant 0 : i32
    %c0_i32_0 = arith.constant 0 : i32
    %c0_i32_1 = arith.constant 0 : i32
    return %arg0, %c0_i32, %c0_i32_0 : i32, i32, i32
  }
}

module attributes {stable_mosaic.version = 11 : i64} {
  func.func @_block_kernel(%arg0: i32, %arg1: memref<4x8x32xf32, #tpu.memory_space<vmem>>, %arg2: memref<6x32xf32, #tpu.memory_space<vmem>>, %arg3: memref<1x96xf32, #tpu.memory_space<vmem>>, %arg4: memref<1x128xf32, #tpu.memory_space<vmem>>, %arg5: memref<32x96xf32, #tpu.memory_space<vmem>>, %arg6: memref<4x8x32xf32, #tpu.memory_space<vmem>>, %arg7: memref<32x128xf32, #tpu.memory_space<vmem>>, %arg8: memref<128x32xf32, #tpu.memory_space<vmem>>, %arg9: memref<4x8x32xf32, #tpu.memory_space<vmem>>) attributes {dimension_semantics = [#tpu.dimension_semantics<parallel>], iteration_bounds = array<i64: 1>, scalar_prefetch = 0 : i64, scratch_operands = 0 : i64, tpu.core_type = #tpu.core_type<tc>, window_params = [{transform_indices = @transform_0, window_bounds = array<i64: 4, 8, 32>}, {pipeline_mode = #tpu.pipeline_mode<synchronous>, transform_indices = @transform_1, window_bounds = array<i64: 6, 32>}, {pipeline_mode = #tpu.pipeline_mode<synchronous>, transform_indices = @transform_2, window_bounds = array<i64: 1, 96>}, {pipeline_mode = #tpu.pipeline_mode<synchronous>, transform_indices = @transform_3, window_bounds = array<i64: 1, 128>}, {pipeline_mode = #tpu.pipeline_mode<synchronous>, transform_indices = @transform_4, window_bounds = array<i64: 32, 96>}, {pipeline_mode = #tpu.pipeline_mode<synchronous>, transform_indices = @transform_5, window_bounds = array<i64: 4, 8, 32>}, {pipeline_mode = #tpu.pipeline_mode<synchronous>, transform_indices = @transform_6, window_bounds = array<i64: 32, 128>}, {pipeline_mode = #tpu.pipeline_mode<synchronous>, transform_indices = @transform_7, window_bounds = array<i64: 128, 32>}, {transform_indices = @transform_8, window_bounds = array<i64: 4, 8, 32>}]} {
    %c0 = arith.constant 0 : index
    %c0_0 = arith.constant 0 : index
    %c0_1 = arith.constant 0 : index
    %0 = vector.load %arg1[%c0, %c0_0, %c0_1] : memref<4x8x32xf32, #tpu.memory_space<vmem>>, vector<4x8x32xf32>
    %1 = vector.shape_cast %0 : vector<4x8x32xf32> to vector<32x32xf32>
    %c0_2 = arith.constant 0 : index
    %c0_3 = arith.constant 0 : index
    %2 = vector.load %arg2[%c0_2, %c0_3] : memref<6x32xf32, #tpu.memory_space<vmem>>, vector<6x32xf32>
    %3 = vector.extract_strided_slice %2 {offsets = [0, 0], sizes = [1, 32], strides = [1, 1]} : vector<6x32xf32> to vector<1x32xf32>
    %4 = vector.extract_strided_slice %2 {offsets = [1, 0], sizes = [1, 32], strides = [1, 1]} : vector<6x32xf32> to vector<1x32xf32>
    %5 = vector.extract_strided_slice %2 {offsets = [2, 0], sizes = [1, 32], strides = [1, 1]} : vector<6x32xf32> to vector<1x32xf32>
    %6 = vector.extract_strided_slice %2 {offsets = [3, 0], sizes = [1, 32], strides = [1, 1]} : vector<6x32xf32> to vector<1x32xf32>
    %7 = vector.extract_strided_slice %2 {offsets = [4, 0], sizes = [1, 32], strides = [1, 1]} : vector<6x32xf32> to vector<1x32xf32>
    %8 = vector.extract_strided_slice %2 {offsets = [5, 0], sizes = [1, 32], strides = [1, 1]} : vector<6x32xf32> to vector<1x32xf32>
    %cst = arith.constant dense<0.000000e+00> : vector<32xf32>
    %9 = vector.multi_reduction <add>, %1, %cst [1] : vector<32x32xf32> to vector<32xf32>
    %10 = vector.shape_cast %9 : vector<32xf32> to vector<32x1xf32>
    %cst_4 = arith.constant 3.200000e+01 : f32
    %11 = vector.broadcast %cst_4 : f32 to vector<32x1xf32>
    %12 = arith.divf %10, %11 : vector<32x1xf32>
    %13 = vector.broadcast %12 : vector<32x1xf32> to vector<32x32xf32>
    %14 = arith.subf %1, %13 : vector<32x32xf32>
    %15 = arith.mulf %14, %14 : vector<32x32xf32>
    %cst_5 = arith.constant dense<0.000000e+00> : vector<32xf32>
    %16 = vector.multi_reduction <add>, %15, %cst_5 [1] : vector<32x32xf32> to vector<32xf32>
    %17 = vector.shape_cast %16 : vector<32xf32> to vector<32x1xf32>
    %cst_6 = arith.constant 3.200000e+01 : f32
    %18 = vector.broadcast %cst_6 : f32 to vector<32x1xf32>
    %19 = arith.divf %17, %18 : vector<32x1xf32>
    %20 = vector.broadcast %12 : vector<32x1xf32> to vector<32x32xf32>
    %21 = arith.subf %1, %20 : vector<32x32xf32>
    %cst_7 = arith.constant 9.99999996E-13 : f32
    %22 = vector.broadcast %cst_7 : f32 to vector<32x1xf32>
    %23 = arith.addf %19, %22 : vector<32x1xf32>
    %24 = math.sqrt %23 : vector<32x1xf32>
    %25 = vector.broadcast %24 : vector<32x1xf32> to vector<32x32xf32>
    %26 = arith.divf %21, %25 : vector<32x32xf32>
    %27 = vector.broadcast %3 : vector<1x32xf32> to vector<32x32xf32>
    %28 = arith.mulf %27, %26 : vector<32x32xf32>
    %29 = vector.broadcast %4 : vector<1x32xf32> to vector<32x32xf32>
    %30 = arith.addf %28, %29 : vector<32x32xf32>
    %c0_8 = arith.constant 0 : index
    %c0_9 = arith.constant 0 : index
    %31 = vector.load %arg5[%c0_8, %c0_9] : memref<32x96xf32, #tpu.memory_space<vmem>>, vector<32x96xf32>
    %cst_10 = arith.constant dense<0.000000e+00> : vector<32x96xf32>
    %32 = tpu.matmul %30, %31, %cst_10 {dimension_numbers = #tpu.dot_dimension_numbers<[1], [0], [0], [1], [0, 0, 1, 1], [], []>} : vector<32x32xf32>, vector<32x96xf32>, vector<32x96xf32> -> vector<32x96xf32>
    %c0_11 = arith.constant 0 : index
    %c0_12 = arith.constant 0 : index
    %33 = vector.load %arg3[%c0_11, %c0_12] : memref<1x96xf32, #tpu.memory_space<vmem>>, vector<1x96xf32>
    %34 = vector.broadcast %33 : vector<1x96xf32> to vector<32x96xf32>
    %35 = arith.addf %32, %34 : vector<32x96xf32>
    %36 = vector.extract_strided_slice %35 {offsets = [0, 0], sizes = [32, 24], strides = [1, 1]} : vector<32x96xf32> to vector<32x24xf32>
    %37 = vector.extract_strided_slice %35 {offsets = [0, 24], sizes = [32, 24], strides = [1, 1]} : vector<32x96xf32> to vector<32x24xf32>
    %38 = vector.extract_strided_slice %35 {offsets = [0, 48], sizes = [32, 24], strides = [1, 1]} : vector<32x96xf32> to vector<32x24xf32>
    %39 = vector.extract_strided_slice %35 {offsets = [0, 72], sizes = [32, 24], strides = [1, 1]} : vector<32x96xf32> to vector<32x24xf32>
    %40 = vector.shape_cast %36 : vector<32x24xf32> to vector<1x32x24xf32>
    %41 = vector.shape_cast %37 : vector<32x24xf32> to vector<1x32x24xf32>
    %42 = vector.shape_cast %38 : vector<32x24xf32> to vector<1x32x24xf32>
    %43 = vector.shape_cast %39 : vector<32x24xf32> to vector<1x32x24xf32>
    %44 = tpu.concatenate %40, %41, %42, %43 in 0 : vector<1x32x24xf32>, vector<1x32x24xf32>, vector<1x32x24xf32>, vector<1x32x24xf32> -> vector<4x32x24xf32>
    %45 = vector.shape_cast %44 : vector<4x32x24xf32> to vector<16x8x24xf32>
    %46 = vector.extract_strided_slice %45 {offsets = [0, 0, 0], sizes = [16, 8, 8], strides = [1, 1, 1]} : vector<16x8x24xf32> to vector<16x8x8xf32>
    %47 = vector.extract_strided_slice %45 {offsets = [0, 0, 8], sizes = [16, 8, 8], strides = [1, 1, 1]} : vector<16x8x24xf32> to vector<16x8x8xf32>
    %48 = vector.extract_strided_slice %45 {offsets = [0, 0, 16], sizes = [16, 8, 8], strides = [1, 1, 1]} : vector<16x8x24xf32> to vector<16x8x8xf32>
    %cst_13 = arith.constant dense<0.000000e+00> : vector<16x8x8xf32>
    %49 = tpu.matmul %46, %47, %cst_13 {dimension_numbers = #tpu.dot_dimension_numbers<[2], [2], [1], [1], [0, 0, 0, 1, 1, 1], [0], [0]>} : vector<16x8x8xf32>, vector<16x8x8xf32>, vector<16x8x8xf32> -> vector<16x8x8xf32>
    %cst_14 = arith.constant dense<0xFF800000> : vector<16x8xf32>
    %50 = vector.multi_reduction <maximumf>, %49, %cst_14 [2] : vector<16x8x8xf32> to vector<16x8xf32>
    %51 = vector.shape_cast %50 : vector<16x8xf32> to vector<16x8x1xf32>
    %52 = vector.broadcast %51 : vector<16x8x1xf32> to vector<16x8x8xf32>
    %53 = arith.subf %49, %52 : vector<16x8x8xf32>
    %54 = math.exp %53 : vector<16x8x8xf32>
    %cst_15 = arith.constant dense<0.000000e+00> : vector<16x8xf32>
    %55 = vector.multi_reduction <add>, %54, %cst_15 [2] : vector<16x8x8xf32> to vector<16x8xf32>
    %56 = vector.shape_cast %55 : vector<16x8xf32> to vector<16x8x1xf32>
    %cst_16 = arith.constant 1.000000e+00 : f32
    %57 = vector.broadcast %cst_16 : f32 to vector<16x8x1xf32>
    %58 = arith.divf %57, %56 : vector<16x8x1xf32>
    %cst_17 = arith.constant dense<0.000000e+00> : vector<16x8x8xf32>
    %59 = tpu.matmul %54, %48, %cst_17 {dimension_numbers = #tpu.dot_dimension_numbers<[2], [1], [1], [2], [0, 0, 0, 1, 1, 2], [0], [0]>} : vector<16x8x8xf32>, vector<16x8x8xf32>, vector<16x8x8xf32> -> vector<16x8x8xf32>
    %60 = vector.broadcast %58 : vector<16x8x1xf32> to vector<16x8x8xf32>
    %61 = arith.mulf %59, %60 : vector<16x8x8xf32>
    %62 = vector.shape_cast %61 : vector<16x8x8xf32> to vector<4x32x8xf32>
    %63 = vector.extract_strided_slice %62 {offsets = [0, 0, 0], sizes = [1, 32, 8], strides = [1, 1, 1]} : vector<4x32x8xf32> to vector<1x32x8xf32>
    %64 = vector.shape_cast %63 : vector<1x32x8xf32> to vector<32x8xf32>
    %c0_18 = arith.constant 0 : index
    %c0_19 = arith.constant 0 : index
    %c0_20 = arith.constant 0 : index
    %65 = vector.load %arg6[%c0_18, %c0_19, %c0_20] : memref<4x8x32xf32, #tpu.memory_space<vmem>>, vector<1x8x32xf32>
    %66 = vector.shape_cast %65 : vector<1x8x32xf32> to vector<8x32xf32>
    %cst_21 = arith.constant dense<0.000000e+00> : vector<32x32xf32>
    %67 = tpu.matmul %64, %66, %cst_21 {dimension_numbers = #tpu.dot_dimension_numbers<[1], [0], [0], [1], [0, 0, 1, 1], [], []>} : vector<32x8xf32>, vector<8x32xf32>, vector<32x32xf32> -> vector<32x32xf32>
    %68 = vector.extract_strided_slice %62 {offsets = [1, 0, 0], sizes = [1, 32, 8], strides = [1, 1, 1]} : vector<4x32x8xf32> to vector<1x32x8xf32>
    %69 = vector.shape_cast %68 : vector<1x32x8xf32> to vector<32x8xf32>
    %c1 = arith.constant 1 : index
    %c0_22 = arith.constant 0 : index
    %c0_23 = arith.constant 0 : index
    %70 = vector.load %arg6[%c1, %c0_22, %c0_23] : memref<4x8x32xf32, #tpu.memory_space<vmem>>, vector<1x8x32xf32>
    %71 = vector.shape_cast %70 : vector<1x8x32xf32> to vector<8x32xf32>
    %cst_24 = arith.constant dense<0.000000e+00> : vector<32x32xf32>
    %72 = tpu.matmul %69, %71, %cst_24 {dimension_numbers = #tpu.dot_dimension_numbers<[1], [0], [0], [1], [0, 0, 1, 1], [], []>} : vector<32x8xf32>, vector<8x32xf32>, vector<32x32xf32> -> vector<32x32xf32>
    %73 = arith.addf %67, %72 : vector<32x32xf32>
    %74 = vector.extract_strided_slice %62 {offsets = [2, 0, 0], sizes = [1, 32, 8], strides = [1, 1, 1]} : vector<4x32x8xf32> to vector<1x32x8xf32>
    %75 = vector.shape_cast %74 : vector<1x32x8xf32> to vector<32x8xf32>
    %c2 = arith.constant 2 : index
    %c0_25 = arith.constant 0 : index
    %c0_26 = arith.constant 0 : index
    %76 = vector.load %arg6[%c2, %c0_25, %c0_26] : memref<4x8x32xf32, #tpu.memory_space<vmem>>, vector<1x8x32xf32>
    %77 = vector.shape_cast %76 : vector<1x8x32xf32> to vector<8x32xf32>
    %cst_27 = arith.constant dense<0.000000e+00> : vector<32x32xf32>
    %78 = tpu.matmul %75, %77, %cst_27 {dimension_numbers = #tpu.dot_dimension_numbers<[1], [0], [0], [1], [0, 0, 1, 1], [], []>} : vector<32x8xf32>, vector<8x32xf32>, vector<32x32xf32> -> vector<32x32xf32>
    %79 = arith.addf %73, %78 : vector<32x32xf32>
    %80 = vector.extract_strided_slice %62 {offsets = [3, 0, 0], sizes = [1, 32, 8], strides = [1, 1, 1]} : vector<4x32x8xf32> to vector<1x32x8xf32>
    %81 = vector.shape_cast %80 : vector<1x32x8xf32> to vector<32x8xf32>
    %c3 = arith.constant 3 : index
    %c0_28 = arith.constant 0 : index
    %c0_29 = arith.constant 0 : index
    %82 = vector.load %arg6[%c3, %c0_28, %c0_29] : memref<4x8x32xf32, #tpu.memory_space<vmem>>, vector<1x8x32xf32>
    %83 = vector.shape_cast %82 : vector<1x8x32xf32> to vector<8x32xf32>
    %cst_30 = arith.constant dense<0.000000e+00> : vector<32x32xf32>
    %84 = tpu.matmul %81, %83, %cst_30 {dimension_numbers = #tpu.dot_dimension_numbers<[1], [0], [0], [1], [0, 0, 1, 1], [], []>} : vector<32x8xf32>, vector<8x32xf32>, vector<32x32xf32> -> vector<32x32xf32>
    %85 = arith.addf %79, %84 : vector<32x32xf32>
    %86 = arith.addf %1, %85 : vector<32x32xf32>
    %87 = vector.broadcast %7 : vector<1x32xf32> to vector<32x32xf32>
    %88 = arith.addf %86, %87 : vector<32x32xf32>
    %cst_31 = arith.constant dense<0.000000e+00> : vector<32xf32>
    %89 = vector.multi_reduction <add>, %88, %cst_31 [1] : vector<32x32xf32> to vector<32xf32>
    %90 = vector.shape_cast %89 : vector<32xf32> to vector<32x1xf32>
    %cst_32 = arith.constant 3.200000e+01 : f32
    %91 = vector.broadcast %cst_32 : f32 to vector<32x1xf32>
    %92 = arith.divf %90, %91 : vector<32x1xf32>
    %93 = vector.broadcast %92 : vector<32x1xf32> to vector<32x32xf32>
    %94 = arith.subf %88, %93 : vector<32x32xf32>
    %95 = arith.mulf %94, %94 : vector<32x32xf32>
    %cst_33 = arith.constant dense<0.000000e+00> : vector<32xf32>
    %96 = vector.multi_reduction <add>, %95, %cst_33 [1] : vector<32x32xf32> to vector<32xf32>
    %97 = vector.shape_cast %96 : vector<32xf32> to vector<32x1xf32>
    %cst_34 = arith.constant 3.200000e+01 : f32
    %98 = vector.broadcast %cst_34 : f32 to vector<32x1xf32>
    %99 = arith.divf %97, %98 : vector<32x1xf32>
    %100 = vector.broadcast %92 : vector<32x1xf32> to vector<32x32xf32>
    %101 = arith.subf %88, %100 : vector<32x32xf32>
    %cst_35 = arith.constant 9.99999996E-13 : f32
    %102 = vector.broadcast %cst_35 : f32 to vector<32x1xf32>
    %103 = arith.addf %99, %102 : vector<32x1xf32>
    %104 = math.sqrt %103 : vector<32x1xf32>
    %105 = vector.broadcast %104 : vector<32x1xf32> to vector<32x32xf32>
    %106 = arith.divf %101, %105 : vector<32x32xf32>
    %107 = vector.broadcast %5 : vector<1x32xf32> to vector<32x32xf32>
    %108 = arith.mulf %107, %106 : vector<32x32xf32>
    %109 = vector.broadcast %6 : vector<1x32xf32> to vector<32x32xf32>
    %110 = arith.addf %108, %109 : vector<32x32xf32>
    %c0_36 = arith.constant 0 : index
    %c0_37 = arith.constant 0 : index
    %111 = vector.load %arg7[%c0_36, %c0_37] : memref<32x128xf32, #tpu.memory_space<vmem>>, vector<32x128xf32>
    %cst_38 = arith.constant dense<0.000000e+00> : vector<32x128xf32>
    %112 = tpu.matmul %110, %111, %cst_38 {dimension_numbers = #tpu.dot_dimension_numbers<[1], [0], [0], [1], [0, 0, 1, 1], [], []>} : vector<32x32xf32>, vector<32x128xf32>, vector<32x128xf32> -> vector<32x128xf32>
    %c0_39 = arith.constant 0 : index
    %c0_40 = arith.constant 0 : index
    %113 = vector.load %arg4[%c0_39, %c0_40] : memref<1x128xf32, #tpu.memory_space<vmem>>, vector<1x128xf32>
    %114 = vector.broadcast %113 : vector<1x128xf32> to vector<32x128xf32>
    %115 = arith.addf %112, %114 : vector<32x128xf32>
    %cst_41 = arith.constant 1.702000e+00 : f32
    %116 = vector.broadcast %cst_41 : f32 to vector<32x128xf32>
    %117 = arith.mulf %116, %115 : vector<32x128xf32>
    %118 = arith.negf %117 : vector<32x128xf32>
    %119 = math.exp %118 : vector<32x128xf32>
    %cst_42 = arith.constant 1.000000e+00 : f32
    %120 = vector.broadcast %cst_42 : f32 to vector<32x128xf32>
    %121 = arith.addf %120, %119 : vector<32x128xf32>
    %122 = arith.divf %120, %121 : vector<32x128xf32>
    %123 = arith.mulf %115, %122 : vector<32x128xf32>
    %c0_43 = arith.constant 0 : index
    %c0_44 = arith.constant 0 : index
    %124 = vector.load %arg8[%c0_43, %c0_44] : memref<128x32xf32, #tpu.memory_space<vmem>>, vector<128x32xf32>
    %cst_45 = arith.constant dense<0.000000e+00> : vector<32x32xf32>
    %125 = tpu.matmul %123, %124, %cst_45 {dimension_numbers = #tpu.dot_dimension_numbers<[1], [0], [0], [1], [0, 0, 1, 1], [], []>} : vector<32x128xf32>, vector<128x32xf32>, vector<32x32xf32> -> vector<32x32xf32>
    %126 = vector.broadcast %8 : vector<1x32xf32> to vector<32x32xf32>
    %127 = arith.addf %125, %126 : vector<32x32xf32>
    %128 = arith.addf %88, %127 : vector<32x32xf32>
    %129 = vector.shape_cast %128 : vector<32x32xf32> to vector<4x8x32xf32>
    %c0_46 = arith.constant 0 : index
    %c0_47 = arith.constant 0 : index
    %c0_48 = arith.constant 0 : index
    %130 = vector.load %arg9[%c0_46, %c0_47, %c0_48] : memref<4x8x32xf32, #tpu.memory_space<vmem>>, vector<4x8x32xf32>
    tpu.vector_store %arg9[%c0_46, %c0_47, %c0_48], %129 {strides = array<i32>} : memref<4x8x32xf32, #tpu.memory_space<vmem>>, vector<4x8x32xf32>,
    return
  }
  func.func @transform_0(%arg0: i32) -> (i32, i32, i32) {
    %c0_i32 = arith.constant 0 : i32
    %c0_i32_0 = arith.constant 0 : i32
    %c0_i32_1 = arith.constant 0 : i32
    return %arg0, %c0_i32, %c0_i32_0 : i32, i32, i32
  }
  func.func @transform_1(%arg0: i32) -> (i32, i32) {
    %c0_i32 = arith.constant 0 : i32
    %c0_i32_0 = arith.constant 0 : i32
    %c0_i32_1 = arith.constant 0 : i32
    return %c0_i32, %c0_i32_0 : i32, i32
  }
  func.func @transform_2(%arg0: i32) -> (i32, i32) {
    %c0_i32 = arith.constant 0 : i32
    %c0_i32_0 = arith.constant 0 : i32
    %c0_i32_1 = arith.constant 0 : i32
    return %c0_i32, %c0_i32_0 : i32, i32
  }
  func.func @transform_3(%arg0: i32) -> (i32, i32) {
    %c0_i32 = arith.constant 0 : i32
    %c0_i32_0 = arith.constant 0 : i32
    %c0_i32_1 = arith.constant 0 : i32
    return %c0_i32, %c0_i32_0 : i32, i32
  }
  func.func @transform_4(%arg0: i32) -> (i32, i32) {
    %c0_i32 = arith.constant 0 : i32
    %c0_i32_0 = arith.constant 0 : i32
    %c0_i32_1 = arith.constant 0 : i32
    return %c0_i32, %c0_i32_0 : i32, i32
  }
  func.func @transform_5(%arg0: i32) -> (i32, i32, i32) {
    %c0_i32 = arith.constant 0 : i32
    %c0_i32_0 = arith.constant 0 : i32
    %c0_i32_1 = arith.constant 0 : i32
    %c0_i32_2 = arith.constant 0 : i32
    return %c0_i32, %c0_i32_0, %c0_i32_1 : i32, i32, i32
  }
  func.func @transform_6(%arg0: i32) -> (i32, i32) {
    %c0_i32 = arith.constant 0 : i32
    %c0_i32_0 = arith.constant 0 : i32
    %c0_i32_1 = arith.constant 0 : i32
    return %c0_i32, %c0_i32_0 : i32, i32
  }
  func.func @transform_7(%arg0: i32) -> (i32, i32) {
    %c0_i32 = arith.constant 0 : i32
    %c0_i32_0 = arith.constant 0 : i32
    %c0_i32_1 = arith.constant 0 : i32
    return %c0_i32, %c0_i32_0 : i32, i32
  }
  func.func @transform_8(%arg0: i32) -> (i32, i32, i32) {
    %c0_i32 = arith.constant 0 : i32
    %c0_i32_0 = arith.constant 0 : i32
    %c0_i32_1 = arith.constant 0 : i32
    return %arg0, %c0_i32, %c0_i32_0 : i32, i32, i32
  }
}

</mosaic_0001>

<bundles_post_ra>
// kernel: tpu_custom_call.1
= control target key start
LH: loop header
LB: loop body
LE: loop exit
PB: predicated region body
PF: predicated region fallthrough
CT: control target
= control target key end

     0   :  { %vm35_vm0 = vcmask 261120   ;;  %s4965_s0 = inlined_call_operand.vmem [shape: f32[4,8,32], index: 0, kind: input, shape index: {}]   ;;  %s4966_s1 = inlined_call_operand.vmem [shape: f32[6,32], index: 1, kind: input, shape index: {}]   ;;  %s4967_s2 = inlined_call_operand.vmem [shape: f32[1,96], index: 2, kind: input, shape index: {}]   ;;  %s4968_s3 = inlined_call_operand.vmem [shape: f32[1,128], index: 3, kind: input, shape index: {}]   ;;  %s4969_s4 = inlined_call_operand.vmem [shape: f32[32,96], index: 4, kind: input, shape index: {}]   ;;  %s4970_s5 = inlined_call_operand.vmem [shape: f32[4,8,32], index: 5, kind: input, shape index: {}]   ;;  %s4971_s6 = inlined_call_operand.vmem [shape: f32[32,128], index: 6, kind: input, shape index: {}]   ;;  %s4972_s7 = inlined_call_operand.vmem [shape: f32[128,32], index: 7, kind: input, shape index: {}]   ;;  %s4973_s8 = inlined_call_operand.hbm [shape: f32[4,8,32], index: 8, kind: output, shape index: {}]  }
   0x1   :  { %v30_v0 = vld [vmem:[%s4965_s0] sm:$0xff]  ;;  %v32_v1 = vld [vmem:[%s4965_s0 + $0x10] sm:$0xff]  ;;  %v31_v2 = vld [vmem:[%s4965_s0 + $0x8] sm:$0xff] }
   0x2   :  { %v36_v3 = vsel %vm35_vm0, %v30_v0, 0.0  ;;  %v42_v4 = vsel %vm35_vm0, %v32_v1, 0.0  ;;  %v33_v5 = vld [vmem:[%s4965_s0 + $0x18] sm:$0xff] }
   0x3   :  { %13 = vsyncpa [#allocation3], 0  ;;  %37 = vadd.xlane.f32.xlu0 %v36_v3  ;;  %43 = vadd.xlane.f32.xlu1 %v42_v4  ;;  %v39_v6 = vsel %vm35_vm0, %v31_v2, 0.0  ;;  %v45_v7 = vsel %vm35_vm0, %v33_v5, 0.0  ;;  %v136_v28 = vld [vmem:[%s4969_s4 + $0x18] sm:$0xff]  ;;  %v135_v29 = vld [vmem:[%s4969_s4 + $0x10] sm:$0xff]  ;;  %v117_v50 = vlaneseq }
   0x4   :  { %3875 = vmatprep.subr.mxu1 %v136_v28  ;;  %v134_v30 = vld [vmem:[%s4969_s4 + $0x8] sm:$0xff]  ;;  %v133_v31 = vld [vmem:[%s4969_s4] sm:$0xff]  ;;  %s4282_s24 = smov 104   ;;  %s4283_s25 = smov 80   ;;  %vm4285_vm9 = vmmov 0   ;;  %vm271_vm10 = vcmask 64512  }
   0x5   :  { %3876 = vmatpush3.msra.mxu1 %v136_v28  ;;  %v4385_v60 = vshrl.u32 %v117_v50, 7  ;;  %v34_v3 = vld [vmem:[%s4966_s1] sm:$0x3f]  ;;  %s4287_s26 = smov 120   ;;  %s4288_s27 = smov 112  }
   0x6   :  { %3877 = vmatprep.subr.mxu1 %v135_v29 }
   0x7   :  { %40 = vadd.xlane.f32.xlu0 %v39_v6  ;;  %46 = vadd.xlane.f32.xlu1 %v45_v7  ;;  %v127_v4 = vsub.s32 1, %v4385_v60 }
   0x8   :  { %3878 = vmatpush3.msra.mxu1 %v135_v29 }
   0x9   :  { %3879 = vmatprep.subr.mxu1 %v134_v30 }
   0xa   :  { %3880 = vmatpush3.msra.mxu1 %v134_v30 }
   0xb   :  { %3881 = vmatprep.subr.mxu1 %v133_v31 }
   0xc   :  { %3882 = vmatpush3.msra.mxu1 %v133_v31  ;;  %v4284_v31 = vmov 0.0  }
   0xd   :  { %3889 = vmatprep.subr.mxu1 %v4284_v31  ;;  %3904 = vmatprep.subr.mxu0 %v4284_v31 }
   0xe   :  { %3906 = vmatprep.mubr.msk.f32.mxu0 %vm4285_vm9, %v4284_v31 }
  0x8c   :  { %v38_v8 = vpop.xlane.xlu0 %37  ;;  %v44_v9 = vpop.xlane.xlu1 %43 }
  0x8d   :  { %v49_v10 = vmul.f32 0.03125, %v38_v8  ;;  %v51_v11 = vmul.f32 0.03125, %v44_v9  ;;  %v128_v8 = vrot.slane %v34_v3, %v127_v4 }
  0x8f   :  { %v4353_v12 = vsub.f32 %v30_v0, %v49_v10  ;;  %v4355_v13 = vsub.f32 %v32_v1, %v51_v11 }
  0x90   :  { %v41_v14 = vpop.xlane.xlu0 %40  ;;  %v47_v15 = vpop.xlane.xlu1 %46 }
  0x91   :  { %v50_v16 = vmul.f32 0.03125, %v41_v14  ;;  %v52_v17 = vmul.f32 0.03125, %v47_v15  ;;  %v57_v18 = vmul.f32 %v4353_v12, %v4353_v12  ;;  %v59_v19 = vmul.f32 %v4355_v13, %v4355_v13 }
  0x93   :  { %v4361_v20 = vsub.f32 %v31_v2, %v50_v16  ;;  %v4363_v21 = vsub.f32 %v33_v5, %v52_v17  ;;  %v61_v22 = vsel %vm35_vm0, %v57_v18, 0.0  ;;  %v67_v23 = vsel %vm35_vm0, %v59_v19, 0.0 }
  0x94   :  { %62 = vadd.xlane.f32.xlu0 %v61_v22  ;;  %v119_v2 = vsub.s32 0, %v4385_v60 }
  0x95   :  { %v58_v24 = vmul.f32 %v4361_v20, %v4361_v20  ;;  %v60_v25 = vmul.f32 %v4363_v21, %v4363_v21 }
  0x96   :  { %v120_v5 = vrot.slane %v34_v3, %v119_v2 }
  0x97   :  { %v64_v26 = vsel %vm35_vm0, %v58_v24, 0.0  ;;  %v70_v27 = vsel %vm35_vm0, %v60_v25, 0.0 }
  0x98   :  { %68 = vadd.xlane.f32.xlu0 %v67_v23  ;;  %65 = vadd.xlane.f32.xlu1 %v64_v26 }
  0x9c   :  { %71 = vadd.xlane.f32.xlu1 %v70_v27 }
 0x11d   :  { %v63_v32 = vpop.xlane.xlu0 %62 }
 0x11e   :  { %v73_v33 = vmul.f32 0.03125, %v63_v32 }
 0x120   :  { %v77_v34 = vadd.f32 1e-12, %v73_v33 }
 0x121   :  { %v66_v35 = vpop.xlane.xlu1 %65  ;;  %v69_v36 = vpop.xlane.xlu0 %68 }
 0x122   :  { %4143 = vrsqrt.f32 %v77_v34  ;;  %v74_v37 = vmul.f32 0.03125, %v66_v35  ;;  %v75_v38 = vmul.f32 0.03125, %v69_v36  ;;  %vm83_vm1 = vcmp.eq.f32.partialorder %v77_v34, inf }
 0x123   :  { %v86_v46 = vand.u32 2147483648, %v77_v34  ;;  %vm85_vm2 = vcmp.eq.f32.partialorder %v77_v34, 0.0 }
 0x124   :  { %v78_v39 = vadd.f32 1e-12, %v74_v37  ;;  %v79_v40 = vadd.f32 1e-12, %v75_v38 }
 0x125   :  { %v72_v41 = vpop.xlane.xlu1 %71 }
 0x126   :  { %v76_v42 = vmul.f32 0.03125, %v72_v41  ;;  %4145 = vrsqrt.f32 %v78_v39  ;;  %vm90_vm3 = vcmp.eq.f32.partialorder %v78_v39, inf  ;;  %v93_v53 = vand.u32 2147483648, %v78_v39 }
 0x127   :  { %4147 = vrsqrt.f32 %v79_v40  ;;  %vm92_vm4 = vcmp.eq.f32.partialorder %v78_v39, 0.0  ;;  %vm97_vm5 = vcmp.eq.f32.partialorder %v79_v40, inf  ;;  %v100_v56 = vand.u32 2147483648, %v79_v40 }
 0x128   :  { %v80_v43 = vadd.f32 1e-12, %v76_v42  ;;  %vm99_vm6 = vcmp.eq.f32.partialorder %v79_v40, 0.0 }
 0x12a   :  { %4149 = vrsqrt.f32 %v80_v43  ;;  %vm104_vm7 = vcmp.eq.f32.partialorder %v80_v43, inf  ;;  %v107_v63 = vand.u32 2147483648, %v80_v43  ;;  %vm106_vm8 = vcmp.eq.f32.partialorder %v80_v43, 0.0 }
 0x12f   :  { %v4144_v44 = vpop.eup %4143 }
 0x130   :  { %v82_v45 = vmul.f32 %v4144_v44, %v77_v34 }
 0x132   :  { %v84_v47 = vsel %vm83_vm1, %v77_v34, %v82_v45 }
 0x133   :  { %v87_v48 = vsel %vm85_vm2, %v86_v46, %v84_v47  ;;  %v4146_v49 = vpop.eup %4145 }
 0x134   :  { %4151 = vrcp.f32 %v87_v48  ;;  %v4148_v51 = vpop.eup %4147  ;;  %v89_v52 = vmul.f32 %v4146_v49, %v78_v39 }
 0x135   :  { %v96_v54 = vmul.f32 %v4148_v51, %v79_v40 }
 0x136   :  { %v91_v55 = vsel %vm90_vm3, %v78_v39, %v89_v52 }
 0x137   :  { %v4150_v57 = vpop.eup %4149  ;;  %v94_v58 = vsel %vm92_vm4, %v93_v53, %v91_v55  ;;  %v98_v59 = vsel %vm97_vm5, %v79_v40, %v96_v54 }
 0x138   :  { %4153 = vrcp.f32 %v94_v58  ;;  %v101_v61 = vsel %vm99_vm6, %v100_v56, %v98_v59  ;;  %v103_v62 = vmul.f32 %v4150_v57, %v80_v43 }
 0x139   :  { %4155 = vrcp.f32 %v101_v61 }
 0x13a   :  { %v105_v0 = vsel %vm104_vm7, %v80_v43, %v103_v62 }
 0x13b   :  { %v108_v1 = vsel %vm106_vm8, %v107_v63, %v105_v0 }
 0x13c   :  { %4157 = vrcp.f32 %v108_v1 }
 0x141   :  { %v4152_v6 = vpop.eup %4151 }
 0x142   :  { %v110_v7 = vmul.f32 %v4152_v6, %v4353_v12 }
 0x144   :  { %v121_v9 = vmul.f32 %v120_v5, %v110_v7 }
 0x145   :  { %v4154_v10 = vpop.eup %4153 }
 0x146   :  { %v129_v11 = vadd.f32 %v128_v8, %v121_v9  ;;  %v4156_v14 = vpop.eup %4155  ;;  %v112_v15 = vmul.f32 %v4154_v10, %v4361_v20  ;;  %v3674_v20 = vld [vmem:[%s4967_s2] ss:$0 sm:$0xff]  ;;  %s4286_s2 = smov 56  }
 0x147   :  { %v114_v16 = vmul.f32 %v4156_v14, %v4355_v13 }
 0x148   :  { %3883 = vmatprep.mubr.msk.f32.mxu1 %vm35_vm0, %v129_v11  ;;  %v122_v17 = vmul.f32 %v120_v5, %v112_v15 }
 0x149   :  { %v4158_v18 = vpop.eup %4157  ;;  %v123_v19 = vmul.f32 %v120_v5, %v114_v16 }
 0x14a   :  { %v130_v22 = vadd.f32 %v128_v8, %v122_v17  ;;  %v116_v23 = vmul.f32 %v4158_v18, %v4363_v21 }
 0x14b   :  { %v131_v24 = vadd.f32 %v128_v8, %v123_v19 }
 0x14c   :  { %3884 = vmatmul.mubr.msk.f32.vlgmr.msra.gmra.mxu1 %vm35_vm0, %v130_v22  ;;  %v124_v12 = vmul.f32 %v120_v5, %v116_v23 }
 0x14d   :  { %3886 = vmatprep.mubr.msk.f32.mxu1 %vm35_vm0, %v131_v24 }
 0x14e   :  { %v132_v25 = vadd.f32 %v128_v8, %v124_v12 }
 0x150   :  { %3887 = vmatmul.mubr.msk.f32.gmra.mxu1 %vm35_vm0, %v132_v25 }
 0x151   :  { %3891 = vmatprep.mubr.msk.f32.mxu1 %vm4285_vm9, %v4284_v31 }
 0x20c   :  { %v3885_v13 = vpop.f32.mrf.mxu1 }
 0x20d   :  { %v4403_v26 = vadd.f32 %v3885_v13, %v3674_v20 }
 0x20e   :  { %v222_v27 = vpop.f32.mrf.mxu1 }
 0x20f   :  { %v223_v28 = vadd.f32 %v3674_v20, %v222_v27  ;;  %247 = vrot.lane.b32.xlu1 %v4403_v26, %s4282_s24 }
 0x210   :  { %v3888_v21 = vpop.f32.mrf.mxu1 }
 0x211   :  { %245 = vrot.lane.b32.xlu0 %v223_v28, %s4282_s24  ;;  %v4411_v32 = vadd.f32 %v3888_v21, %v3674_v20 }
 0x212   :  { %v232_v29 = vpop.f32.mrf.mxu1 }
 0x213   :  { %v4406_v30 = vadd.f32 %v3674_v20, %v232_v29 }
 0x215   :  { %253 = vrot.lane.b32.xlu0 %v223_v28, %s4283_s25  ;;  %249 = vrot.lane.b32.xlu1 %v4406_v30, %s4282_s24 }
 0x219   :  { %257 = vrot.lane.b32.xlu0 %v4406_v30, %s4283_s25  ;;  %251 = vrot.lane.b32.xlu1 %v4411_v32, %s4282_s24 }
 0x21d   :  { %261 = vrot.lane.b32.xlu0 %v223_v28, %s4286_s2  ;;  %255 = vrot.lane.b32.xlu1 %v4403_v26, %s4283_s25 }
 0x221   :  { %265 = vrot.lane.b32.xlu0 %v4406_v30, %s4286_s2  ;;  %259 = vrot.lane.b32.xlu1 %v4411_v32, %s4283_s25 }
 0x225   :  { %269 = vrot.lane.b32.xlu0 %v223_v28, %s4287_s26  ;;  %263 = vrot.lane.b32.xlu1 %v4403_v26, %s4286_s2 }
 0x229   :  { %422 = vrot.lane.b32.xlu0 %v4406_v30, %s4287_s26  ;;  %267 = vrot.lane.b32.xlu1 %v4411_v32, %s4286_s2 }
 0x22d   :  { %346 = vrot.lane.b32.xlu1 %v4403_v26, %s4287_s26 }
 0x231   :  { %498 = vrot.lane.b32.xlu1 %v4411_v32, %s4287_s26 }
 0x281   :  { %v4431_v33 = vpop.permute.xlu1 %247 }
 0x282   :  { %650 = vrot.lane.b32.xlu1 %v4431_v33, %s4287_s26 }
 0x283   :  { %v4435_v34 = vpop.permute.xlu0 %245 }
 0x284   :  { %574 = vrot.lane.b32.xlu0 %v4435_v34, %s4287_s26 }
 0x287   :  { %v4439_v35 = vpop.permute.xlu1 %249  ;;  %v4441_v36 = vpop.permute.xlu0 %253 }
 0x288   :  { %726 = vrot.lane.b32.xlu0 %v4439_v35, %s4287_s26 }
 0x28b   :  { %v4445_v37 = vpop.permute.xlu1 %251  ;;  %v4447_v38 = vpop.permute.xlu0 %257 }
 0x28c   :  { %802 = vrot.lane.b32.xlu1 %v4445_v37, %s4287_s26  ;;  %878 = vrot.lane.b32.xlu0 %v4441_v36, %s4287_s26 }
 0x28f   :  { %v4453_v39 = vpop.permute.xlu1 %255  ;;  %v4455_v40 = vpop.permute.xlu0 %261 }
 0x290   :  { %954 = vrot.lane.b32.xlu1 %v4453_v39, %s4287_s26  ;;  %1030 = vrot.lane.b32.xlu0 %v4447_v38, %s4287_s26 }
 0x293   :  { %v4461_v41 = vpop.permute.xlu1 %259  ;;  %v4463_v42 = vpop.permute.xlu0 %265 }
 0x294   :  { %1106 = vrot.lane.b32.xlu1 %v4461_v41, %s4287_s26  ;;  %1182 = vrot.lane.b32.xlu0 %v4455_v40, %s4287_s26 }
 0x297   :  { %v4469_v43 = vpop.permute.xlu1 %263  ;;  %v270_v44 = vpop.permute.xlu0 %269 }
 0x298   :  { %1258 = vrot.lane.b32.xlu1 %v4469_v43, %s4287_s26  ;;  %1334 = vrot.lane.b32.xlu0 %v4463_v42, %s4287_s26 }
 0x299   :  { %3890 = vmatpush3.xpose.msk.msra.mxu1 %vm271_vm10, %v270_v44 }
 0x29a   :  { %3894 = vmatprep.subr.mxu1 %v4284_v31 }
 0x29b   :  { %v4477_v45 = vpop.permute.xlu1 %267  ;;  %v423_v48 = vpop.permute.xlu0 %422 }
 0x29c   :  { %3892 = vmatmul.mubr.msk.f32.vlgmr.msra.gmra.mxu1 %vm271_vm10, %v223_v28  ;;  %1410 = vrot.lane.b32.xlu1 %v4477_v45, %s4287_s26 }
 0x29d   :  { %1662 = vrot.lane.b32.xlu0 %v223_v28, %s4288_s27  ;;  %3896 = vmatprep.mubr.msk.f32.mxu1 %vm4285_vm9, %v4284_v31 }
 0x29f   :  { %v347_v46 = vpop.permute.xlu1 %346 }
 0x2a0   :  { %1738 = vrot.lane.b32.xlu1 %v4403_v26, %s4288_s27  ;;  %3895 = vmatpush3.xpose.msk.msra.mxu1 %vm271_vm10, %v347_v46 }
 0x2a1   :  { %1966 = vrot.lane.b32.xlu0 %v4435_v34, %s4288_s27  ;;  %3899 = vmatprep.subr.mxu1 %v4284_v31 }
 0x2a3   :  { %v499_v47 = vpop.permute.xlu1 %498  ;;  %3897 = vmatmul.mubr.msk.f32.vlgmr.msra.gmra.mxu1 %vm271_vm10, %v4403_v26 }
 0x2a4   :  { %1814 = vrot.lane.b32.xlu1 %v4406_v30, %s4288_s27  ;;  %3905 = vmatpush3.xpose.msk.msra.mxu0 %vm271_vm10, %v499_v47 }
 0x2a5   :  { %2270 = vrot.lane.b32.xlu0 %v4441_v36, %s4288_s27  ;;  %3900 = vmatpush3.xpose.msk.msra.mxu1 %vm271_vm10, %v423_v48 }
 0x2a6   :  { %3901 = vmatprep.mubr.msk.f32.mxu1 %vm4285_vm9, %v4284_v31  ;;  %3914 = vmatprep.subr.mxu0 %v4284_v31 }
 0x2a7   :  { %3907 = vmatmul.mubr.msk.f32.vlgmr.msra.gmra.mxu0 %vm271_vm10, %v4411_v32  ;;  %3909 = vmatprep.subr.mxu1 %v4284_v31 }
 0x2a8   :  { %3902 = vmatmul.mubr.msk.f32.vlgmr.msra.gmra.mxu1 %vm271_vm10, %v4406_v30  ;;  %1890 = vrot.lane.b32.xlu1 %v4411_v32, %s4288_s27 }
 0x2a9   :  { %2574 = vrot.lane.b32.xlu0 %v4455_v40, %s4288_s27  ;;  %3916 = vmatprep.mubr.msk.f32.mxu0 %vm4285_vm9, %v4284_v31 }
 0x2aa   :  { %3911 = vmatprep.mubr.msk.f32.mxu1 %vm4285_vm9, %v4284_v31 }
 0x2ac   :  { %2042 = vrot.lane.b32.xlu1 %v4431_v33, %s4288_s27 }
 0x2ad   :  { %2118 = vrot.lane.b32.xlu0 %v4439_v35, %s4288_s27 }
 0x2b0   :  { %2194 = vrot.lane.b32.xlu1 %v4445_v37, %s4288_s27 }
 0x2b1   :  { %2422 = vrot.lane.b32.xlu0 %v4447_v38, %s4288_s27 }
 0x2b4   :  { %2346 = vrot.lane.b32.xlu1 %v4453_v39, %s4288_s27 }
 0x2b8   :  { %2498 = vrot.lane.b32.xlu1 %v4461_v41, %s4288_s27 }
 0x2bc   :  { %2650 = vrot.lane.b32.xlu1 %v4469_v43, %s4288_s27 }
 0x2f4   :  { %v651_v49 = vpop.permute.xlu1 %650 }
 0x2f5   :  { %3915 = vmatpush3.xpose.msk.msra.mxu0 %vm271_vm10, %v651_v49 }
 0x2f6   :  { %v575_v50 = vpop.permute.xlu0 %574  ;;  %3924 = vmatprep.subr.mxu0 %v4284_v31 }
 0x2f7   :  { %3910 = vmatpush3.xpose.msk.msra.mxu1 %vm271_vm10, %v575_v50 }
 0x2f8   :  { %3917 = vmatmul.mubr.msk.f32.vlgmr.msra.gmra.mxu0 %vm271_vm10, %v4431_v33  ;;  %3919 = vmatprep.subr.mxu1 %v4284_v31 }
 0x2f9   :  { %3926 = vmatprep.mubr.msk.f32.mxu0 %vm4285_vm9, %v4284_v31 }
 0x2fa   :  { %3912 = vmatmul.mubr.msk.f32.vlgmr.msra.gmra.mxu1 %vm271_vm10, %v4435_v34  ;;  %v727_v51 = vpop.permute.xlu0 %726 }
 0x2fb   :  { %3920 = vmatpush3.xpose.msk.msra.mxu1 %vm271_vm10, %v727_v51  ;;  %3921 = vmatprep.mubr.msk.f32.mxu1 %vm4285_vm9, %v4284_v31 }
 0x2fc   :  { %3929 = vmatprep.subr.mxu1 %v4284_v31 }
 0x2fe   :  { %v803_v52 = vpop.permute.xlu1 %802  ;;  %3922 = vmatmul.mubr.msk.f32.vlgmr.msra.gmra.mxu1 %vm271_vm10, %v4439_v35  ;;  %v879_v53 = vpop.permute.xlu0 %878 }
 0x2ff   :  { %3925 = vmatpush3.xpose.msk.msra.mxu0 %vm271_vm10, %v803_v52  ;;  %3930 = vmatpush3.xpose.msk.msra.mxu1 %vm271_vm10, %v879_v53 }
 0x300   :  { %3931 = vmatprep.mubr.msk.f32.mxu1 %vm4285_vm9, %v4284_v31  ;;  %3934 = vmatprep.subr.mxu0 %v4284_v31 }
 0x301   :  { %3939 = vmatprep.subr.mxu1 %v4284_v31 }
 0x302   :  { %3927 = vmatmul.mubr.msk.f32.vlgmr.msra.gmra.mxu0 %vm271_vm10, %v4445_v37  ;;  %v955_v54 = vpop.permute.xlu1 %954  ;;  %3932 = vmatmul.mubr.msk.f32.vlgmr.msra.gmra.mxu1 %vm271_vm10, %v4441_v36  ;;  %v1031_v55 = vpop.permute.xlu0 %1030 }
 0x303   :  { %3935 = vmatpush3.xpose.msk.msra.mxu0 %vm271_vm10, %v955_v54  ;;  %3940 = vmatpush3.xpose.msk.msra.mxu1 %vm271_vm10, %v1031_v55 }
 0x304   :  { %3936 = vmatprep.mubr.msk.f32.mxu0 %vm4285_vm9, %v4284_v31  ;;  %3941 = vmatprep.mubr.msk.f32.mxu1 %vm4285_vm9, %v4284_v31 }
 0x305   :  { %3944 = vmatprep.subr.mxu0 %v4284_v31  ;;  %3949 = vmatprep.subr.mxu1 %v4284_v31 }
 0x306   :  { %3937 = vmatmul.mubr.msk.f32.vlgmr.msra.gmra.mxu0 %vm271_vm10, %v4453_v39  ;;  %v1107_v56 = vpop.permute.xlu1 %1106  ;;  %3942 = vmatmul.mubr.msk.f32.vlgmr.msra.gmra.mxu1 %vm271_vm10, %v4447_v38  ;;  %v1183_v57 = vpop.permute.xlu0 %1182 }
 0x307   :  { %3945 = vmatpush3.xpose.msk.msra.mxu0 %vm271_vm10, %v1107_v56  ;;  %3950 = vmatpush3.xpose.msk.msra.mxu1 %vm271_vm10, %v1183_v57 }
 0x308   :  { %3946 = vmatprep.mubr.msk.f32.mxu0 %vm4285_vm9, %v4284_v31  ;;  %3951 = vmatprep.mubr.msk.f32.mxu1 %vm4285_vm9, %v4284_v31 }
 0x309   :  { %3954 = vmatprep.subr.mxu0 %v4284_v31  ;;  %3959 = vmatprep.subr.mxu1 %v4284_v31 }
 0x30a   :  { %3947 = vmatmul.mubr.msk.f32.vlgmr.msra.gmra.mxu0 %vm271_vm10, %v4461_v41  ;;  %v1259_v58 = vpop.permute.xlu1 %1258  ;;  %3952 = vmatmul.mubr.msk.f32.vlgmr.msra.gmra.mxu1 %vm271_vm10, %v4455_v40  ;;  %v1335_v59 = vpop.permute.xlu0 %1334 }
 0x30b   :  { %3955 = vmatpush3.xpose.msk.msra.mxu0 %vm271_vm10, %v1259_v58  ;;  %3960 = vmatpush3.xpose.msk.msra.mxu1 %vm271_vm10, %v1335_v59 }
 0x30c   :  { %3956 = vmatprep.mubr.msk.f32.mxu0 %vm4285_vm9, %v4284_v31  ;;  %3961 = vmatprep.mubr.msk.f32.mxu1 %vm4285_vm9, %v4284_v31 }
 0x30d   :  { %3964 = vmatprep.subr.mxu0 %v4284_v31  ;;  %3969 = vmatprep.subr.mxu1 %v4284_v31 }
 0x30e   :  { %3957 = vmatmul.mubr.msk.f32.vlgmr.msra.gmra.mxu0 %vm271_vm10, %v4469_v43  ;;  %v1411_v61 = vpop.permute.xlu1 %1410  ;;  %3962 = vmatmul.mubr.msk.f32.vlgmr.msra.gmra.mxu1 %vm271_vm10, %v4463_v42 }
 0x30f   :  { %v1663_v62 = vpop.permute.xlu0 %1662  ;;  %3965 = vmatpush3.xpose.msk.msra.mxu0 %vm271_vm10, %v1411_v61  ;;  %3966 = vmatprep.mubr.msk.f32.mxu0 %vm4285_vm9, %v4284_v31 }
 0x310   :  { %3970 = vmatpush3.msra.mxu1 %v1663_v62  ;;  %3974 = vmatprep.subr.mxu0 %v4284_v31 }
 0x311   :  { %3971 = vmatprep.mubr.msk.f32.mxu1 %vm4285_vm9, %v4284_v31  ;;  %3979 = vmatprep.subr.mxu1 %v4284_v31 }
 0x312   :  { %3967 = vmatmul.mubr.msk.f32.vlgmr.msra.gmra.mxu0 %vm271_vm10, %v4477_v45  ;;  %v1739_v63 = vpop.permute.xlu1 %1738 }
 0x313   :  { %3975 = vmatpush3.msra.mxu0 %v1739_v63  ;;  %3976 = vmatprep.mubr.msk.f32.mxu0 %vm4285_vm9, %v4284_v31  ;;  %v4651_v37 = vpop.permute.xlu0 %1966 }
 0x314   :  { %3984 = vmatprep.subr.mxu0 %v4284_v31 }
 0x316   :  { %v1815_v28 = vpop.permute.xlu1 %1814 }
 0x317   :  { %v4665_v51 = vpop.permute.xlu0 %2270 }
 0x31a   :  { %v1891_v38 = vpop.permute.xlu1 %1890 }
 0x31b   :  { %v4671_v56 = vpop.permute.xlu0 %2574 }
 0x31e   :  { %v2043_v52 = vpop.permute.xlu1 %2042 }
 0x31f   :  { %v4675_v58 = vpop.permute.xlu0 %2118 }
 0x322   :  { %v4673_v57 = vpop.permute.xlu1 %2194 }
 0x323   :  { %v4679_v61 = vpop.permute.xlu0 %2422 }
 0x326   :  { %v4677_v59 = vpop.permute.xlu1 %2346 }
 0x32a   :  { %v4681_v62 = vpop.permute.xlu1 %2498 }
 0x35c   :  { %v4603_v0 = vpop.f32.mrf.mxu1 }
 0x35d   :  { %v1486_v1 = vsel %vm271_vm10, %v4603_v0, -inf }
 0x35e   :  { %1487 = vmax.xlane.f32.xlu0 %v1486_v1  ;;  %v3893_v2 = vpop.f32.mrf.mxu1 }
 0x35f   :  { %v4688_v2 = vpop.permute.xlu1 %2650 }
 0x363   :  { %v4607_v3 = vpop.f32.mrf.mxu1 }
 0x364   :  { %v1489_v4 = vsel %vm271_vm10, %v4607_v3, -inf }
 0x365   :  { %1490 = vmax.xlane.f32.xlu1 %v1489_v4  ;;  %v3898_v5 = vpop.f32.mrf.mxu1 }
 0x367   :  { %v4611_v6 = vpop.f32.mrf.mxu0 }
 0x368   :  { %v4613_v7 = vpop.f32.mrf.mxu1  ;;  %v1495_v8 = vsel %vm271_vm10, %v4611_v6, -inf }
 0x369   :  { %v3908_v9 = vpop.f32.mrf.mxu0  ;;  %1496 = vmax.xlane.f32.xlu0 %v1495_v8  ;;  %v1492_v11 = vsel %vm271_vm10, %v4613_v7, -inf }
 0x36a   :  { %v3903_v10 = vpop.f32.mrf.mxu1 }
 0x36d   :  { %1493 = vmax.xlane.f32.xlu0 %v1492_v11 }
 0x3b8   :  { %v4619_v14 = vpop.f32.mrf.mxu0 }
 0x3b9   :  { %v1501_v15 = vsel %vm271_vm10, %v4619_v14, -inf }
 0x3ba   :  { %v3918_v16 = vpop.f32.mrf.mxu0  ;;  %1502 = vmax.xlane.f32.xlu1 %v1501_v15  ;;  %v4623_v17 = vpop.f32.mrf.mxu1 }
 0x3bb   :  { %v1498_v18 = vsel %vm271_vm10, %v4623_v17, -inf }
 0x3bc   :  { %1499 = vmax.xlane.f32.xlu0 %v1498_v18  ;;  %v3913_v19 = vpop.f32.mrf.mxu1 }
 0x3be   :  { %v4627_v22 = vpop.f32.mrf.mxu1 }
 0x3bf   :  { %v1504_v23 = vsel %vm271_vm10, %v4627_v22, -inf }
 0x3c0   :  { %1505 = vmax.xlane.f32.xlu0 %v1504_v23  ;;  %v3923_v24 = vpop.f32.mrf.mxu1 }
 0x3c2   :  { %v4631_v12 = vpop.f32.mrf.mxu0  ;;  %v4633_v25 = vpop.f32.mrf.mxu1 }
 0x3c3   :  { %v1507_v20 = vsel %vm271_vm10, %v4631_v12, -inf  ;;  %v1510_v13 = vsel %vm271_vm10, %v4633_v25, -inf }
 0x3c4   :  { %v3928_v26 = vpop.f32.mrf.mxu0  ;;  %1508 = vmax.xlane.f32.xlu1 %v1507_v20  ;;  %1511 = vmax.xlane.f32.xlu0 %v1510_v13  ;;  %v3933_v27 = vpop.f32.mrf.mxu1 }
 0x3c6   :  { %v4639_v21 = vpop.f32.mrf.mxu0  ;;  %v4641_v29 = vpop.f32.mrf.mxu1 }
 0x3c7   :  { %v1513_v30 = vsel %vm271_vm10, %v4639_v21, -inf  ;;  %v1516_v32 = vsel %vm271_vm10, %v4641_v29, -inf }
 0x3c8   :  { %v3938_v33 = vpop.f32.mrf.mxu0  ;;  %1514 = vmax.xlane.f32.xlu1 %v1513_v30  ;;  %1517 = vmax.xlane.f32.xlu0 %v1516_v32  ;;  %v3943_v34 = vpop.f32.mrf.mxu1 }
 0x3ca   :  { %v4647_v35 = vpop.f32.mrf.mxu0  ;;  %v4649_v36 = vpop.f32.mrf.mxu1 }
 0x3cb   :  { %v1519_v39 = vsel %vm271_vm10, %v4647_v35, -inf  ;;  %v1522_v40 = vsel %vm271_vm10, %v4649_v36, -inf }
 0x3cc   :  { %v3948_v41 = vpop.f32.mrf.mxu0  ;;  %1520 = vmax.xlane.f32.xlu1 %v1519_v39  ;;  %1523 = vmax.xlane.f32.xlu0 %v1522_v40  ;;  %v3953_v43 = vpop.f32.mrf.mxu1 }
 0x3ce   :  { %v4657_v44 = vpop.f32.mrf.mxu0  ;;  %v4659_v46 = vpop.f32.mrf.mxu1 }
 0x3cf   :  { %v1525_v47 = vsel %vm271_vm10, %v4657_v44, -inf  ;;  %v1528_v48 = vsel %vm271_vm10, %v4659_v46, -inf }
 0x3d0   :  { %v3958_v49 = vpop.f32.mrf.mxu0  ;;  %1526 = vmax.xlane.f32.xlu1 %v1525_v47  ;;  %1529 = vmax.xlane.f32.xlu0 %v1528_v48  ;;  %v3963_v50 = vpop.f32.mrf.mxu1 }
 0x3d2   :  { %v4667_v53 = vpop.f32.mrf.mxu0 }
 0x3d3   :  { %v1531_v54 = vsel %vm271_vm10, %v4667_v53, -inf }
 0x3d4   :  { %v3968_v55 = vpop.f32.mrf.mxu0  ;;  %1532 = vmax.xlane.f32.xlu1 %v1531_v54 }
 0x3e5   :  { %2802 = vrot.lane.b32.xlu1 %v4477_v45, %s4288_s27 }
 0x3e6   :  { %2726 = vrot.lane.b32.xlu0 %v4463_v42, %s4288_s27 }
 0x3e7   :  { %v1488_v63 = vpop.xlane.xlu0 %1487 }
 0x3e8   :  { %v1534_v1 = vsub.f32 %v4603_v0, %v1488_v63 }
 0x3ea   :  { %v1550_v4 = vmul.f32 1.442695, %v1534_v1 }
 0x3ec   :  { %4159 = vpow2.f32 %v1550_v4 }
 0x3ee   :  { %v1491_v5 = vpop.xlane.xlu1 %1490 }
 0x3ef   :  { %v1535_v8 = vsub.f32 %v4607_v3, %v1491_v5 }
 0x3f1   :  { %v1552_v9 = vmul.f32 1.442695, %v1535_v8 }
 0x3f2   :  { %v1497_v10 = vpop.xlane.xlu0 %1496 }
 0x3f3   :  { %4161 = vpow2.f32 %v1552_v9  ;;  %v1537_v11 = vsub.f32 %v4611_v6, %v1497_v10 }
 0x3f5   :  { %v1556_v15 = vmul.f32 1.442695, %v1537_v11 }
 0x3f6   :  { %v1494_v45 = vpop.xlane.xlu0 %1493 }
 0x3f7   :  { %4163 = vpow2.f32 %v1556_v15  ;;  %v1536_v42 = vsub.f32 %v4613_v7, %v1494_v45 }
 0x3f9   :  { %v4160_v16 = vpop.eup %4159  ;;  %v1554_v18 = vmul.f32 1.442695, %v1536_v42 }
 0x3fa   :  { %3972 = vmatmul.mubr.msk.f32.vlgmr.msra.gmra.mxu1 %vm271_vm10, %v4160_v16  ;;  %v1582_v6 = vsel %vm271_vm10, %v4160_v16, 0.0 }
 0x3fb   :  { %4165 = vpow2.f32 %v1554_v18  ;;  %3980 = vmatpush3.msra.mxu1 %v1815_v28  ;;  %3981 = vmatprep.mubr.msk.f32.mxu1 %vm4285_vm9, %v4284_v31 }
 0x3fc   :  { %3989 = vmatprep.subr.mxu1 %v4284_v31 }
 0x400   :  { %v4162_v0 = vpop.eup %4161 }
 0x401   :  { %3977 = vmatmul.mubr.msk.f32.vlgmr.msra.gmra.mxu0 %vm271_vm10, %v4162_v0  ;;  %v1585_v19 = vsel %vm271_vm10, %v4162_v0, 0.0 }
 0x402   :  { %3985 = vmatpush3.msra.mxu0 %v1891_v38  ;;  %3986 = vmatprep.mubr.msk.f32.mxu0 %vm4285_vm9, %v4284_v31 }
 0x403   :  { %3994 = vmatprep.subr.mxu0 %v4284_v31 }
 0x404   :  { %v4164_v3 = vpop.eup %4163 }
 0x405   :  { %1583 = vadd.xlane.f32.xlu0 %v1582_v6  ;;  %3987 = vmatmul.mubr.msk.f32.vlgmr.msra.gmra.mxu0 %vm271_vm10, %v4164_v3  ;;  %v1591_v23 = vsel %vm271_vm10, %v4164_v3, 0.0 }
 0x406   :  { %3995 = vmatpush3.msra.mxu0 %v2043_v52  ;;  %3996 = vmatprep.mubr.msk.f32.mxu0 %vm4285_vm9, %v4284_v31 }
 0x407   :  { %4004 = vmatprep.subr.mxu0 %v4284_v31 }
 0x408   :  { %v4166_v7 = vpop.eup %4165 }
 0x409   :  { %1586 = vadd.xlane.f32.xlu0 %v1585_v19  ;;  %1592 = vadd.xlane.f32.xlu1 %v1591_v23  ;;  %v1588_v24 = vsel %vm271_vm10, %v4166_v7, 0.0 }
 0x40a   :  { %3982 = vmatmul.mubr.msk.f32.vlgmr.msra.gmra.mxu1 %vm271_vm10, %v4166_v7 }
 0x40b   :  { %3990 = vmatpush3.msra.mxu1 %v4651_v37  ;;  %3991 = vmatprep.mubr.msk.f32.mxu1 %vm4285_vm9, %v4284_v31 }
 0x40c   :  { %3999 = vmatprep.subr.mxu1 %v4284_v31 }
 0x40d   :  { %1589 = vadd.xlane.f32.xlu0 %v1588_v24 }
 0x443   :  { %v1503_v20 = vpop.xlane.xlu1 %1502 }
 0x444   :  { %v1539_v13 = vsub.f32 %v4619_v14, %v1503_v20 }
 0x445   :  { %v1500_v26 = vpop.xlane.xlu0 %1499 }
 0x446   :  { %v1560_v27 = vmul.f32 1.442695, %v1539_v13  ;;  %v1538_v28 = vsub.f32 %v4623_v17, %v1500_v26  ;;  %v3727_v13 = vld [vmem:[%s4970_s5 + $0x8] sm:$0xff]  ;;  %v4795_v26 = vld [vmem:[%s4970_s5 + $0x10] sm:$0xff] }
 0x448   :  { %4167 = vpow2.f32 %v1560_v27  ;;  %v1558_v30 = vmul.f32 1.442695, %v1538_v28 }
 0x449   :  { %v1506_v32 = vpop.xlane.xlu0 %1505 }
 0x44a   :  { %4169 = vpow2.f32 %v1558_v30  ;;  %v1540_v33 = vsub.f32 %v4627_v22, %v1506_v32 }
 0x44c   :  { %v1562_v34 = vmul.f32 1.442695, %v1540_v33 }
 0x44d   :  { %v1509_v37 = vpop.xlane.xlu1 %1508  ;;  %v1512_v38 = vpop.xlane.xlu0 %1511 }
 0x44e   :  { %4171 = vpow2.f32 %v1562_v34  ;;  %v1541_v39 = vsub.f32 %v4631_v12, %v1509_v37  ;;  %v1542_v40 = vsub.f32 %v4633_v25, %v1512_v38 }
 0x450   :  { %v1564_v41 = vmul.f32 1.442695, %v1541_v39  ;;  %v1566_v14 = vmul.f32 1.442695, %v1542_v40 }
 0x451   :  { %v1515_v43 = vpop.xlane.xlu1 %1514  ;;  %v1518_v47 = vpop.xlane.xlu0 %1517 }
 0x452   :  { %4173 = vpow2.f32 %v1564_v41  ;;  %v1543_v17 = vsub.f32 %v4639_v21, %v1515_v43  ;;  %v1544_v48 = vsub.f32 %v4641_v29, %v1518_v47 }
 0x453   :  { %4175 = vpow2.f32 %v1566_v14 }
 0x454   :  { %v1568_v49 = vmul.f32 1.442695, %v1543_v17  ;;  %v1570_v22 = vmul.f32 1.442695, %v1544_v48 }
 0x455   :  { %v4168_v50 = vpop.eup %4167  ;;  %v1521_v52 = vpop.xlane.xlu1 %1520 }
 0x456   :  { %v1524_v54 = vpop.xlane.xlu0 %1523  ;;  %4177 = vpow2.f32 %v1568_v49  ;;  %v1545_v12 = vsub.f32 %v4647_v35, %v1521_v52  ;;  %3997 = vmatmul.mubr.msk.f32.vlgmr.msra.gmra.mxu0 %vm271_vm10, %v4168_v50  ;;  %v1597_v55 = vsel %vm271_vm10, %v4168_v50, 0.0 }
 0x457   :  { %v1546_v25 = vsub.f32 %v4649_v36, %v1524_v54  ;;  %v4170_v63 = vpop.eup %4169  ;;  %4179 = vpow2.f32 %v1570_v22  ;;  %4005 = vmatpush3.msra.mxu0 %v4673_v57  ;;  %1598 = vadd.xlane.f32.xlu1 %v1597_v55 }
 0x458   :  { %v1572_v21 = vmul.f32 1.442695, %v1545_v12  ;;  %3992 = vmatmul.mubr.msk.f32.vlgmr.msra.gmra.mxu1 %vm271_vm10, %v4170_v63  ;;  %v1594_v1 = vsel %vm271_vm10, %v4170_v63, 0.0  ;;  %4006 = vmatprep.mubr.msk.f32.mxu0 %vm4285_vm9, %v4284_v31 }
 0x459   :  { %v1574_v29 = vmul.f32 1.442695, %v1546_v25  ;;  %4000 = vmatpush3.msra.mxu1 %v4675_v58  ;;  %v1527_v35 = vpop.xlane.xlu1 %1526  ;;  %1595 = vadd.xlane.f32.xlu0 %v1594_v1 }
 0x45a   :  { %v1530_v36 = vpop.xlane.xlu0 %1529  ;;  %4181 = vpow2.f32 %v1572_v21  ;;  %v1547_v4 = vsub.f32 %v4657_v44, %v1527_v35  ;;  %4001 = vmatprep.mubr.msk.f32.mxu1 %vm4285_vm9, %v4284_v31  ;;  %4009 = vmatprep.subr.mxu1 %v4284_v31 }
 0x45b   :  { %v1548_v57 = vsub.f32 %v4659_v46, %v1530_v36  ;;  %v4172_v5 = vpop.eup %4171  ;;  %4183 = vpow2.f32 %v1574_v29  ;;  %4014 = vmatprep.subr.mxu0 %v4284_v31 }
 0x45c   :  { %v1576_v8 = vmul.f32 1.442695, %v1547_v4  ;;  %4002 = vmatmul.mubr.msk.f32.vlgmr.msra.gmra.mxu1 %vm271_vm10, %v4172_v5  ;;  %v1600_v58 = vsel %vm271_vm10, %v4172_v5, 0.0 }
 0x45d   :  { %v1578_v9 = vmul.f32 1.442695, %v1548_v57  ;;  %4010 = vmatpush3.msra.mxu1 %v4665_v51  ;;  %v1533_v44 = vpop.xlane.xlu1 %1532  ;;  %1601 = vadd.xlane.f32.xlu0 %v1600_v58 }
 0x45e   :  { %4185 = vpow2.f32 %v1576_v8  ;;  %v1549_v46 = vsub.f32 %v4667_v53, %v1533_v44  ;;  %4011 = vmatprep.mubr.msk.f32.mxu1 %vm4285_vm9, %v4284_v31  ;;  %4019 = vmatprep.subr.mxu1 %v4284_v31  ;;  %v2727_v3 = vpop.permute.xlu0 %2726 }
 0x45f   :  { %v4174_v10 = vpop.eup %4173  ;;  %4187 = vpow2.f32 %v1578_v9 }
 0x460   :  { %v4176_v11 = vpop.eup %4175  ;;  %v1580_v15 = vmul.f32 1.442695, %v1549_v46  ;;  %4007 = vmatmul.mubr.msk.f32.vlgmr.msra.gmra.mxu0 %vm271_vm10, %v4174_v10  ;;  %v1603_v45 = vsel %vm271_vm10, %v4174_v10, 0.0 }
 0x461   :  { %4012 = vmatmul.mubr.msk.f32.vlgmr.msra.gmra.mxu1 %vm271_vm10, %v4176_v11  ;;  %4015 = vmatpush3.msra.mxu0 %v4677_v59  ;;  %v1606_v51 = vsel %vm271_vm10, %v4176_v11, 0.0  ;;  %v2803_v24 = vpop.permute.xlu1 %2802 }
 0x462   :  { %4189 = vpow2.f32 %v1580_v15  ;;  %4020 = vmatpush3.msra.mxu1 %v4679_v61  ;;  %1604 = vadd.xlane.f32.xlu1 %v1603_v45 }
 0x463   :  { %v4178_v53 = vpop.eup %4177  ;;  %1607 = vadd.xlane.f32.xlu0 %v1606_v51  ;;  %4016 = vmatprep.mubr.msk.f32.mxu0 %vm4285_vm9, %v4284_v31 }
 0x464   :  { %v4180_v42 = vpop.eup %4179  ;;  %4021 = vmatprep.mubr.msk.f32.mxu1 %vm4285_vm9, %v4284_v31  ;;  %4024 = vmatprep.subr.mxu0 %v4284_v31  ;;  %v1609_v16 = vsel %vm271_vm10, %v4178_v53, 0.0 }
 0x465   :  { %4029 = vmatprep.subr.mxu1 %v4284_v31  ;;  %4017 = vmatmul.mubr.msk.f32.vlgmr.msra.gmra.mxu0 %vm271_vm10, %v4178_v53  ;;  %v1612_v59 = vsel %vm271_vm10, %v4180_v42, 0.0 }
 0x466   :  { %4022 = vmatmul.mubr.msk.f32.vlgmr.msra.gmra.mxu1 %vm271_vm10, %v4180_v42  ;;  %4025 = vmatpush3.msra.mxu0 %v4681_v62 }
 0x467   :  { %v4182_v61 = vpop.eup %4181  ;;  %4030 = vmatpush3.msra.mxu1 %v4671_v56  ;;  %1610 = vadd.xlane.f32.xlu1 %v1609_v16 }
 0x468   :  { %v4184_v18 = vpop.eup %4183  ;;  %1613 = vadd.xlane.f32.xlu0 %v1612_v59  ;;  %4026 = vmatprep.mubr.msk.f32.mxu0 %vm4285_vm9, %v4284_v31  ;;  %v1615_v0 = vsel %vm271_vm10, %v4182_v61, 0.0 }
 0x469   :  { %4031 = vmatprep.mubr.msk.f32.mxu1 %vm4285_vm9, %v4284_v31  ;;  %4034 = vmatprep.subr.mxu0 %v4284_v31  ;;  %v1618_v62 = vsel %vm271_vm10, %v4184_v18, 0.0 }
 0x46a   :  { %4039 = vmatprep.subr.mxu1 %v4284_v31  ;;  %4027 = vmatmul.mubr.msk.f32.vlgmr.msra.gmra.mxu0 %vm271_vm10, %v4182_v61 }
 0x46b   :  { %v4186_v56 = vpop.eup %4185  ;;  %4032 = vmatmul.mubr.msk.f32.vlgmr.msra.gmra.mxu1 %vm271_vm10, %v4184_v18  ;;  %4035 = vmatpush3.msra.mxu0 %v4688_v2  ;;  %v2894_v2 = vld [vmem:[%s4970_s5] sm:$0xff] }
 0x46c   :  { %v4188_v6 = vpop.eup %4187  ;;  %4040 = vmatpush3.msra.mxu1 %v2727_v3  ;;  %1616 = vadd.xlane.f32.xlu1 %v1615_v0  ;;  %v1621_v7 = vsel %vm271_vm10, %v4186_v56, 0.0 }
 0x46d   :  { %1619 = vadd.xlane.f32.xlu0 %v1618_v62  ;;  %4036 = vmatprep.mubr.msk.f32.mxu0 %vm4285_vm9, %v4284_v31  ;;  %v1624_v19 = vsel %vm271_vm10, %v4188_v6, 0.0 }
 0x46e   :  { %4041 = vmatprep.mubr.msk.f32.mxu1 %vm4285_vm9, %v4284_v31  ;;  %4044 = vmatprep.subr.mxu0 %v4284_v31 }
 0x46f   :  { %v4190_v23 = vpop.eup %4189  ;;  %4037 = vmatmul.mubr.msk.f32.vlgmr.msra.gmra.mxu0 %vm271_vm10, %v4186_v56  ;;  %4042 = vmatmul.mubr.msk.f32.vlgmr.msra.gmra.mxu1 %vm271_vm10, %v4188_v6 }
 0x470   :  { %4045 = vmatpush3.msra.mxu0 %v2803_v24  ;;  %1622 = vadd.xlane.f32.xlu1 %v1621_v7  ;;  %v1627_v20 = vsel %vm271_vm10, %v4190_v23, 0.0 }
 0x471   :  { %1625 = vadd.xlane.f32.xlu0 %v1624_v19  ;;  %4046 = vmatprep.mubr.msk.f32.mxu0 %vm4285_vm9, %v4284_v31  ;;  %v3741_v31 = vld [vmem:[%s4970_s5 + $0x18] sm:$0xff] }
 0x472   :  { %4057 = vmatprep.subr.mxu0 %v2894_v2  ;;  %4049 = vmatprep.subr.mxu1 %v3727_v13 }
 0x473   :  { %4047 = vmatmul.mubr.msk.f32.vlgmr.msra.gmra.mxu0 %vm271_vm10, %v4190_v23  ;;  %4050 = vmatpush3.msra.mxu1 %v3727_v13 }
 0x474   :  { %1628 = vadd.xlane.f32.xlu1 %v1627_v20  ;;  %4058 = vmatpush3.msra.mxu0 %v2894_v2 }
 0x475   :  { %4065 = vmatprep.subr.mxu1 %v4795_v26  ;;  %4073 = vmatprep.subr.mxu0 %v3741_v31 }
 0x48e   :  { %v1584_v27 = vpop.xlane.xlu0 %1583 }
 0x48f   :  { %4191 = vrcp.f32 %v1584_v27 }
 0x492   :  { %v1587_v28 = vpop.xlane.xlu0 %1586  ;;  %v1593_v34 = vpop.xlane.xlu1 %1592 }
 0x493   :  { %4193 = vrcp.f32 %v1587_v28 }
 0x496   :  { %v1590_v32 = vpop.xlane.xlu0 %1589 }
 0x497   :  { %4195 = vrcp.f32 %v1590_v32 }
 0x498   :  { %4197 = vrcp.f32 %v1593_v34 }
 0x49c   :  { %v4192_v30 = vpop.eup %4191 }
 0x4a0   :  { %v4194_v39 = vpop.eup %4193 }
 0x4a4   :  { %v4196_v17 = vpop.eup %4195 }
 0x4a5   :  { %v4198_v49 = vpop.eup %4197 }
 0x4ba   :  { %v1734_v33 = vpop.f32.mrf.mxu1 }
 0x4bb   :  { %v2878_v37 = vmul.f32 %v4192_v30, %v1734_v33 }
 0x4bc   :  { %v3973_v38 = vpop.f32.mrf.mxu1 }
 0x4bd   :  { %4059 = vmatprep.mubr.msk.f32.mxu0 %vm271_vm10, %v2878_v37 }
 0x4c1   :  { %v1810_v40 = vpop.f32.mrf.mxu0 }
 0x4c2   :  { %v2879_v41 = vmul.f32 %v4194_v39, %v1810_v40 }
 0x4c3   :  { %v3978_v14 = vpop.f32.mrf.mxu0 }
 0x4c4   :  { %4060 = vmatmul.mubr.msk.f32.vlgmr.msra.gmra.mxu0 %vm271_vm10, %v2879_v41 }
 0x4c5   :  { %v1962_v43 = vpop.f32.mrf.mxu0  ;;  %4074 = vmatpush3.msra.mxu0 %v3741_v31 }
 0x4c6   :  { %v2881_v50 = vmul.f32 %v4198_v49, %v1962_v43 }
 0x4c7   :  { %v3988_v47 = vpop.f32.mrf.mxu0 }
 0x4ca   :  { %v1886_v48 = vpop.f32.mrf.mxu1 }
 0x4cb   :  { %v2880_v22 = vmul.f32 %v4196_v17, %v1886_v48 }
 0x4cc   :  { %v3983_v52 = vpop.f32.mrf.mxu1 }
 0x4cd   :  { %4062 = vmatprep.mubr.msk.f32.mxu0 %vm271_vm10, %v2880_v22 }
 0x4ce   :  { %4063 = vmatmul.mubr.msk.f32.gmra.mxu0 %vm271_vm10, %v2881_v50 }
 0x4e0   :  { %v1599_v12 = vpop.xlane.xlu1 %1598 }
 0x4e2   :  { %v1596_v54 = vpop.xlane.xlu0 %1595 }
 0x4e3   :  { %4199 = vrcp.f32 %v1596_v54 }
 0x4e4   :  { %4201 = vrcp.f32 %v1599_v12 }
 0x4e6   :  { %v1602_v25 = vpop.xlane.xlu0 %1601 }
 0x4e7   :  { %4203 = vrcp.f32 %v1602_v25 }
 0x4eb   :  { %v1605_v55 = vpop.xlane.xlu1 %1604 }
 0x4ec   :  { %v1608_v63 = vpop.xlane.xlu0 %1607  ;;  %4205 = vrcp.f32 %v1605_v55 }
 0x4ed   :  { %4207 = vrcp.f32 %v1608_v63 }
 0x4f0   :  { %v1611_v21 = vpop.xlane.xlu1 %1610  ;;  %v4200_v36 = vpop.eup %4199 }
 0x4f1   :  { %v1614_v29 = vpop.xlane.xlu0 %1613  ;;  %4209 = vrcp.f32 %v1611_v21  ;;  %v4202_v5 = vpop.eup %4201 }
 0x4f2   :  { %4211 = vrcp.f32 %v1614_v29 }
 0x4f4   :  { %v4204_v46 = vpop.eup %4203 }
 0x4f5   :  { %v1617_v35 = vpop.xlane.xlu1 %1616 }
 0x4f6   :  { %v1620_v8 = vpop.xlane.xlu0 %1619  ;;  %4213 = vrcp.f32 %v1617_v35 }
 0x4f7   :  { %4215 = vrcp.f32 %v1620_v8 }
 0x4f9   :  { %v1623_v11 = vpop.xlane.xlu1 %1622  ;;  %v4206_v53 = vpop.eup %4205 }
 0x4fa   :  { %v1626_v51 = vpop.xlane.xlu0 %1625  ;;  %v4208_v16 = vpop.eup %4207  ;;  %4217 = vrcp.f32 %v1623_v11 }
 0x4fb   :  { %4219 = vrcp.f32 %v1626_v51  ;;  %v4256_v51 = vld [vmem:[%s4965_s0 + $0x8] sm:$0xff] }
 0x4fd   :  { %v1629_v62 = vpop.xlane.xlu1 %1628 }
 0x4fe   :  { %v4210_v3 = vpop.eup %4209  ;;  %4221 = vrcp.f32 %v1629_v62 }
 0x4ff   :  { %v4212_v7 = vpop.eup %4211 }
 0x503   :  { %v4214_v13 = vpop.eup %4213 }
 0x504   :  { %v4216_v31 = vpop.eup %4215 }
 0x507   :  { %v4218_v34 = vpop.eup %4217 }
 0x508   :  { %v4220_v37 = vpop.eup %4219 }
 0x50b   :  { %v4222_v47 = vpop.eup %4221 }
 0x516   :  { %v2114_v1 = vpop.f32.mrf.mxu0 }
 0x517   :  { %v2883_v58 = vmul.f32 %v4202_v5, %v2114_v1  ;;  %v3303_v1 = vsub.s32 4, %v4385_v60 }
 0x518   :  { %v2038_v4 = vpop.f32.mrf.mxu1  ;;  %v3998_v57 = vpop.f32.mrf.mxu0 }
 0x519   :  { %v2882_v9 = vmul.f32 %v4200_v36, %v2038_v4 }
 0x51a   :  { %v3993_v44 = vpop.f32.mrf.mxu1 }
 0x51b   :  { %4051 = vmatprep.mubr.msk.f32.mxu1 %vm271_vm10, %v2882_v9  ;;  %v4822_v44 = vld [vmem:[%s4966_s1] sm:$0x3f] }
 0x51c   :  { %v2190_v10 = vpop.f32.mrf.mxu1  ;;  %4052 = vmatmul.mubr.msk.f32.vlgmr.msra.gmra.mxu1 %vm271_vm10, %v2883_v58 }
 0x51d   :  { %v2884_v15 = vmul.f32 %v4204_v46, %v2190_v10  ;;  %4066 = vmatpush3.msra.mxu1 %v4795_v26  ;;  %v3304_v46 = vrot.slane %v4822_v44, %v3303_v1 }
 0x51e   :  { %v4003_v45 = vpop.f32.mrf.mxu1 }
 0x51f   :  { %4054 = vmatprep.mubr.msk.f32.mxu1 %vm271_vm10, %v2884_v15 }
 0x520   :  { %v2266_v42 = vpop.f32.mrf.mxu0 }
 0x521   :  { %v2885_v59 = vmul.f32 %v4206_v53, %v2266_v42  ;;  %v2342_v61 = vpop.f32.mrf.mxu1 }
 0x522   :  { %v2886_v18 = vmul.f32 %v4208_v16, %v2342_v61  ;;  %v4008_v0 = vpop.f32.mrf.mxu0 }
 0x523   :  { %v4013_v56 = vpop.f32.mrf.mxu1  ;;  %4055 = vmatmul.mubr.msk.f32.gmra.mxu1 %vm271_vm10, %v2885_v59 }
 0x524   :  { %4067 = vmatprep.mubr.msk.f32.mxu1 %vm271_vm10, %v2886_v18  ;;  %v4257_v18 = vld [vmem:[%s4965_s0] sm:$0xff] }
 0x525   :  { %v2418_v6 = vpop.f32.mrf.mxu0 }
 0x526   :  { %v2887_v19 = vmul.f32 %v4210_v3, %v2418_v6  ;;  %v2494_v23 = vpop.f32.mrf.mxu1  ;;  %v4258_v6 = vld [vmem:[%s4965_s0 + $0x18] sm:$0xff] }
 0x527   :  { %v2888_v24 = vmul.f32 %v4212_v7, %v2494_v23  ;;  %v4018_v2 = vpop.f32.mrf.mxu0 }
 0x528   :  { %v4023_v20 = vpop.f32.mrf.mxu1  ;;  %4068 = vmatmul.mubr.msk.f32.vlgmr.msra.gmra.mxu1 %vm271_vm10, %v2887_v19  ;;  %v4259_v2 = vld [vmem:[%s4965_s0 + $0x10] sm:$0xff] }
 0x529   :  { %4070 = vmatprep.mubr.msk.f32.mxu1 %vm271_vm10, %v2888_v24 }
 0x52a   :  { %v2570_v26 = vpop.f32.mrf.mxu0 }
 0x52b   :  { %v2889_v27 = vmul.f32 %v4214_v13, %v2570_v26  ;;  %v2646_v28 = vpop.f32.mrf.mxu1 }
 0x52c   :  { %v2890_v30 = vmul.f32 %v4216_v31, %v2646_v28  ;;  %v4028_v32 = vpop.f32.mrf.mxu0 }
 0x52d   :  { %v4033_v33 = vpop.f32.mrf.mxu1  ;;  %4071 = vmatmul.mubr.msk.f32.gmra.mxu1 %vm271_vm10, %v2889_v27 }
 0x52e   :  { %4075 = vmatprep.mubr.msk.f32.mxu0 %vm271_vm10, %v2890_v30 }
 0x52f   :  { %v2722_v38 = vpop.f32.mrf.mxu0  ;;  %v2798_v39 = vpop.f32.mrf.mxu1 }
 0x530   :  { %v2891_v40 = vmul.f32 %v4218_v34, %v2722_v38  ;;  %v2892_v41 = vmul.f32 %v4220_v37, %v2798_v39 }
 0x531   :  { %v4038_v14 = vpop.f32.mrf.mxu0  ;;  %v4043_v43 = vpop.f32.mrf.mxu1 }
 0x532   :  { %4076 = vmatmul.mubr.msk.f32.vlgmr.msra.gmra.mxu0 %vm271_vm10, %v2891_v40 }
 0x533   :  { %v2874_v17 = vpop.f32.mrf.mxu0  ;;  %4078 = vmatprep.mubr.msk.f32.mxu0 %vm271_vm10, %v2892_v41 }
 0x534   :  { %v2893_v48 = vmul.f32 %v4222_v47, %v2874_v17 }
 0x535   :  { %v4048_v49 = vpop.f32.mrf.mxu0 }
 0x536   :  { %4079 = vmatmul.mubr.msk.f32.gmra.mxu0 %vm271_vm10, %v2893_v48 }
 0x584   :  { %v4061_v12 = vpop.f32.mrf.mxu0 }
 0x586   :  { %v3072_v55 = vpop.f32.mrf.mxu0 }
 0x58e   :  { %v4064_v63 = vpop.f32.mrf.mxu0 }
 0x590   :  { %v3082_v35 = vpop.f32.mrf.mxu0 }
 0x5dc   :  { %v4053_v22 = vpop.f32.mrf.mxu1 }
 0x5dd   :  { %v3078_v29 = vadd.f32 %v4061_v12, %v4053_v22  ;;  %v3408_v12 = vld [vmem:[%s4971_s6 + $0x18] sm:$0xff] }
 0x5de   :  { %v2975_v50 = vpop.f32.mrf.mxu1  ;;  %4081 = vmatprep.subr.mxu1 %v3408_v12 }
 0x5df   :  { %v3073_v4 = vadd.f32 %v3072_v55, %v2975_v50  ;;  %4082 = vmatpush3.msra.mxu1 %v3408_v12  ;;  %v3406_v55 = vld [vmem:[%s4971_s6 + $0x8] sm:$0xff] }
 0x5e0   :  { %v3558_v12 = vld [vmem:[%s4972_s7 + $0x68] sm:$0xff] }
 0x5e3   :  { %v4056_v52 = vpop.f32.mrf.mxu1 }
 0x5e4   :  { %v3088_v8 = vadd.f32 %v4064_v63, %v4056_v52  ;;  %v3405_v63 = vld [vmem:[%s4971_s6] sm:$0xff] }
 0x5e5   :  { %v2985_v54 = vpop.f32.mrf.mxu1 }
 0x5e6   :  { %v3083_v15 = vadd.f32 %v3082_v35, %v2985_v54 }
 0x5e8   :  { %v4069_v25 = vpop.f32.mrf.mxu1 }
 0x5e9   :  { %v3191_v57 = vadd.f32 %v4069_v25, %v3078_v29  ;;  %v3407_v25 = vld [vmem:[%s4971_s6 + $0x10] sm:$0xff] }
 0x5ea   :  { %v3171_v21 = vpop.f32.mrf.mxu1  ;;  %4083 = vmatprep.subr.mxu1 %v3407_v25 }
 0x5eb   :  { %v3190_v9 = vadd.f32 %v3171_v21, %v3073_v4  ;;  %4084 = vmatpush3.msra.mxu1 %v3407_v25  ;;  %v3557_v25 = vld [vmem:[%s4972_s7 + $0x60] sm:$0xff] }
 0x5ec   :  { %4085 = vmatprep.subr.mxu1 %v3406_v55 }
 0x5ed   :  { %v4072_v36 = vpop.f32.mrf.mxu1  ;;  %4086 = vmatpush3.msra.mxu1 %v3406_v55  ;;  %v3556_v55 = vld [vmem:[%s4972_s7 + $0x58] sm:$0xff] }
 0x5ee   :  { %v3193_v45 = vadd.f32 %v4072_v36, %v3088_v8  ;;  %4087 = vmatprep.subr.mxu1 %v3405_v63 }
 0x5ef   :  { %v3181_v10 = vpop.f32.mrf.mxu1  ;;  %4088 = vmatpush3.msra.mxu1 %v3405_v63  ;;  %v3555_v63 = vld [vmem:[%s4972_s7 + $0x50] sm:$0xff] }
 0x5f0   :  { %v3192_v59 = vadd.f32 %v3181_v10, %v3083_v15 }
 0x5f2   :  { %v4077_v5 = vpop.f32.mrf.mxu0 }
 0x5f3   :  { %v3294_v58 = vadd.f32 %v4077_v5, %v3191_v57 }
 0x5f4   :  { %v3274_v11 = vpop.f32.mrf.mxu0 }
 0x5f5   :  { %v3298_v53 = vadd.f32 %v4256_v51, %v3294_v58  ;;  %v3293_v42 = vadd.f32 %v3274_v11, %v3190_v9 }
 0x5f6   :  { %v4080_v16 = vpop.f32.mrf.mxu0 }
 0x5f7   :  { %v4828_v61 = vadd.f32 %v3304_v46, %v3298_v53  ;;  %v3297_v0 = vadd.f32 %v4257_v18, %v3293_v42  ;;  %v3296_v62 = vadd.f32 %v4080_v16, %v3193_v45 }
 0x5f8   :  { %v3284_v56 = vpop.f32.mrf.mxu0 }
 0x5f9   :  { %v4833_v3 = vadd.f32 %v3304_v46, %v3297_v0  ;;  %v3300_v7 = vadd.f32 %v4258_v6, %v3296_v62  ;;  %v3295_v19 = vadd.f32 %v3284_v56, %v3192_v59  ;;  %v3312_v23 = vsel %vm35_vm0, %v4828_v61, 0.0 }
 0x5fa   :  { %3313 = vadd.xlane.f32.xlu1 %v3312_v23 }
 0x5fb   :  { %v4840_v24 = vadd.f32 %v3304_v46, %v3300_v7  ;;  %v3299_v20 = vadd.f32 %v4259_v2, %v3295_v19  ;;  %v3309_v13 = vsel %vm35_vm0, %v4833_v3, 0.0 }
 0x5fc   :  { %3310 = vadd.xlane.f32.xlu0 %v3309_v13 }
 0x5fd   :  { %v4847_v26 = vadd.f32 %v3304_v46, %v3299_v20  ;;  %v3318_v31 = vsel %vm35_vm0, %v4840_v24, 0.0 }
 0x5fe   :  { %3319 = vadd.xlane.f32.xlu1 %v3318_v31  ;;  %v3391_v31 = vsub.s32 2, %v4385_v60 }
 0x5ff   :  { %v3315_v27 = vsel %vm35_vm0, %v4847_v26, 0.0 }
 0x600   :  { %3316 = vadd.xlane.f32.xlu0 %v3315_v27 }
 0x683   :  { %v3314_v28 = vpop.xlane.xlu1 %3313 }
 0x684   :  { %v3322_v30 = vmul.f32 0.03125, %v3314_v28  ;;  %v3392_v28 = vrot.slane %v4822_v44, %v3391_v31 }
 0x685   :  { %v3311_v32 = vpop.xlane.xlu0 %3310 }
 0x686   :  { %v4854_v33 = vsub.f32 %v4828_v61, %v3322_v30  ;;  %v3321_v34 = vmul.f32 0.03125, %v3311_v32  ;;  %v3399_v30 = vsub.s32 3, %v4385_v60 }
 0x687   :  { %v3320_v37 = vpop.xlane.xlu1 %3319 }
 0x688   :  { %v4857_v38 = vsub.f32 %v4833_v3, %v3321_v34  ;;  %v3324_v39 = vmul.f32 0.03125, %v3320_v37  ;;  %v3330_v40 = vmul.f32 %v4854_v33, %v4854_v33 }
 0x689   :  { %v3317_v41 = vpop.xlane.xlu0 %3316 }
 0x68a   :  { %v4862_v14 = vsub.f32 %v4840_v24, %v3324_v39  ;;  %v3323_v43 = vmul.f32 0.03125, %v3317_v41  ;;  %v3336_v47 = vsel %vm35_vm0, %v3330_v40, 0.0  ;;  %v3329_v17 = vmul.f32 %v4857_v38, %v4857_v38 }
 0x68b   :  { %3337 = vadd.xlane.f32.xlu1 %v3336_v47  ;;  %v3400_v39 = vrot.slane %v4822_v44, %v3399_v30 }
 0x68c   :  { %v4868_v48 = vsub.f32 %v4847_v26, %v3323_v43  ;;  %v3333_v49 = vsel %vm35_vm0, %v3329_v17, 0.0  ;;  %v3332_v22 = vmul.f32 %v4862_v14, %v4862_v14 }
 0x68d   :  { %3334 = vadd.xlane.f32.xlu0 %v3333_v49 }
 0x68e   :  { %v3342_v50 = vsel %vm35_vm0, %v3332_v22, 0.0  ;;  %v3331_v52 = vmul.f32 %v4868_v48, %v4868_v48 }
 0x68f   :  { %3343 = vadd.xlane.f32.xlu1 %v3342_v50 }
 0x690   :  { %v3339_v54 = vsel %vm35_vm0, %v3331_v52, 0.0 }
 0x691   :  { %3340 = vadd.xlane.f32.xlu0 %v3339_v54 }
 0x714   :  { %v3338_v21 = vpop.xlane.xlu1 %3337 }
 0x715   :  { %v3346_v29 = vmul.f32 0.03125, %v3338_v21  ;;  %v3554_v21 = vld [vmem:[%s4972_s7 + $0x48] sm:$0xff] }
 0x716   :  { %v3335_v1 = vpop.xlane.xlu0 %3334 }
 0x717   :  { %v3350_v35 = vadd.f32 1e-12, %v3346_v29  ;;  %v3345_v36 = vmul.f32 0.03125, %v3335_v1  ;;  %v3553_v29 = vld [vmem:[%s4972_s7 + $0x40] sm:$0xff]  ;;  %v3552_v1 = vld [vmem:[%s4972_s7 + $0x38] sm:$0xff] }
 0x718   :  { %v3344_v4 = vpop.xlane.xlu1 %3343 }
 0x719   :  { %4223 = vrsqrt.f32 %v3350_v35  ;;  %v3349_v57 = vadd.f32 1e-12, %v3345_v36  ;;  %v3348_v5 = vmul.f32 0.03125, %v3344_v4  ;;  %vm3362_vm11 = vcmp.eq.f32.partialorder %v3350_v35, inf  ;;  %v3550_v36 = vld [vmem:[%s4972_s7 + $0x28] sm:$0xff]  ;;  %v3549_v4 = vld [vmem:[%s4972_s7 + $0x20] sm:$0xff] }
 0x71a   :  { %v3341_v8 = vpop.xlane.xlu0 %3340  ;;  %v3365_v15 = vand.u32 2147483648, %v3350_v35  ;;  %vm3364_vm12 = vcmp.eq.f32.partialorder %v3350_v35, 0.0 }
 0x71b   :  { %v3347_v9 = vmul.f32 0.03125, %v3341_v8  ;;  %4225 = vrsqrt.f32 %v3349_v57  ;;  %v3352_v58 = vadd.f32 1e-12, %v3348_v5  ;;  %vm3355_vm13 = vcmp.eq.f32.partialorder %v3349_v57, inf  ;;  %v3547_v5 = vld [vmem:[%s4972_s7 + $0x10] sm:$0xff]  ;;  %v3546_v8 = vld [vmem:[%s4972_s7 + $0x8] sm:$0xff] }
 0x71c   :  { %v3358_v16 = vand.u32 2147483648, %v3349_v57  ;;  %vm3357_vm14 = vcmp.eq.f32.partialorder %v3349_v57, 0.0 }
 0x71d   :  { %v3351_v46 = vadd.f32 1e-12, %v3347_v9  ;;  %4227 = vrsqrt.f32 %v3352_v58  ;;  %vm3376_vm15 = vcmp.eq.f32.partialorder %v3352_v58, inf  ;;  %v3379_v6 = vand.u32 2147483648, %v3352_v58  ;;  %v3545_v9 = vld [vmem:[%s4972_s7] sm:$0xff] }
 0x71e   :  { %vm3378_vm1 = vcmp.eq.f32.partialorder %v3352_v58, 0.0 }
 0x71f   :  { %4229 = vrsqrt.f32 %v3351_v46  ;;  %vm3369_vm2 = vcmp.eq.f32.partialorder %v3351_v46, inf  ;;  %v3372_v23 = vand.u32 2147483648, %v3351_v46  ;;  %vm3371_vm3 = vcmp.eq.f32.partialorder %v3351_v46, 0.0 }
 0x726   :  { %v4224_v10 = vpop.eup %4223 }
 0x727   :  { %v3361_v11 = vmul.f32 %v4224_v10, %v3350_v35 }
 0x728   :  { %v4226_v45 = vpop.eup %4225 }
 0x729   :  { %v3363_v51 = vsel %vm3362_vm11, %v3350_v35, %v3361_v11  ;;  %v3354_v42 = vmul.f32 %v4226_v45, %v3349_v57  ;;  %v3551_v35 = vld [vmem:[%s4972_s7 + $0x30] sm:$0xff] }
 0x72a   :  { %v3366_v53 = vsel %vm3364_vm12, %v3365_v15, %v3363_v51  ;;  %v4228_v59 = vpop.eup %4227 }
 0x72b   :  { %4231 = vrcp.f32 %v3366_v53  ;;  %v3356_v18 = vsel %vm3355_vm13, %v3349_v57, %v3354_v42  ;;  %v3375_v56 = vmul.f32 %v4228_v59, %v3352_v58  ;;  %v3548_v57 = vld [vmem:[%s4972_s7 + $0x18] sm:$0xff] }
 0x72c   :  { %v4230_v0 = vpop.eup %4229  ;;  %v3359_v62 = vsel %vm3357_vm14, %v3358_v16, %v3356_v18 }
 0x72d   :  { %4233 = vrcp.f32 %v3359_v62  ;;  %v3368_v7 = vmul.f32 %v4230_v0, %v3351_v46  ;;  %v3377_v19 = vsel %vm3376_vm15, %v3352_v58, %v3375_v56  ;;  %v3746_v58 = vld [vmem:[%s4968_s3] ss:$0 sm:$0xff]  ;;  %s4289_s3 = smov [#allocation2]  }
 0x72e   :  { %v3380_v2 = vsel %vm3378_vm1, %v3379_v6, %v3377_v19 }
 0x72f   :  { %v3370_v20 = vsel %vm3369_vm2, %v3351_v46, %v3368_v7  ;;  %4235 = vrcp.f32 %v3380_v2 }
 0x730   :  { %v3373_v13 = vsel %vm3371_vm3, %v3372_v23, %v3370_v20 }
 0x731   :  { %4237 = vrcp.f32 %v3373_v13 }
 0x738   :  { %v4232_v27 = vpop.eup %4231 }
 0x739   :  { %v3384_v32 = vmul.f32 %v4232_v27, %v4854_v33 }
 0x73a   :  { %v4234_v34 = vpop.eup %4233 }
 0x73b   :  { %v3382_v37 = vmul.f32 %v4234_v34, %v4857_v38  ;;  %v3394_v40 = vmul.f32 %v3392_v28, %v3384_v32 }
 0x73c   :  { %v4236_v41 = vpop.eup %4235 }
 0x73d   :  { %v3393_v43 = vmul.f32 %v3392_v28, %v3382_v37  ;;  %v3388_v17 = vmul.f32 %v4236_v41, %v4862_v14  ;;  %v3402_v50 = vadd.f32 %v3400_v39, %v3394_v40  ;;  %v3560_v14 = vld [vmem:[%s4972_s7 + $0x78] sm:$0xff] }
 0x73e   :  { %v4238_v47 = vpop.eup %4237  ;;  %4095 = vmatprep.subr.mxu0 %v3560_v14 }
 0x73f   :  { %v3401_v49 = vadd.f32 %v3400_v39, %v3393_v43  ;;  %v3386_v22 = vmul.f32 %v4238_v47, %v4868_v48  ;;  %v3396_v52 = vmul.f32 %v3392_v28, %v3388_v17  ;;  %4096 = vmatpush3.msra.mxu0 %v3560_v14  ;;  %v3559_v48 = vld [vmem:[%s4972_s7 + $0x70] sm:$0xff]  ;;  %v3563_v47 = vsub.s32 5, %v4385_v60  ;;  %s3663_s7 = sshll.u32 %s4289_s3, 4  ;;  %s3664_s7 = int_to_ptr.vmem [resolvable:$true] %s3663_s7 }
 0x740   :  { %4097 = vmatprep.subr.mxu0 %v3559_v48  ;;  %s4260_s10 = scalar_lea.vmem %s3664_s7, 512  ;;  %p4265_p1 = scmp.lt.s32.totalorder %s3664_s7, %s3664_s7 }
 0x741   :  { %4089 = vmatprep.mubr.msk.f32.mxu1 %vm35_vm0, %v3401_v49  ;;  %v3395_v54 = vmul.f32 %v3392_v28, %v3386_v22  ;;  %v3404_v38 = vadd.f32 %v3400_v39, %v3396_v52  ;;  %4098 = vmatpush3.msra.mxu0 %v3559_v48  ;;  %v3564_v17 = vrot.slane %v4822_v44, %v3563_v47  ;;  %p4261_p0 = scmp.ne.s32.totalorder %s3664_s7, %s4260_s10  ;;  %p4266_p2 = scmp.lt.s32.totalorder %s4260_s10, %s4260_s10 }
 0x742   :  { %4090 = vmatmul.mubr.msk.f32.vlgmr.msra.gmra.mxu1 %vm35_vm0, %v3402_v50  ;;  %4099 = vmatprep.subr.mxu0 %v3558_v12 }
 0x743   :  { %v3403_v33 = vadd.f32 %v3400_v39, %v3395_v54  ;;  %4100 = vmatpush3.msra.mxu0 %v3558_v12  ;;  %p4267_p3 = por %p4266_p2, %p4265_p1 }
 0x744   :  { %4101 = vmatprep.subr.mxu0 %v3557_v25 }
 0x745   :  { %4092 = vmatprep.mubr.msk.f32.mxu1 %vm35_vm0, %v3403_v33  ;;  %4102 = vmatpush3.msra.mxu0 %v3557_v25  ;;  %p4268_p4 = pnand %p4267_p3, %p4261_p0 }
 0x746   :  { %4093 = vmatmul.mubr.msk.f32.gmra.mxu1 %vm35_vm0, %v3404_v38  ;;  %4103 = vmatprep.subr.mxu0 %v3556_v55 }
 0x747   :  { %4104 = vmatpush3.msra.mxu0 %v3556_v55 }
 0x748   :  { %4105 = vmatprep.subr.mxu0 %v3555_v63 }
 0x749   :  { %4106 = vmatpush3.msra.mxu0 %v3555_v63 }
 0x74a   :  { %4107 = vmatprep.subr.mxu0 %v3554_v21 }
 0x74b   :  { %4108 = vmatpush3.msra.mxu0 %v3554_v21 }
 0x74c   :  { %4109 = vmatprep.subr.mxu0 %v3553_v29 }
 0x74d   :  { %4110 = vmatpush3.msra.mxu0 %v3553_v29 }
 0x74e   :  { %4111 = vmatprep.subr.mxu0 %v3552_v1 }
 0x74f   :  { %4112 = vmatpush3.msra.mxu0 %v3552_v1 }
 0x750   :  { %4113 = vmatprep.subr.mxu0 %v3551_v35 }
 0x751   :  { %4114 = vmatpush3.msra.mxu0 %v3551_v35 }
 0x752   :  { %4115 = vmatprep.subr.mxu0 %v3550_v36 }
 0x753   :  { %4116 = vmatpush3.msra.mxu0 %v3550_v36 }
 0x754   :  { %4117 = vmatprep.subr.mxu0 %v3549_v4 }
 0x755   :  { %4118 = vmatpush3.msra.mxu0 %v3549_v4 }
 0x756   :  { %4119 = vmatprep.subr.mxu0 %v3548_v57 }
 0x757   :  { %4120 = vmatpush3.msra.mxu0 %v3548_v57 }
 0x758   :  { %4121 = vmatprep.subr.mxu0 %v3547_v5 }
 0x759   :  { %4122 = vmatpush3.msra.mxu0 %v3547_v5 }
 0x75a   :  { %4123 = vmatprep.subr.mxu0 %v3546_v8 }
 0x75b   :  { %4124 = vmatpush3.msra.mxu0 %v3546_v8 }
 0x75c   :  { %4125 = vmatprep.subr.mxu0 %v3545_v9 }
 0x75d   :  { %4126 = vmatpush3.msra.mxu0 %v3545_v9 }
 0x802   :  { %v4091_v46 = vpop.f32.mrf.mxu1 }
 0x803   :  { %v3500_v10 = vadd.f32 %v4091_v46, %v3746_v58 }
 0x804   :  { %v3494_v11 = vpop.f32.mrf.mxu1 }
 0x805   :  { %v3752_v15 = vmul.f32 -1.702, %v3500_v10  ;;  %v3495_v45 = vadd.f32 %v3746_v58, %v3494_v11 }
 0x806   :  { %v4094_v51 = vpop.f32.mrf.mxu1 }
 0x807   :  { %v3523_v53 = vmul.f32 1.442695, %v3752_v15  ;;  %v3751_v42 = vmul.f32 -1.702, %v3495_v45  ;;  %v3510_v16 = vadd.f32 %v4094_v51, %v3746_v58 }
 0x808   :  { %v3504_v59 = vpop.f32.mrf.mxu1 }
 0x809   :  { %4239 = vpow2.f32 %v3523_v53  ;;  %v3521_v18 = vmul.f32 1.442695, %v3751_v42  ;;  %v3754_v0 = vmul.f32 -1.702, %v3510_v16  ;;  %v3505_v62 = vadd.f32 %v3746_v58, %v3504_v59 }
 0x80b   :  { %4241 = vpow2.f32 %v3521_v18  ;;  %v3527_v56 = vmul.f32 1.442695, %v3754_v0  ;;  %v3753_v6 = vmul.f32 -1.702, %v3505_v62 }
 0x80d   :  { %4243 = vpow2.f32 %v3527_v56  ;;  %v3525_v7 = vmul.f32 1.442695, %v3753_v6 }
 0x80f   :  { %4245 = vpow2.f32 %v3525_v7 }
 0x816   :  { %v4240_v19 = vpop.eup %4239 }
 0x817   :  { %v3530_v23 = vadd.f32 1.0, %v4240_v19 }
 0x818   :  { %v4242_v2 = vpop.eup %4241 }
 0x819   :  { %v3529_v20 = vadd.f32 1.0, %v4242_v2  ;;  %4247 = vrcp.f32 %v3530_v23 }
 0x81a   :  { %v4244_v13 = vpop.eup %4243 }
 0x81b   :  { %4249 = vrcp.f32 %v3529_v20  ;;  %v3532_v31 = vadd.f32 1.0, %v4244_v13 }
 0x81c   :  { %v4246_v27 = vpop.eup %4245 }
 0x81d   :  { %v3531_v28 = vadd.f32 1.0, %v4246_v27  ;;  %4251 = vrcp.f32 %v3532_v31 }
 0x81f   :  { %4253 = vrcp.f32 %v3531_v28 }
 0x826   :  { %v4248_v30 = vpop.eup %4247 }
 0x827   :  { %v3542_v37 = vmul.f32 %v4248_v30, %v3500_v10 }
 0x828   :  { %v4250_v32 = vpop.eup %4249 }
 0x829   :  { %v3541_v34 = vmul.f32 %v4250_v32, %v3495_v45 }
 0x82a   :  { %v4252_v39 = vpop.eup %4251 }
 0x82b   :  { %4127 = vmatprep.mubr.f32.mxu0 %v3541_v34  ;;  %v3544_v43 = vmul.f32 %v4252_v39, %v3510_v16 }
 0x82c   :  { %v4254_v40 = vpop.eup %4253  ;;  %4128 = vmatmul.mubr.f32.vlgmr.msra.gmra.mxu0 %v3542_v37 }
 0x82d   :  { %v3543_v41 = vmul.f32 %v4254_v40, %v3505_v62 }
 0x82f   :  { %4130 = vmatprep.mubr.f32.mxu0 %v3543_v41 }
 0x830   :  { %4131 = vmatmul.mubr.f32.gmra.mxu0 %v3544_v43 }
 0x8ec   :  { %v4129_v49 = vpop.f32.mrf.mxu0 }
 0x8ed   :  { %v3637_v22 = vadd.f32 %v4129_v49, %v3564_v17 }
 0x8ee   :  { %v3631_v50 = vpop.f32.mrf.mxu0 }
 0x8ef   :  { %v3651_v52 = vadd.f32 %v3637_v22, %v4828_v61  ;;  %v3632_v54 = vadd.f32 %v3631_v50, %v3564_v17 }
 0x8f0   :  { %v4132_v33 = vpop.f32.mrf.mxu0 }
 0x8f1   :  { %3655 = vst.msk [vmem:[#allocation2 + $0x8] sm:$0xff] %vm35_vm0, %v3651_v52  ;;  %v3650_v38 = vadd.f32 %v3632_v54, %v4833_v3  ;;  %v3647_v14 = vadd.f32 %v4132_v33, %v3564_v17 }
 0x8f2   :  { %v3641_v48 = vpop.f32.mrf.mxu0 }
 0x8f3   :  { %3654 = vst.msk [vmem:[#allocation2] sm:$0xff] %vm35_vm0, %v3650_v38  ;;  %v3653_v60 = vadd.f32 %v3647_v14, %v4840_v24  ;;  %v3642_v44 = vadd.f32 %v3641_v48, %v3564_v17 }
 0x8f5   :  { %3657 = vst.msk [vmem:[#allocation2 + $0x18] sm:$0xff] %vm35_vm0, %v3653_v60  ;;  %v3652_v12 = vadd.f32 %v3642_v44, %v4847_v26 }
 0x8f7   :  { %3656 = vst.msk [vmem:[#allocation2 + $0x10] sm:$0xff] %vm35_vm0, %v3652_v12 }
 0x8f8   :  { %4271 = shalt.err (!%p4268_p4)
}
 0x8f9   :  { %s4290_s11 = smov 128   ;;  %s4291_s12 = smov 8  }
 0x8fa   :  { %3669 = dma.vmem_to_hbm [thread:$0]  %s3664_s7, 512, %s4973_s8, [#allocation3], %s4290_s11, %s4290_s11, %s4291_s12  }
 0x8fb   :  { %4280 = dma.done.wait [#allocation3], 512  }
 0x8fc   :  { %4281 = vsyncadd [#allocation3], 4294966784 }
 0x8fd   :  { %3673 = vsyncpa [#allocation3], 1 }

// kernel: tpu_custom_call.1
= control target key start
LH: loop header
LB: loop body
LE: loop exit
PB: predicated region body
PF: predicated region fallthrough
CT: control target
= control target key end

     0   :  { %vm35_vm0 = vcmask 261120   ;;  %s4965_s0 = inlined_call_operand.vmem [shape: f32[4,8,32], index: 0, kind: input, shape index: {}]   ;;  %s4966_s1 = inlined_call_operand.vmem [shape: f32[6,32], index: 1, kind: input, shape index: {}]   ;;  %s4967_s2 = inlined_call_operand.vmem [shape: f32[1,96], index: 2, kind: input, shape index: {}]   ;;  %s4968_s3 = inlined_call_operand.vmem [shape: f32[1,128], index: 3, kind: input, shape index: {}]   ;;  %s4969_s4 = inlined_call_operand.vmem [shape: f32[32,96], index: 4, kind: input, shape index: {}]   ;;  %s4970_s5 = inlined_call_operand.vmem [shape: f32[4,8,32], index: 5, kind: input, shape index: {}]   ;;  %s4971_s6 = inlined_call_operand.vmem [shape: f32[32,128], index: 6, kind: input, shape index: {}]   ;;  %s4972_s7 = inlined_call_operand.vmem [shape: f32[128,32], index: 7, kind: input, shape index: {}]   ;;  %s4973_s8 = inlined_call_operand.hbm [shape: f32[4,8,32], index: 8, kind: output, shape index: {}]  }
   0x1   :  { %v30_v0 = vld [vmem:[%s4965_s0] sm:$0xff]  ;;  %v32_v1 = vld [vmem:[%s4965_s0 + $0x10] sm:$0xff]  ;;  %v31_v2 = vld [vmem:[%s4965_s0 + $0x8] sm:$0xff] }
   0x2   :  { %v36_v3 = vsel %vm35_vm0, %v30_v0, 0.0  ;;  %v42_v4 = vsel %vm35_vm0, %v32_v1, 0.0  ;;  %v33_v5 = vld [vmem:[%s4965_s0 + $0x18] sm:$0xff] }
   0x3   :  { %13 = vsyncpa [#allocation3], 0  ;;  %37 = vadd.xlane.f32.xlu0 %v36_v3  ;;  %43 = vadd.xlane.f32.xlu1 %v42_v4  ;;  %v39_v6 = vsel %vm35_vm0, %v31_v2, 0.0  ;;  %v45_v7 = vsel %vm35_vm0, %v33_v5, 0.0  ;;  %v136_v28 = vld [vmem:[%s4969_s4 + $0x18] sm:$0xff]  ;;  %v135_v29 = vld [vmem:[%s4969_s4 + $0x10] sm:$0xff]  ;;  %v117_v50 = vlaneseq }
   0x4   :  { %3875 = vmatprep.subr.mxu1 %v136_v28  ;;  %v134_v30 = vld [vmem:[%s4969_s4 + $0x8] sm:$0xff]  ;;  %v133_v31 = vld [vmem:[%s4969_s4] sm:$0xff]  ;;  %s4282_s24 = smov 104   ;;  %s4283_s25 = smov 80   ;;  %vm4285_vm9 = vmmov 0   ;;  %vm271_vm10 = vcmask 64512  }
   0x5   :  { %3876 = vmatpush3.msra.mxu1 %v136_v28  ;;  %v4385_v60 = vshrl.u32 %v117_v50, 7  ;;  %v34_v3 = vld [vmem:[%s4966_s1] sm:$0x3f]  ;;  %s4287_s26 = smov 120   ;;  %s4288_s27 = smov 112  }
   0x6   :  { %3877 = vmatprep.subr.mxu1 %v135_v29 }
   0x7   :  { %40 = vadd.xlane.f32.xlu0 %v39_v6  ;;  %46 = vadd.xlane.f32.xlu1 %v45_v7  ;;  %v127_v4 = vsub.s32 1, %v4385_v60 }
   0x8   :  { %3878 = vmatpush3.msra.mxu1 %v135_v29 }
   0x9   :  { %3879 = vmatprep.subr.mxu1 %v134_v30 }
   0xa   :  { %3880 = vmatpush3.msra.mxu1 %v134_v30 }
   0xb   :  { %3881 = vmatprep.subr.mxu1 %v133_v31 }
   0xc   :  { %3882 = vmatpush3.msra.mxu1 %v133_v31  ;;  %v4284_v31 = vmov 0.0  }
   0xd   :  { %3889 = vmatprep.subr.mxu1 %v4284_v31  ;;  %3904 = vmatprep.subr.mxu0 %v4284_v31 }
   0xe   :  { %3906 = vmatprep.mubr.msk.f32.mxu0 %vm4285_vm9, %v4284_v31 }
  0x8c   :  { %v38_v8 = vpop.xlane.xlu0 %37  ;;  %v44_v9 = vpop.xlane.xlu1 %43 }
  0x8d   :  { %v49_v10 = vmul.f32 0.03125, %v38_v8  ;;  %v51_v11 = vmul.f32 0.03125, %v44_v9  ;;  %v128_v8 = vrot.slane %v34_v3, %v127_v4 }
  0x8f   :  { %v4353_v12 = vsub.f32 %v30_v0, %v49_v10  ;;  %v4355_v13 = vsub.f32 %v32_v1, %v51_v11 }
  0x90   :  { %v41_v14 = vpop.xlane.xlu0 %40  ;;  %v47_v15 = vpop.xlane.xlu1 %46 }
  0x91   :  { %v50_v16 = vmul.f32 0.03125, %v41_v14  ;;  %v52_v17 = vmul.f32 0.03125, %v47_v15  ;;  %v57_v18 = vmul.f32 %v4353_v12, %v4353_v12  ;;  %v59_v19 = vmul.f32 %v4355_v13, %v4355_v13 }
  0x93   :  { %v4361_v20 = vsub.f32 %v31_v2, %v50_v16  ;;  %v4363_v21 = vsub.f32 %v33_v5, %v52_v17  ;;  %v61_v22 = vsel %vm35_vm0, %v57_v18, 0.0  ;;  %v67_v23 = vsel %vm35_vm0, %v59_v19, 0.0 }
  0x94   :  { %62 = vadd.xlane.f32.xlu0 %v61_v22  ;;  %v119_v2 = vsub.s32 0, %v4385_v60 }
  0x95   :  { %v58_v24 = vmul.f32 %v4361_v20, %v4361_v20  ;;  %v60_v25 = vmul.f32 %v4363_v21, %v4363_v21 }
  0x96   :  { %v120_v5 = vrot.slane %v34_v3, %v119_v2 }
  0x97   :  { %v64_v26 = vsel %vm35_vm0, %v58_v24, 0.0  ;;  %v70_v27 = vsel %vm35_vm0, %v60_v25, 0.0 }
  0x98   :  { %68 = vadd.xlane.f32.xlu0 %v67_v23  ;;  %65 = vadd.xlane.f32.xlu1 %v64_v26 }
  0x9c   :  { %71 = vadd.xlane.f32.xlu1 %v70_v27 }
 0x11d   :  { %v63_v32 = vpop.xlane.xlu0 %62 }
 0x11e   :  { %v73_v33 = vmul.f32 0.03125, %v63_v32 }
 0x120   :  { %v77_v34 = vadd.f32 1e-12, %v73_v33 }
 0x121   :  { %v66_v35 = vpop.xlane.xlu1 %65  ;;  %v69_v36 = vpop.xlane.xlu0 %68 }
 0x122   :  { %4143 = vrsqrt.f32 %v77_v34  ;;  %v74_v37 = vmul.f32 0.03125, %v66_v35  ;;  %v75_v38 = vmul.f32 0.03125, %v69_v36  ;;  %vm83_vm1 = vcmp.eq.f32.partialorder %v77_v34, inf }
 0x123   :  { %v86_v46 = vand.u32 2147483648, %v77_v34  ;;  %vm85_vm2 = vcmp.eq.f32.partialorder %v77_v34, 0.0 }
 0x124   :  { %v78_v39 = vadd.f32 1e-12, %v74_v37  ;;  %v79_v40 = vadd.f32 1e-12, %v75_v38 }
 0x125   :  { %v72_v41 = vpop.xlane.xlu1 %71 }
 0x126   :  { %v76_v42 = vmul.f32 0.03125, %v72_v41  ;;  %4145 = vrsqrt.f32 %v78_v39  ;;  %vm90_vm3 = vcmp.eq.f32.partialorder %v78_v39, inf  ;;  %v93_v53 = vand.u32 2147483648, %v78_v39 }
 0x127   :  { %4147 = vrsqrt.f32 %v79_v40  ;;  %vm92_vm4 = vcmp.eq.f32.partialorder %v78_v39, 0.0  ;;  %vm97_vm5 = vcmp.eq.f32.partialorder %v79_v40, inf  ;;  %v100_v56 = vand.u32 2147483648, %v79_v40 }
 0x128   :  { %v80_v43 = vadd.f32 1e-12, %v76_v42  ;;  %vm99_vm6 = vcmp.eq.f32.partialorder %v79_v40, 0.0 }
 0x12a   :  { %4149 = vrsqrt.f32 %v80_v43  ;;  %vm104_vm7 = vcmp.eq.f32.partialorder %v80_v43, inf  ;;  %v107_v63 = vand.u32 2147483648, %v80_v43  ;;  %vm106_vm8 = vcmp.eq.f32.partialorder %v80_v43, 0.0 }
 0x12f   :  { %v4144_v44 = vpop.eup %4143 }
 0x130   :  { %v82_v45 = vmul.f32 %v4144_v44, %v77_v34 }
 0x132   :  { %v84_v47 = vsel %vm83_vm1, %v77_v34, %v82_v45 }
 0x133   :  { %v87_v48 = vsel %vm85_vm2, %v86_v46, %v84_v47  ;;  %v4146_v49 = vpop.eup %4145 }
 0x134   :  { %4151 = vrcp.f32 %v87_v48  ;;  %v4148_v51 = vpop.eup %4147  ;;  %v89_v52 = vmul.f32 %v4146_v49, %v78_v39 }
 0x135   :  { %v96_v54 = vmul.f32 %v4148_v51, %v79_v40 }
 0x136   :  { %v91_v55 = vsel %vm90_vm3, %v78_v39, %v89_v52 }
 0x137   :  { %v4150_v57 = vpop.eup %4149  ;;  %v94_v58 = vsel %vm92_vm4, %v93_v53, %v91_v55  ;;  %v98_v59 = vsel %vm97_vm5, %v79_v40, %v96_v54 }
 0x138   :  { %4153 = vrcp.f32 %v94_v58  ;;  %v101_v61 = vsel %vm99_vm6, %v100_v56, %v98_v59  ;;  %v103_v62 = vmul.f32 %v4150_v57, %v80_v43 }
 0x139   :  { %4155 = vrcp.f32 %v101_v61 }
 0x13a   :  { %v105_v0 = vsel %vm104_vm7, %v80_v43, %v103_v62 }
 0x13b   :  { %v108_v1 = vsel %vm106_vm8, %v107_v63, %v105_v0 }
 0x13c   :  { %4157 = vrcp.f32 %v108_v1 }
 0x141   :  { %v4152_v6 = vpop.eup %4151 }
 0x142   :  { %v110_v7 = vmul.f32 %v4152_v6, %v4353_v12 }
 0x144   :  { %v121_v9 = vmul.f32 %v120_v5, %v110_v7 }
 0x145   :  { %v4154_v10 = vpop.eup %4153 }
 0x146   :  { %v129_v11 = vadd.f32 %v128_v8, %v121_v9  ;;  %v4156_v14 = vpop.eup %4155  ;;  %v112_v15 = vmul.f32 %v4154_v10, %v4361_v20  ;;  %v3674_v20 = vld [vmem:[%s4967_s2] ss:$0 sm:$0xff]  ;;  %s4286_s2 = smov 56  }
 0x147   :  { %v114_v16 = vmul.f32 %v4156_v14, %v4355_v13 }
 0x148   :  { %3883 = vmatprep.mubr.msk.f32.mxu1 %vm35_vm0, %v129_v11  ;;  %v122_v17 = vmul.f32 %v120_v5, %v112_v15 }
 0x149   :  { %v4158_v18 = vpop.eup %4157  ;;  %v123_v19 = vmul.f32 %v120_v5, %v114_v16 }
 0x14a   :  { %v130_v22 = vadd.f32 %v128_v8, %v122_v17  ;;  %v116_v23 = vmul.f32 %v4158_v18, %v4363_v21 }
 0x14b   :  { %v131_v24 = vadd.f32 %v128_v8, %v123_v19 }
 0x14c   :  { %3884 = vmatmul.mubr.msk.f32.vlgmr.msra.gmra.mxu1 %vm35_vm0, %v130_v22  ;;  %v124_v12 = vmul.f32 %v120_v5, %v116_v23 }
 0x14d   :  { %3886 = vmatprep.mubr.msk.f32.mxu1 %vm35_vm0, %v131_v24 }
 0x14e   :  { %v132_v25 = vadd.f32 %v128_v8, %v124_v12 }
 0x150   :  { %3887 = vmatmul.mubr.msk.f32.gmra.mxu1 %vm35_vm0, %v132_v25 }
 0x151   :  { %3891 = vmatprep.mubr.msk.f32.mxu1 %vm4285_vm9, %v4284_v31 }
 0x20c   :  { %v3885_v13 = vpop.f32.mrf.mxu1 }
 0x20d   :  { %v4403_v26 = vadd.f32 %v3885_v13, %v3674_v20 }
 0x20e   :  { %v222_v27 = vpop.f32.mrf.mxu1 }
 0x20f   :  { %v223_v28 = vadd.f32 %v3674_v20, %v222_v27  ;;  %247 = vrot.lane.b32.xlu1 %v4403_v26, %s4282_s24 }
 0x210   :  { %v3888_v21 = vpop.f32.mrf.mxu1 }
 0x211   :  { %245 = vrot.lane.b32.xlu0 %v223_v28, %s4282_s24  ;;  %v4411_v32 = vadd.f32 %v3888_v21, %v3674_v20 }
 0x212   :  { %v232_v29 = vpop.f32.mrf.mxu1 }
 0x213   :  { %v4406_v30 = vadd.f32 %v3674_v20, %v232_v29 }
 0x215   :  { %253 = vrot.lane.b32.xlu0 %v223_v28, %s4283_s25  ;;  %249 = vrot.lane.b32.xlu1 %v4406_v30, %s4282_s24 }
 0x219   :  { %257 = vrot.lane.b32.xlu0 %v4406_v30, %s4283_s25  ;;  %251 = vrot.lane.b32.xlu1 %v4411_v32, %s4282_s24 }
 0x21d   :  { %261 = vrot.lane.b32.xlu0 %v223_v28, %s4286_s2  ;;  %255 = vrot.lane.b32.xlu1 %v4403_v26, %s4283_s25 }
 0x221   :  { %265 = vrot.lane.b32.xlu0 %v4406_v30, %s4286_s2  ;;  %259 = vrot.lane.b32.xlu1 %v4411_v32, %s4283_s25 }
 0x225   :  { %269 = vrot.lane.b32.xlu0 %v223_v28, %s4287_s26  ;;  %263 = vrot.lane.b32.xlu1 %v4403_v26, %s4286_s2 }
 0x229   :  { %422 = vrot.lane.b32.xlu0 %v4406_v30, %s4287_s26  ;;  %267 = vrot.lane.b32.xlu1 %v4411_v32, %s4286_s2 }
 0x22d   :  { %346 = vrot.lane.b32.xlu1 %v4403_v26, %s4287_s26 }
 0x231   :  { %498 = vrot.lane.b32.xlu1 %v4411_v32, %s4287_s26 }
 0x281   :  { %v4431_v33 = vpop.permute.xlu1 %247 }
 0x282   :  { %650 = vrot.lane.b32.xlu1 %v4431_v33, %s4287_s26 }
 0x283   :  { %v4435_v34 = vpop.permute.xlu0 %245 }
 0x284   :  { %574 = vrot.lane.b32.xlu0 %v4435_v34, %s4287_s26 }
 0x287   :  { %v4439_v35 = vpop.permute.xlu1 %249  ;;  %v4441_v36 = vpop.permute.xlu0 %253 }
 0x288   :  { %726 = vrot.lane.b32.xlu0 %v4439_v35, %s4287_s26 }
 0x28b   :  { %v4445_v37 = vpop.permute.xlu1 %251  ;;  %v4447_v38 = vpop.permute.xlu0 %257 }
 0x28c   :  { %802 = vrot.lane.b32.xlu1 %v4445_v37, %s4287_s26  ;;  %878 = vrot.lane.b32.xlu0 %v4441_v36, %s4287_s26 }
 0x28f   :  { %v4453_v39 = vpop.permute.xlu1 %255  ;;  %v4455_v40 = vpop.permute.xlu0 %261 }
 0x290   :  { %954 = vrot.lane.b32.xlu1 %v4453_v39, %s4287_s26  ;;  %1030 = vrot.lane.b32.xlu0 %v4447_v38, %s4287_s26 }
 0x293   :  { %v4461_v41 = vpop.permute.xlu1 %259  ;;  %v4463_v42 = vpop.permute.xlu0 %265 }
 0x294   :  { %1106 = vrot.lane.b32.xlu1 %v4461_v41, %s4287_s26  ;;  %1182 = vrot.lane.b32.xlu0 %v4455_v40, %s4287_s26 }
 0x297   :  { %v4469_v43 = vpop.permute.xlu1 %263  ;;  %v270_v44 = vpop.permute.xlu0 %269 }
 0x298   :  { %1258 = vrot.lane.b32.xlu1 %v4469_v43, %s4287_s26  ;;  %1334 = vrot.lane.b32.xlu0 %v4463_v42, %s4287_s26 }
 0x299   :  { %3890 = vmatpush3.xpose.msk.msra.mxu1 %vm271_vm10, %v270_v44 }
 0x29a   :  { %3894 = vmatprep.subr.mxu1 %v4284_v31 }
 0x29b   :  { %v4477_v45 = vpop.permute.xlu1 %267  ;;  %v423_v48 = vpop.permute.xlu0 %422 }
 0x29c   :  { %3892 = vmatmul.mubr.msk.f32.vlgmr.msra.gmra.mxu1 %vm271_vm10, %v223_v28  ;;  %1410 = vrot.lane.b32.xlu1 %v4477_v45, %s4287_s26 }
 0x29d   :  { %1662 = vrot.lane.b32.xlu0 %v223_v28, %s4288_s27  ;;  %3896 = vmatprep.mubr.msk.f32.mxu1 %vm4285_vm9, %v4284_v31 }
 0x29f   :  { %v347_v46 = vpop.permute.xlu1 %346 }
 0x2a0   :  { %1738 = vrot.lane.b32.xlu1 %v4403_v26, %s4288_s27  ;;  %3895 = vmatpush3.xpose.msk.msra.mxu1 %vm271_vm10, %v347_v46 }
 0x2a1   :  { %1966 = vrot.lane.b32.xlu0 %v4435_v34, %s4288_s27  ;;  %3899 = vmatprep.subr.mxu1 %v4284_v31 }
 0x2a3   :  { %v499_v47 = vpop.permute.xlu1 %498  ;;  %3897 = vmatmul.mubr.msk.f32.vlgmr.msra.gmra.mxu1 %vm271_vm10, %v4403_v26 }
 0x2a4   :  { %1814 = vrot.lane.b32.xlu1 %v4406_v30, %s4288_s27  ;;  %3905 = vmatpush3.xpose.msk.msra.mxu0 %vm271_vm10, %v499_v47 }
 0x2a5   :  { %2270 = vrot.lane.b32.xlu0 %v4441_v36, %s4288_s27  ;;  %3900 = vmatpush3.xpose.msk.msra.mxu1 %vm271_vm10, %v423_v48 }
 0x2a6   :  { %3901 = vmatprep.mubr.msk.f32.mxu1 %vm4285_vm9, %v4284_v31  ;;  %3914 = vmatprep.subr.mxu0 %v4284_v31 }
 0x2a7   :  { %3907 = vmatmul.mubr.msk.f32.vlgmr.msra.gmra.mxu0 %vm271_vm10, %v4411_v32  ;;  %3909 = vmatprep.subr.mxu1 %v4284_v31 }
 0x2a8   :  { %3902 = vmatmul.mubr.msk.f32.vlgmr.msra.gmra.mxu1 %vm271_vm10, %v4406_v30  ;;  %1890 = vrot.lane.b32.xlu1 %v4411_v32, %s4288_s27 }
 0x2a9   :  { %2574 = vrot.lane.b32.xlu0 %v4455_v40, %s4288_s27  ;;  %3916 = vmatprep.mubr.msk.f32.mxu0 %vm4285_vm9, %v4284_v31 }
 0x2aa   :  { %3911 = vmatprep.mubr.msk.f32.mxu1 %vm4285_vm9, %v4284_v31 }
 0x2ac   :  { %2042 = vrot.lane.b32.xlu1 %v4431_v33, %s4288_s27 }
 0x2ad   :  { %2118 = vrot.lane.b32.xlu0 %v4439_v35, %s4288_s27 }
 0x2b0   :  { %2194 = vrot.lane.b32.xlu1 %v4445_v37, %s4288_s27 }
 0x2b1   :  { %2422 = vrot.lane.b32.xlu0 %v4447_v38, %s4288_s27 }
 0x2b4   :  { %2346 = vrot.lane.b32.xlu1 %v4453_v39, %s4288_s27 }
 0x2b8   :  { %2498 = vrot.lane.b32.xlu1 %v4461_v41, %s4288_s27 }
 0x2bc   :  { %2650 = vrot.lane.b32.xlu1 %v4469_v43, %s4288_s27 }
 0x2f4   :  { %v651_v49 = vpop.permute.xlu1 %650 }
 0x2f5   :  { %3915 = vmatpush3.xpose.msk.msra.mxu0 %vm271_vm10, %v651_v49 }
 0x2f6   :  { %v575_v50 = vpop.permute.xlu0 %574  ;;  %3924 = vmatprep.subr.mxu0 %v4284_v31 }
 0x2f7   :  { %3910 = vmatpush3.xpose.msk.msra.mxu1 %vm271_vm10, %v575_v50 }
 0x2f8   :  { %3917 = vmatmul.mubr.msk.f32.vlgmr.msra.gmra.mxu0 %vm271_vm10, %v4431_v33  ;;  %3919 = vmatprep.subr.mxu1 %v4284_v31 }
 0x2f9   :  { %3926 = vmatprep.mubr.msk.f32.mxu0 %vm4285_vm9, %v4284_v31 }
 0x2fa   :  { %3912 = vmatmul.mubr.msk.f32.vlgmr.msra.gmra.mxu1 %vm271_vm10, %v4435_v34  ;;  %v727_v51 = vpop.permute.xlu0 %726 }
 0x2fb   :  { %3920 = vmatpush3.xpose.msk.msra.mxu1 %vm271_vm10, %v727_v51  ;;  %3921 = vmatprep.mubr.msk.f32.mxu1 %vm4285_vm9, %v4284_v31 }
 0x2fc   :  { %3929 = vmatprep.subr.mxu1 %v4284_v31 }
 0x2fe   :  { %v803_v52 = vpop.permute.xlu1 %802  ;;  %3922 = vmatmul.mubr.msk.f32.vlgmr.msra.gmra.mxu1 %vm271_vm10, %v4439_v35  ;;  %v879_v53 = vpop.permute.xlu0 %878 }
 0x2ff   :  { %3925 = vmatpush3.xpose.msk.msra.mxu0 %vm271_vm10, %v803_v52  ;;  %3930 = vmatpush3.xpose.msk.msra.mxu1 %vm271_vm10, %v879_v53 }
 0x300   :  { %3931 = vmatprep.mubr.msk.f32.mxu1 %vm4285_vm9, %v4284_v31  ;;  %3934 = vmatprep.subr.mxu0 %v4284_v31 }
 0x301   :  { %3939 = vmatprep.subr.mxu1 %v4284_v31 }
 0x302   :  { %3927 = vmatmul.mubr.msk.f32.vlgmr.msra.gmra.mxu0 %vm271_vm10, %v4445_v37  ;;  %v955_v54 = vpop.permute.xlu1 %954  ;;  %3932 = vmatmul.mubr.msk.f32.vlgmr.msra.gmra.mxu1 %vm271_vm10, %v4441_v36  ;;  %v1031_v55 = vpop.permute.xlu0 %1030 }
 0x303   :  { %3935 = vmatpush3.xpose.msk.msra.mxu0 %vm271_vm10, %v955_v54  ;;  %3940 = vmatpush3.xpose.msk.msra.mxu1 %vm271_vm10, %v1031_v55 }
 0x304   :  { %3936 = vmatprep.mubr.msk.f32.mxu0 %vm4285_vm9, %v4284_v31  ;;  %3941 = vmatprep.mubr.msk.f32.mxu1 %vm4285_vm9, %v4284_v31 }
 0x305   :  { %3944 = vmatprep.subr.mxu0 %v4284_v31  ;;  %3949 = vmatprep.subr.mxu1 %v4284_v31 }
 0x306   :  { %3937 = vmatmul.mubr.msk.f32.vlgmr.msra.gmra.mxu0 %vm271_vm10, %v4453_v39  ;;  %v1107_v56 = vpop.permute.xlu1 %1106  ;;  %3942 = vmatmul.mubr.msk.f32.vlgmr.msra.gmra.mxu1 %vm271_vm10, %v4447_v38  ;;  %v1183_v57 = vpop.permute.xlu0 %1182 }
 0x307   :  { %3945 = vmatpush3.xpose.msk.msra.mxu0 %vm271_vm10, %v1107_v56  ;;  %3950 = vmatpush3.xpose.msk.msra.mxu1 %vm271_vm10, %v1183_v57 }
 0x308   :  { %3946 = vmatprep.mubr.msk.f32.mxu0 %vm4285_vm9, %v4284_v31  ;;  %3951 = vmatprep.mubr.msk.f32.mxu1 %vm4285_vm9, %v4284_v31 }
 0x309   :  { %3954 = vmatprep.subr.mxu0 %v4284_v31  ;;  %3959 = vmatprep.subr.mxu1 %v4284_v31 }
 0x30a   :  { %3947 = vmatmul.mubr.msk.f32.vlgmr.msra.gmra.mxu0 %vm271_vm10, %v4461_v41  ;;  %v1259_v58 = vpop.permute.xlu1 %1258  ;;  %3952 = vmatmul.mubr.msk.f32.vlgmr.msra.gmra.mxu1 %vm271_vm10, %v4455_v40  ;;  %v1335_v59 = vpop.permute.xlu0 %1334 }
 0x30b   :  { %3955 = vmatpush3.xpose.msk.msra.mxu0 %vm271_vm10, %v1259_v58  ;;  %3960 = vmatpush3.xpose.msk.msra.mxu1 %vm271_vm10, %v1335_v59 }
 0x30c   :  { %3956 = vmatprep.mubr.msk.f32.mxu0 %vm4285_vm9, %v4284_v31  ;;  %3961 = vmatprep.mubr.msk.f32.mxu1 %vm4285_vm9, %v4284_v31 }
 0x30d   :  { %3964 = vmatprep.subr.mxu0 %v4284_v31  ;;  %3969 = vmatprep.subr.mxu1 %v4284_v31 }
 0x30e   :  { %3957 = vmatmul.mubr.msk.f32.vlgmr.msra.gmra.mxu0 %vm271_vm10, %v4469_v43  ;;  %v1411_v61 = vpop.permute.xlu1 %1410  ;;  %3962 = vmatmul.mubr.msk.f32.vlgmr.msra.gmra.mxu1 %vm271_vm10, %v4463_v42 }
 0x30f   :  { %v1663_v62 = vpop.permute.xlu0 %1662  ;;  %3965 = vmatpush3.xpose.msk.msra.mxu0 %vm271_vm10, %v1411_v61  ;;  %3966 = vmatprep.mubr.msk.f32.mxu0 %vm4285_vm9, %v4284_v31 }
 0x310   :  { %3970 = vmatpush3.msra.mxu1 %v1663_v62  ;;  %3974 = vmatprep.subr.mxu0 %v4284_v31 }
 0x311   :  { %3971 = vmatprep.mubr.msk.f32.mxu1 %vm4285_vm9, %v4284_v31  ;;  %3979 = vmatprep.subr.mxu1 %v4284_v31 }
 0x312   :  { %3967 = vmatmul.mubr.msk.f32.vlgmr.msra.gmra.mxu0 %vm271_vm10, %v4477_v45  ;;  %v1739_v63 = vpop.permute.xlu1 %1738 }
 0x313   :  { %3975 = vmatpush3.msra.mxu0 %v1739_v63  ;;  %3976 = vmatprep.mubr.msk.f32.mxu0 %vm4285_vm9, %v4284_v31  ;;  %v4651_v37 = vpop.permute.xlu0 %1966 }
 0x314   :  { %3984 = vmatprep.subr.mxu0 %v4284_v31 }
 0x316   :  { %v1815_v28 = vpop.permute.xlu1 %1814 }
 0x317   :  { %v4665_v51 = vpop.permute.xlu0 %2270 }
 0x31a   :  { %v1891_v38 = vpop.permute.xlu1 %1890 }
 0x31b   :  { %v4671_v56 = vpop.permute.xlu0 %2574 }
 0x31e   :  { %v2043_v52 = vpop.permute.xlu1 %2042 }
 0x31f   :  { %v4675_v58 = vpop.permute.xlu0 %2118 }
 0x322   :  { %v4673_v57 = vpop.permute.xlu1 %2194 }
 0x323   :  { %v4679_v61 = vpop.permute.xlu0 %2422 }
 0x326   :  { %v4677_v59 = vpop.permute.xlu1 %2346 }
 0x32a   :  { %v4681_v62 = vpop.permute.xlu1 %2498 }
 0x35c   :  { %v4603_v0 = vpop.f32.mrf.mxu1 }
 0x35d   :  { %v1486_v1 = vsel %vm271_vm10, %v4603_v0, -inf }
 0x35e   :  { %1487 = vmax.xlane.f32.xlu0 %v1486_v1  ;;  %v3893_v2 = vpop.f32.mrf.mxu1 }
 0x35f   :  { %v4688_v2 = vpop.permute.xlu1 %2650 }
 0x363   :  { %v4607_v3 = vpop.f32.mrf.mxu1 }
 0x364   :  { %v1489_v4 = vsel %vm271_vm10, %v4607_v3, -inf }
 0x365   :  { %1490 = vmax.xlane.f32.xlu1 %v1489_v4  ;;  %v3898_v5 = vpop.f32.mrf.mxu1 }
 0x367   :  { %v4611_v6 = vpop.f32.mrf.mxu0 }
 0x368   :  { %v4613_v7 = vpop.f32.mrf.mxu1  ;;  %v1495_v8 = vsel %vm271_vm10, %v4611_v6, -inf }
 0x369   :  { %v3908_v9 = vpop.f32.mrf.mxu0  ;;  %1496 = vmax.xlane.f32.xlu0 %v1495_v8  ;;  %v1492_v11 = vsel %vm271_vm10, %v4613_v7, -inf }
 0x36a   :  { %v3903_v10 = vpop.f32.mrf.mxu1 }
 0x36d   :  { %1493 = vmax.xlane.f32.xlu0 %v1492_v11 }
 0x3b8   :  { %v4619_v14 = vpop.f32.mrf.mxu0 }
 0x3b9   :  { %v1501_v15 = vsel %vm271_vm10, %v4619_v14, -inf }
 0x3ba   :  { %v3918_v16 = vpop.f32.mrf.mxu0  ;;  %1502 = vmax.xlane.f32.xlu1 %v1501_v15  ;;  %v4623_v17 = vpop.f32.mrf.mxu1 }
 0x3bb   :  { %v1498_v18 = vsel %vm271_vm10, %v4623_v17, -inf }
 0x3bc   :  { %1499 = vmax.xlane.f32.xlu0 %v1498_v18  ;;  %v3913_v19 = vpop.f32.mrf.mxu1 }
 0x3be   :  { %v4627_v22 = vpop.f32.mrf.mxu1 }
 0x3bf   :  { %v1504_v23 = vsel %vm271_vm10, %v4627_v22, -inf }
 0x3c0   :  { %1505 = vmax.xlane.f32.xlu0 %v1504_v23  ;;  %v3923_v24 = vpop.f32.mrf.mxu1 }
 0x3c2   :  { %v4631_v12 = vpop.f32.mrf.mxu0  ;;  %v4633_v25 = vpop.f32.mrf.mxu1 }
 0x3c3   :  { %v1507_v20 = vsel %vm271_vm10, %v4631_v12, -inf  ;;  %v1510_v13 = vsel %vm271_vm10, %v4633_v25, -inf }
 0x3c4   :  { %v3928_v26 = vpop.f32.mrf.mxu0  ;;  %1508 = vmax.xlane.f32.xlu1 %v1507_v20  ;;  %1511 = vmax.xlane.f32.xlu0 %v1510_v13  ;;  %v3933_v27 = vpop.f32.mrf.mxu1 }
 0x3c6   :  { %v4639_v21 = vpop.f32.mrf.mxu0  ;;  %v4641_v29 = vpop.f32.mrf.mxu1 }
 0x3c7   :  { %v1513_v30 = vsel %vm271_vm10, %v4639_v21, -inf  ;;  %v1516_v32 = vsel %vm271_vm10, %v4641_v29, -inf }
 0x3c8   :  { %v3938_v33 = vpop.f32.mrf.mxu0  ;;  %1514 = vmax.xlane.f32.xlu1 %v1513_v30  ;;  %1517 = vmax.xlane.f32.xlu0 %v1516_v32  ;;  %v3943_v34 = vpop.f32.mrf.mxu1 }
 0x3ca   :  { %v4647_v35 = vpop.f32.mrf.mxu0  ;;  %v4649_v36 = vpop.f32.mrf.mxu1 }
 0x3cb   :  { %v1519_v39 = vsel %vm271_vm10, %v4647_v35, -inf  ;;  %v1522_v40 = vsel %vm271_vm10, %v4649_v36, -inf }
 0x3cc   :  { %v3948_v41 = vpop.f32.mrf.mxu0  ;;  %1520 = vmax.xlane.f32.xlu1 %v1519_v39  ;;  %1523 = vmax.xlane.f32.xlu0 %v1522_v40  ;;  %v3953_v43 = vpop.f32.mrf.mxu1 }
 0x3ce   :  { %v4657_v44 = vpop.f32.mrf.mxu0  ;;  %v4659_v46 = vpop.f32.mrf.mxu1 }
 0x3cf   :  { %v1525_v47 = vsel %vm271_vm10, %v4657_v44, -inf  ;;  %v1528_v48 = vsel %vm271_vm10, %v4659_v46, -inf }
 0x3d0   :  { %v3958_v49 = vpop.f32.mrf.mxu0  ;;  %1526 = vmax.xlane.f32.xlu1 %v1525_v47  ;;  %1529 = vmax.xlane.f32.xlu0 %v1528_v48  ;;  %v3963_v50 = vpop.f32.mrf.mxu1 }
 0x3d2   :  { %v4667_v53 = vpop.f32.mrf.mxu0 }
 0x3d3   :  { %v1531_v54 = vsel %vm271_vm10, %v4667_v53, -inf }
 0x3d4   :  { %v3968_v55 = vpop.f32.mrf.mxu0  ;;  %1532 = vmax.xlane.f32.xlu1 %v1531_v54 }
 0x3e5   :  { %2802 = vrot.lane.b32.xlu1 %v4477_v45, %s4288_s27 }
 0x3e6   :  { %2726 = vrot.lane.b32.xlu0 %v4463_v42, %s4288_s27 }
 0x3e7   :  { %v1488_v63 = vpop.xlane.xlu0 %1487 }
 0x3e8   :  { %v1534_v1 = vsub.f32 %v4603_v0, %v1488_v63 }
 0x3ea   :  { %v1550_v4 = vmul.f32 1.442695, %v1534_v1 }
 0x3ec   :  { %4159 = vpow2.f32 %v1550_v4 }
 0x3ee   :  { %v1491_v5 = vpop.xlane.xlu1 %1490 }
 0x3ef   :  { %v1535_v8 = vsub.f32 %v4607_v3, %v1491_v5 }
 0x3f1   :  { %v1552_v9 = vmul.f32 1.442695, %v1535_v8 }
 0x3f2   :  { %v1497_v10 = vpop.xlane.xlu0 %1496 }
 0x3f3   :  { %4161 = vpow2.f32 %v1552_v9  ;;  %v1537_v11 = vsub.f32 %v4611_v6, %v1497_v10 }
 0x3f5   :  { %v1556_v15 = vmul.f32 1.442695, %v1537_v11 }
 0x3f6   :  { %v1494_v45 = vpop.xlane.xlu0 %1493 }
 0x3f7   :  { %4163 = vpow2.f32 %v1556_v15  ;;  %v1536_v42 = vsub.f32 %v4613_v7, %v1494_v45 }
 0x3f9   :  { %v4160_v16 = vpop.eup %4159  ;;  %v1554_v18 = vmul.f32 1.442695, %v1536_v42 }
 0x3fa   :  { %3972 = vmatmul.mubr.msk.f32.vlgmr.msra.gmra.mxu1 %vm271_vm10, %v4160_v16  ;;  %v1582_v6 = vsel %vm271_vm10, %v4160_v16, 0.0 }
 0x3fb   :  { %4165 = vpow2.f32 %v1554_v18  ;;  %3980 = vmatpush3.msra.mxu1 %v1815_v28  ;;  %3981 = vmatprep.mubr.msk.f32.mxu1 %vm4285_vm9, %v4284_v31 }
 0x3fc   :  { %3989 = vmatprep.subr.mxu1 %v4284_v31 }
 0x400   :  { %v4162_v0 = vpop.eup %4161 }
 0x401   :  { %3977 = vmatmul.mubr.msk.f32.vlgmr.msra.gmra.mxu0 %vm271_vm10, %v4162_v0  ;;  %v1585_v19 = vsel %vm271_vm10, %v4162_v0, 0.0 }
 0x402   :  { %3985 = vmatpush3.msra.mxu0 %v1891_v38  ;;  %3986 = vmatprep.mubr.msk.f32.mxu0 %vm4285_vm9, %v4284_v31 }
 0x403   :  { %3994 = vmatprep.subr.mxu0 %v4284_v31 }
 0x404   :  { %v4164_v3 = vpop.eup %4163 }
 0x405   :  { %1583 = vadd.xlane.f32.xlu0 %v1582_v6  ;;  %3987 = vmatmul.mubr.msk.f32.vlgmr.msra.gmra.mxu0 %vm271_vm10, %v4164_v3  ;;  %v1591_v23 = vsel %vm271_vm10, %v4164_v3, 0.0 }
 0x406   :  { %3995 = vmatpush3.msra.mxu0 %v2043_v52  ;;  %3996 = vmatprep.mubr.msk.f32.mxu0 %vm4285_vm9, %v4284_v31 }
 0x407   :  { %4004 = vmatprep.subr.mxu0 %v4284_v31 }
 0x408   :  { %v4166_v7 = vpop.eup %4165 }
 0x409   :  { %1586 = vadd.xlane.f32.xlu0 %v1585_v19  ;;  %1592 = vadd.xlane.f32.xlu1 %v1591_v23  ;;  %v1588_v24 = vsel %vm271_vm10, %v4166_v7, 0.0 }
 0x40a   :  { %3982 = vmatmul.mubr.msk.f32.vlgmr.msra.gmra.mxu1 %vm271_vm10, %v4166_v7 }
 0x40b   :  { %3990 = vmatpush3.msra.mxu1 %v4651_v37  ;;  %3991 = vmatprep.mubr.msk.f32.mxu1 %vm4285_vm9, %v4284_v31 }
 0x40c   :  { %3999 = vmatprep.subr.mxu1 %v4284_v31 }
 0x40d   :  { %1589 = vadd.xlane.f32.xlu0 %v1588_v24 }
 0x443   :  { %v1503_v20 = vpop.xlane.xlu1 %1502 }
 0x444   :  { %v1539_v13 = vsub.f32 %v4619_v14, %v1503_v20 }
 0x445   :  { %v1500_v26 = vpop.xlane.xlu0 %1499 }
 0x446   :  { %v1560_v27 = vmul.f32 1.442695, %v1539_v13  ;;  %v1538_v28 = vsub.f32 %v4623_v17, %v1500_v26  ;;  %v3727_v13 = vld [vmem:[%s4970_s5 + $0x8] sm:$0xff]  ;;  %v4795_v26 = vld [vmem:[%s4970_s5 + $0x10] sm:$0xff] }
 0x448   :  { %4167 = vpow2.f32 %v1560_v27  ;;  %v1558_v30 = vmul.f32 1.442695, %v1538_v28 }
 0x449   :  { %v1506_v32 = vpop.xlane.xlu0 %1505 }
 0x44a   :  { %4169 = vpow2.f32 %v1558_v30  ;;  %v1540_v33 = vsub.f32 %v4627_v22, %v1506_v32 }
 0x44c   :  { %v1562_v34 = vmul.f32 1.442695, %v1540_v33 }
 0x44d   :  { %v1509_v37 = vpop.xlane.xlu1 %1508  ;;  %v1512_v38 = vpop.xlane.xlu0 %1511 }
 0x44e   :  { %4171 = vpow2.f32 %v1562_v34  ;;  %v1541_v39 = vsub.f32 %v4631_v12, %v1509_v37  ;;  %v1542_v40 = vsub.f32 %v4633_v25, %v1512_v38 }
 0x450   :  { %v1564_v41 = vmul.f32 1.442695, %v1541_v39  ;;  %v1566_v14 = vmul.f32 1.442695, %v1542_v40 }
 0x451   :  { %v1515_v43 = vpop.xlane.xlu1 %1514  ;;  %v1518_v47 = vpop.xlane.xlu0 %1517 }
 0x452   :  { %4173 = vpow2.f32 %v1564_v41  ;;  %v1543_v17 = vsub.f32 %v4639_v21, %v1515_v43  ;;  %v1544_v48 = vsub.f32 %v4641_v29, %v1518_v47 }
 0x453   :  { %4175 = vpow2.f32 %v1566_v14 }
 0x454   :  { %v1568_v49 = vmul.f32 1.442695, %v1543_v17  ;;  %v1570_v22 = vmul.f32 1.442695, %v1544_v48 }
 0x455   :  { %v4168_v50 = vpop.eup %4167  ;;  %v1521_v52 = vpop.xlane.xlu1 %1520 }
 0x456   :  { %v1524_v54 = vpop.xlane.xlu0 %1523  ;;  %4177 = vpow2.f32 %v1568_v49  ;;  %v1545_v12 = vsub.f32 %v4647_v35, %v1521_v52  ;;  %3997 = vmatmul.mubr.msk.f32.vlgmr.msra.gmra.mxu0 %vm271_vm10, %v4168_v50  ;;  %v1597_v55 = vsel %vm271_vm10, %v4168_v50, 0.0 }
 0x457   :  { %v1546_v25 = vsub.f32 %v4649_v36, %v1524_v54  ;;  %v4170_v63 = vpop.eup %4169  ;;  %4179 = vpow2.f32 %v1570_v22  ;;  %4005 = vmatpush3.msra.mxu0 %v4673_v57  ;;  %1598 = vadd.xlane.f32.xlu1 %v1597_v55 }
 0x458   :  { %v1572_v21 = vmul.f32 1.442695, %v1545_v12  ;;  %3992 = vmatmul.mubr.msk.f32.vlgmr.msra.gmra.mxu1 %vm271_vm10, %v4170_v63  ;;  %v1594_v1 = vsel %vm271_vm10, %v4170_v63, 0.0  ;;  %4006 = vmatprep.mubr.msk.f32.mxu0 %vm4285_vm9, %v4284_v31 }
 0x459   :  { %v1574_v29 = vmul.f32 1.442695, %v1546_v25  ;;  %4000 = vmatpush3.msra.mxu1 %v4675_v58  ;;  %v1527_v35 = vpop.xlane.xlu1 %1526  ;;  %1595 = vadd.xlane.f32.xlu0 %v1594_v1 }
 0x45a   :  { %v1530_v36 = vpop.xlane.xlu0 %1529  ;;  %4181 = vpow2.f32 %v1572_v21  ;;  %v1547_v4 = vsub.f32 %v4657_v44, %v1527_v35  ;;  %4001 = vmatprep.mubr.msk.f32.mxu1 %vm4285_vm9, %v4284_v31  ;;  %4009 = vmatprep.subr.mxu1 %v4284_v31 }
 0x45b   :  { %v1548_v57 = vsub.f32 %v4659_v46, %v1530_v36  ;;  %v4172_v5 = vpop.eup %4171  ;;  %4183 = vpow2.f32 %v1574_v29  ;;  %4014 = vmatprep.subr.mxu0 %v4284_v31 }
 0x45c   :  { %v1576_v8 = vmul.f32 1.442695, %v1547_v4  ;;  %4002 = vmatmul.mubr.msk.f32.vlgmr.msra.gmra.mxu1 %vm271_vm10, %v4172_v5  ;;  %v1600_v58 = vsel %vm271_vm10, %v4172_v5, 0.0 }
 0x45d   :  { %v1578_v9 = vmul.f32 1.442695, %v1548_v57  ;;  %4010 = vmatpush3.msra.mxu1 %v4665_v51  ;;  %v1533_v44 = vpop.xlane.xlu1 %1532  ;;  %1601 = vadd.xlane.f32.xlu0 %v1600_v58 }
 0x45e   :  { %4185 = vpow2.f32 %v1576_v8  ;;  %v1549_v46 = vsub.f32 %v4667_v53, %v1533_v44  ;;  %4011 = vmatprep.mubr.msk.f32.mxu1 %vm4285_vm9, %v4284_v31  ;;  %4019 = vmatprep.subr.mxu1 %v4284_v31  ;;  %v2727_v3 = vpop.permute.xlu0 %2726 }
 0x45f   :  { %v4174_v10 = vpop.eup %4173  ;;  %4187 = vpow2.f32 %v1578_v9 }
 0x460   :  { %v4176_v11 = vpop.eup %4175  ;;  %v1580_v15 = vmul.f32 1.442695, %v1549_v46  ;;  %4007 = vmatmul.mubr.msk.f32.vlgmr.msra.gmra.mxu0 %vm271_vm10, %v4174_v10  ;;  %v1603_v45 = vsel %vm271_vm10, %v4174_v10, 0.0 }
 0x461   :  { %4012 = vmatmul.mubr.msk.f32.vlgmr.msra.gmra.mxu1 %vm271_vm10, %v4176_v11  ;;  %4015 = vmatpush3.msra.mxu0 %v4677_v59  ;;  %v1606_v51 = vsel %vm271_vm10, %v4176_v11, 0.0  ;;  %v2803_v24 = vpop.permute.xlu1 %2802 }
 0x462   :  { %4189 = vpow2.f32 %v1580_v15  ;;  %4020 = vmatpush3.msra.mxu1 %v4679_v61  ;;  %1604 = vadd.xlane.f32.xlu1 %v1603_v45 }
 0x463   :  { %v4178_v53 = vpop.eup %4177  ;;  %1607 = vadd.xlane.f32.xlu0 %v1606_v51  ;;  %4016 = vmatprep.mubr.msk.f32.mxu0 %vm4285_vm9, %v4284_v31 }
 0x464   :  { %v4180_v42 = vpop.eup %4179  ;;  %4021 = vmatprep.mubr.msk.f32.mxu1 %vm4285_vm9, %v4284_v31  ;;  %4024 = vmatprep.subr.mxu0 %v4284_v31  ;;  %v1609_v16 = vsel %vm271_vm10, %v4178_v53, 0.0 }
 0x465   :  { %4029 = vmatprep.subr.mxu1 %v4284_v31  ;;  %4017 = vmatmul.mubr.msk.f32.vlgmr.msra.gmra.mxu0 %vm271_vm10, %v4178_v53  ;;  %v1612_v59 = vsel %vm271_vm10, %v4180_v42, 0.0 }
 0x466   :  { %4022 = vmatmul.mubr.msk.f32.vlgmr.msra.gmra.mxu1 %vm271_vm10, %v4180_v42  ;;  %4025 = vmatpush3.msra.mxu0 %v4681_v62 }
 0x467   :  { %v4182_v61 = vpop.eup %4181  ;;  %4030 = vmatpush3.msra.mxu1 %v4671_v56  ;;  %1610 = vadd.xlane.f32.xlu1 %v1609_v16 }
 0x468   :  { %v4184_v18 = vpop.eup %4183  ;;  %1613 = vadd.xlane.f32.xlu0 %v1612_v59  ;;  %4026 = vmatprep.mubr.msk.f32.mxu0 %vm4285_vm9, %v4284_v31  ;;  %v1615_v0 = vsel %vm271_vm10, %v4182_v61, 0.0 }
 0x469   :  { %4031 = vmatprep.mubr.msk.f32.mxu1 %vm4285_vm9, %v4284_v31  ;;  %4034 = vmatprep.subr.mxu0 %v4284_v31  ;;  %v1618_v62 = vsel %vm271_vm10, %v4184_v18, 0.0 }
 0x46a   :  { %4039 = vmatprep.subr.mxu1 %v4284_v31  ;;  %4027 = vmatmul.mubr.msk.f32.vlgmr.msra.gmra.mxu0 %vm271_vm10, %v4182_v61 }
 0x46b   :  { %v4186_v56 = vpop.eup %4185  ;;  %4032 = vmatmul.mubr.msk.f32.vlgmr.msra.gmra.mxu1 %vm271_vm10, %v4184_v18  ;;  %4035 = vmatpush3.msra.mxu0 %v4688_v2  ;;  %v2894_v2 = vld [vmem:[%s4970_s5] sm:$0xff] }
 0x46c   :  { %v4188_v6 = vpop.eup %4187  ;;  %4040 = vmatpush3.msra.mxu1 %v2727_v3  ;;  %1616 = vadd.xlane.f32.xlu1 %v1615_v0  ;;  %v1621_v7 = vsel %vm271_vm10, %v4186_v56, 0.0 }
 0x46d   :  { %1619 = vadd.xlane.f32.xlu0 %v1618_v62  ;;  %4036 = vmatprep.mubr.msk.f32.mxu0 %vm4285_vm9, %v4284_v31  ;;  %v1624_v19 = vsel %vm271_vm10, %v4188_v6, 0.0 }
 0x46e   :  { %4041 = vmatprep.mubr.msk.f32.mxu1 %vm4285_vm9, %v4284_v31  ;;  %4044 = vmatprep.subr.mxu0 %v4284_v31 }
 0x46f   :  { %v4190_v23 = vpop.eup %4189  ;;  %4037 = vmatmul.mubr.msk.f32.vlgmr.msra.gmra.mxu0 %vm271_vm10, %v4186_v56  ;;  %4042 = vmatmul.mubr.msk.f32.vlgmr.msra.gmra.mxu1 %vm271_vm10, %v4188_v6 }
 0x470   :  { %4045 = vmatpush3.msra.mxu0 %v2803_v24  ;;  %1622 = vadd.xlane.f32.xlu1 %v1621_v7  ;;  %v1627_v20 = vsel %vm271_vm10, %v4190_v23, 0.0 }
 0x471   :  { %1625 = vadd.xlane.f32.xlu0 %v1624_v19  ;;  %4046 = vmatprep.mubr.msk.f32.mxu0 %vm4285_vm9, %v4284_v31  ;;  %v3741_v31 = vld [vmem:[%s4970_s5 + $0x18] sm:$0xff] }
 0x472   :  { %4057 = vmatprep.subr.mxu0 %v2894_v2  ;;  %4049 = vmatprep.subr.mxu1 %v3727_v13 }
 0x473   :  { %4047 = vmatmul.mubr.msk.f32.vlgmr.msra.gmra.mxu0 %vm271_vm10, %v4190_v23  ;;  %4050 = vmatpush3.msra.mxu1 %v3727_v13 }
 0x474   :  { %1628 = vadd.xlane.f32.xlu1 %v1627_v20  ;;  %4058 = vmatpush3.msra.mxu0 %v2894_v2 }
 0x475   :  { %4065 = vmatprep.subr.mxu1 %v4795_v26  ;;  %4073 = vmatprep.subr.mxu0 %v3741_v31 }
 0x48e   :  { %v1584_v27 = vpop.xlane.xlu0 %1583 }
 0x48f   :  { %4191 = vrcp.f32 %v1584_v27 }
 0x492   :  { %v1587_v28 = vpop.xlane.xlu0 %1586  ;;  %v1593_v34 = vpop.xlane.xlu1 %1592 }
 0x493   :  { %4193 = vrcp.f32 %v1587_v28 }
 0x496   :  { %v1590_v32 = vpop.xlane.xlu0 %1589 }
 0x497   :  { %4195 = vrcp.f32 %v1590_v32 }
 0x498   :  { %4197 = vrcp.f32 %v1593_v34 }
 0x49c   :  { %v4192_v30 = vpop.eup %4191 }
 0x4a0   :  { %v4194_v39 = vpop.eup %4193 }
 0x4a4   :  { %v4196_v17 = vpop.eup %4195 }
 0x4a5   :  { %v4198_v49 = vpop.eup %4197 }
 0x4ba   :  { %v1734_v33 = vpop.f32.mrf.mxu1 }
 0x4bb   :  { %v2878_v37 = vmul.f32 %v4192_v30, %v1734_v33 }
 0x4bc   :  { %v3973_v38 = vpop.f32.mrf.mxu1 }
 0x4bd   :  { %4059 = vmatprep.mubr.msk.f32.mxu0 %vm271_vm10, %v2878_v37 }
 0x4c1   :  { %v1810_v40 = vpop.f32.mrf.mxu0 }
 0x4c2   :  { %v2879_v41 = vmul.f32 %v4194_v39, %v1810_v40 }
 0x4c3   :  { %v3978_v14 = vpop.f32.mrf.mxu0 }
 0x4c4   :  { %4060 = vmatmul.mubr.msk.f32.vlgmr.msra.gmra.mxu0 %vm271_vm10, %v2879_v41 }
 0x4c5   :  { %v1962_v43 = vpop.f32.mrf.mxu0  ;;  %4074 = vmatpush3.msra.mxu0 %v3741_v31 }
 0x4c6   :  { %v2881_v50 = vmul.f32 %v4198_v49, %v1962_v43 }
 0x4c7   :  { %v3988_v47 = vpop.f32.mrf.mxu0 }
 0x4ca   :  { %v1886_v48 = vpop.f32.mrf.mxu1 }
 0x4cb   :  { %v2880_v22 = vmul.f32 %v4196_v17, %v1886_v48 }
 0x4cc   :  { %v3983_v52 = vpop.f32.mrf.mxu1 }
 0x4cd   :  { %4062 = vmatprep.mubr.msk.f32.mxu0 %vm271_vm10, %v2880_v22 }
 0x4ce   :  { %4063 = vmatmul.mubr.msk.f32.gmra.mxu0 %vm271_vm10, %v2881_v50 }
 0x4e0   :  { %v1599_v12 = vpop.xlane.xlu1 %1598 }
 0x4e2   :  { %v1596_v54 = vpop.xlane.xlu0 %1595 }
 0x4e3   :  { %4199 = vrcp.f32 %v1596_v54 }
 0x4e4   :  { %4201 = vrcp.f32 %v1599_v12 }
 0x4e6   :  { %v1602_v25 = vpop.xlane.xlu0 %1601 }
 0x4e7   :  { %4203 = vrcp.f32 %v1602_v25 }
 0x4eb   :  { %v1605_v55 = vpop.xlane.xlu1 %1604 }
 0x4ec   :  { %v1608_v63 = vpop.xlane.xlu0 %1607  ;;  %4205 = vrcp.f32 %v1605_v55 }
 0x4ed   :  { %4207 = vrcp.f32 %v1608_v63 }
 0x4f0   :  { %v1611_v21 = vpop.xlane.xlu1 %1610  ;;  %v4200_v36 = vpop.eup %4199 }
 0x4f1   :  { %v1614_v29 = vpop.xlane.xlu0 %1613  ;;  %4209 = vrcp.f32 %v1611_v21  ;;  %v4202_v5 = vpop.eup %4201 }
 0x4f2   :  { %4211 = vrcp.f32 %v1614_v29 }
 0x4f4   :  { %v4204_v46 = vpop.eup %4203 }
 0x4f5   :  { %v1617_v35 = vpop.xlane.xlu1 %1616 }
 0x4f6   :  { %v1620_v8 = vpop.xlane.xlu0 %1619  ;;  %4213 = vrcp.f32 %v1617_v35 }
 0x4f7   :  { %4215 = vrcp.f32 %v1620_v8 }
 0x4f9   :  { %v1623_v11 = vpop.xlane.xlu1 %1622  ;;  %v4206_v53 = vpop.eup %4205 }
 0x4fa   :  { %v1626_v51 = vpop.xlane.xlu0 %1625  ;;  %v4208_v16 = vpop.eup %4207  ;;  %4217 = vrcp.f32 %v1623_v11 }
 0x4fb   :  { %4219 = vrcp.f32 %v1626_v51  ;;  %v4256_v51 = vld [vmem:[%s4965_s0 + $0x8] sm:$0xff] }
 0x4fd   :  { %v1629_v62 = vpop.xlane.xlu1 %1628 }
 0x4fe   :  { %v4210_v3 = vpop.eup %4209  ;;  %4221 = vrcp.f32 %v1629_v62 }
 0x4ff   :  { %v4212_v7 = vpop.eup %4211 }
 0x503   :  { %v4214_v13 = vpop.eup %4213 }
 0x504   :  { %v4216_v31 = vpop.eup %4215 }
 0x507   :  { %v4218_v34 = vpop.eup %4217 }
 0x508   :  { %v4220_v37 = vpop.eup %4219 }
 0x50b   :  { %v4222_v47 = vpop.eup %4221 }
 0x516   :  { %v2114_v1 = vpop.f32.mrf.mxu0 }
 0x517   :  { %v2883_v58 = vmul.f32 %v4202_v5, %v2114_v1  ;;  %v3303_v1 = vsub.s32 4, %v4385_v60 }
 0x518   :  { %v2038_v4 = vpop.f32.mrf.mxu1  ;;  %v3998_v57 = vpop.f32.mrf.mxu0 }
 0x519   :  { %v2882_v9 = vmul.f32 %v4200_v36, %v2038_v4 }
 0x51a   :  { %v3993_v44 = vpop.f32.mrf.mxu1 }
 0x51b   :  { %4051 = vmatprep.mubr.msk.f32.mxu1 %vm271_vm10, %v2882_v9  ;;  %v4822_v44 = vld [vmem:[%s4966_s1] sm:$0x3f] }
 0x51c   :  { %v2190_v10 = vpop.f32.mrf.mxu1  ;;  %4052 = vmatmul.mubr.msk.f32.vlgmr.msra.gmra.mxu1 %vm271_vm10, %v2883_v58 }
 0x51d   :  { %v2884_v15 = vmul.f32 %v4204_v46, %v2190_v10  ;;  %4066 = vmatpush3.msra.mxu1 %v4795_v26  ;;  %v3304_v46 = vrot.slane %v4822_v44, %v3303_v1 }
 0x51e   :  { %v4003_v45 = vpop.f32.mrf.mxu1 }
 0x51f   :  { %4054 = vmatprep.mubr.msk.f32.mxu1 %vm271_vm10, %v2884_v15 }
 0x520   :  { %v2266_v42 = vpop.f32.mrf.mxu0 }
 0x521   :  { %v2885_v59 = vmul.f32 %v4206_v53, %v2266_v42  ;;  %v2342_v61 = vpop.f32.mrf.mxu1 }
 0x522   :  { %v2886_v18 = vmul.f32 %v4208_v16, %v2342_v61  ;;  %v4008_v0 = vpop.f32.mrf.mxu0 }
 0x523   :  { %v4013_v56 = vpop.f32.mrf.mxu1  ;;  %4055 = vmatmul.mubr.msk.f32.gmra.mxu1 %vm271_vm10, %v2885_v59 }
 0x524   :  { %4067 = vmatprep.mubr.msk.f32.mxu1 %vm271_vm10, %v2886_v18  ;;  %v4257_v18 = vld [vmem:[%s4965_s0] sm:$0xff] }
 0x525   :  { %v2418_v6 = vpop.f32.mrf.mxu0 }
 0x526   :  { %v2887_v19 = vmul.f32 %v4210_v3, %v2418_v6  ;;  %v2494_v23 = vpop.f32.mrf.mxu1  ;;  %v4258_v6 = vld [vmem:[%s4965_s0 + $0x18] sm:$0xff] }
 0x527   :  { %v2888_v24 = vmul.f32 %v4212_v7, %v2494_v23  ;;  %v4018_v2 = vpop.f32.mrf.mxu0 }
 0x528   :  { %v4023_v20 = vpop.f32.mrf.mxu1  ;;  %4068 = vmatmul.mubr.msk.f32.vlgmr.msra.gmra.mxu1 %vm271_vm10, %v2887_v19  ;;  %v4259_v2 = vld [vmem:[%s4965_s0 + $0x10] sm:$0xff] }
 0x529   :  { %4070 = vmatprep.mubr.msk.f32.mxu1 %vm271_vm10, %v2888_v24 }
 0x52a   :  { %v2570_v26 = vpop.f32.mrf.mxu0 }
 0x52b   :  { %v2889_v27 = vmul.f32 %v4214_v13, %v2570_v26  ;;  %v2646_v28 = vpop.f32.mrf.mxu1 }
 0x52c   :  { %v2890_v30 = vmul.f32 %v4216_v31, %v2646_v28  ;;  %v4028_v32 = vpop.f32.mrf.mxu0 }
 0x52d   :  { %v4033_v33 = vpop.f32.mrf.mxu1  ;;  %4071 = vmatmul.mubr.msk.f32.gmra.mxu1 %vm271_vm10, %v2889_v27 }
 0x52e   :  { %4075 = vmatprep.mubr.msk.f32.mxu0 %vm271_vm10, %v2890_v30 }
 0x52f   :  { %v2722_v38 = vpop.f32.mrf.mxu0  ;;  %v2798_v39 = vpop.f32.mrf.mxu1 }
 0x530   :  { %v2891_v40 = vmul.f32 %v4218_v34, %v2722_v38  ;;  %v2892_v41 = vmul.f32 %v4220_v37, %v2798_v39 }
 0x531   :  { %v4038_v14 = vpop.f32.mrf.mxu0  ;;  %v4043_v43 = vpop.f32.mrf.mxu1 }
 0x532   :  { %4076 = vmatmul.mubr.msk.f32.vlgmr.msra.gmra.mxu0 %vm271_vm10, %v2891_v40 }
 0x533   :  { %v2874_v17 = vpop.f32.mrf.mxu0  ;;  %4078 = vmatprep.mubr.msk.f32.mxu0 %vm271_vm10, %v2892_v41 }
 0x534   :  { %v2893_v48 = vmul.f32 %v4222_v47, %v2874_v17 }
 0x535   :  { %v4048_v49 = vpop.f32.mrf.mxu0 }
 0x536   :  { %4079 = vmatmul.mubr.msk.f32.gmra.mxu0 %vm271_vm10, %v2893_v48 }
 0x584   :  { %v4061_v12 = vpop.f32.mrf.mxu0 }
 0x586   :  { %v3072_v55 = vpop.f32.mrf.mxu0 }
 0x58e   :  { %v4064_v63 = vpop.f32.mrf.mxu0 }
 0x590   :  { %v3082_v35 = vpop.f32.mrf.mxu0 }
 0x5dc   :  { %v4053_v22 = vpop.f32.mrf.mxu1 }
 0x5dd   :  { %v3078_v29 = vadd.f32 %v4061_v12, %v4053_v22  ;;  %v3408_v12 = vld [vmem:[%s4971_s6 + $0x18] sm:$0xff] }
 0x5de   :  { %v2975_v50 = vpop.f32.mrf.mxu1  ;;  %4081 = vmatprep.subr.mxu1 %v3408_v12 }
 0x5df   :  { %v3073_v4 = vadd.f32 %v3072_v55, %v2975_v50  ;;  %4082 = vmatpush3.msra.mxu1 %v3408_v12  ;;  %v3406_v55 = vld [vmem:[%s4971_s6 + $0x8] sm:$0xff] }
 0x5e0   :  { %v3558_v12 = vld [vmem:[%s4972_s7 + $0x68] sm:$0xff] }
 0x5e3   :  { %v4056_v52 = vpop.f32.mrf.mxu1 }
 0x5e4   :  { %v3088_v8 = vadd.f32 %v4064_v63, %v4056_v52  ;;  %v3405_v63 = vld [vmem:[%s4971_s6] sm:$0xff] }
 0x5e5   :  { %v2985_v54 = vpop.f32.mrf.mxu1 }
 0x5e6   :  { %v3083_v15 = vadd.f32 %v3082_v35, %v2985_v54 }
 0x5e8   :  { %v4069_v25 = vpop.f32.mrf.mxu1 }
 0x5e9   :  { %v3191_v57 = vadd.f32 %v4069_v25, %v3078_v29  ;;  %v3407_v25 = vld [vmem:[%s4971_s6 + $0x10] sm:$0xff] }
 0x5ea   :  { %v3171_v21 = vpop.f32.mrf.mxu1  ;;  %4083 = vmatprep.subr.mxu1 %v3407_v25 }
 0x5eb   :  { %v3190_v9 = vadd.f32 %v3171_v21, %v3073_v4  ;;  %4084 = vmatpush3.msra.mxu1 %v3407_v25  ;;  %v3557_v25 = vld [vmem:[%s4972_s7 + $0x60] sm:$0xff] }
 0x5ec   :  { %4085 = vmatprep.subr.mxu1 %v3406_v55 }
 0x5ed   :  { %v4072_v36 = vpop.f32.mrf.mxu1  ;;  %4086 = vmatpush3.msra.mxu1 %v3406_v55  ;;  %v3556_v55 = vld [vmem:[%s4972_s7 + $0x58] sm:$0xff] }
 0x5ee   :  { %v3193_v45 = vadd.f32 %v4072_v36, %v3088_v8  ;;  %4087 = vmatprep.subr.mxu1 %v3405_v63 }
 0x5ef   :  { %v3181_v10 = vpop.f32.mrf.mxu1  ;;  %4088 = vmatpush3.msra.mxu1 %v3405_v63  ;;  %v3555_v63 = vld [vmem:[%s4972_s7 + $0x50] sm:$0xff] }
 0x5f0   :  { %v3192_v59 = vadd.f32 %v3181_v10, %v3083_v15 }
 0x5f2   :  { %v4077_v5 = vpop.f32.mrf.mxu0 }
 0x5f3   :  { %v3294_v58 = vadd.f32 %v4077_v5, %v3191_v57 }
 0x5f4   :  { %v3274_v11 = vpop.f32.mrf.mxu0 }
 0x5f5   :  { %v3298_v53 = vadd.f32 %v4256_v51, %v3294_v58  ;;  %v3293_v42 = vadd.f32 %v3274_v11, %v3190_v9 }
 0x5f6   :  { %v4080_v16 = vpop.f32.mrf.mxu0 }
 0x5f7   :  { %v4828_v61 = vadd.f32 %v3304_v46, %v3298_v53  ;;  %v3297_v0 = vadd.f32 %v4257_v18, %v3293_v42  ;;  %v3296_v62 = vadd.f32 %v4080_v16, %v3193_v45 }
 0x5f8   :  { %v3284_v56 = vpop.f32.mrf.mxu0 }
 0x5f9   :  { %v4833_v3 = vadd.f32 %v3304_v46, %v3297_v0  ;;  %v3300_v7 = vadd.f32 %v4258_v6, %v3296_v62  ;;  %v3295_v19 = vadd.f32 %v3284_v56, %v3192_v59  ;;  %v3312_v23 = vsel %vm35_vm0, %v4828_v61, 0.0 }
 0x5fa   :  { %3313 = vadd.xlane.f32.xlu1 %v3312_v23 }
 0x5fb   :  { %v4840_v24 = vadd.f32 %v3304_v46, %v3300_v7  ;;  %v3299_v20 = vadd.f32 %v4259_v2, %v3295_v19  ;;  %v3309_v13 = vsel %vm35_vm0, %v4833_v3, 0.0 }
 0x5fc   :  { %3310 = vadd.xlane.f32.xlu0 %v3309_v13 }
 0x5fd   :  { %v4847_v26 = vadd.f32 %v3304_v46, %v3299_v20  ;;  %v3318_v31 = vsel %vm35_vm0, %v4840_v24, 0.0 }
 0x5fe   :  { %3319 = vadd.xlane.f32.xlu1 %v3318_v31  ;;  %v3391_v31 = vsub.s32 2, %v4385_v60 }
 0x5ff   :  { %v3315_v27 = vsel %vm35_vm0, %v4847_v26, 0.0 }
 0x600   :  { %3316 = vadd.xlane.f32.xlu0 %v3315_v27 }
 0x683   :  { %v3314_v28 = vpop.xlane.xlu1 %3313 }
 0x684   :  { %v3322_v30 = vmul.f32 0.03125, %v3314_v28  ;;  %v3392_v28 = vrot.slane %v4822_v44, %v3391_v31 }
 0x685   :  { %v3311_v32 = vpop.xlane.xlu0 %3310 }
 0x686   :  { %v4854_v33 = vsub.f32 %v4828_v61, %v3322_v30  ;;  %v3321_v34 = vmul.f32 0.03125, %v3311_v32  ;;  %v3399_v30 = vsub.s32 3, %v4385_v60 }
 0x687   :  { %v3320_v37 = vpop.xlane.xlu1 %3319 }
 0x688   :  { %v4857_v38 = vsub.f32 %v4833_v3, %v3321_v34  ;;  %v3324_v39 = vmul.f32 0.03125, %v3320_v37  ;;  %v3330_v40 = vmul.f32 %v4854_v33, %v4854_v33 }
 0x689   :  { %v3317_v41 = vpop.xlane.xlu0 %3316 }
 0x68a   :  { %v4862_v14 = vsub.f32 %v4840_v24, %v3324_v39  ;;  %v3323_v43 = vmul.f32 0.03125, %v3317_v41  ;;  %v3336_v47 = vsel %vm35_vm0, %v3330_v40, 0.0  ;;  %v3329_v17 = vmul.f32 %v4857_v38, %v4857_v38 }
 0x68b   :  { %3337 = vadd.xlane.f32.xlu1 %v3336_v47  ;;  %v3400_v39 = vrot.slane %v4822_v44, %v3399_v30 }
 0x68c   :  { %v4868_v48 = vsub.f32 %v4847_v26, %v3323_v43  ;;  %v3333_v49 = vsel %vm35_vm0, %v3329_v17, 0.0  ;;  %v3332_v22 = vmul.f32 %v4862_v14, %v4862_v14 }
 0x68d   :  { %3334 = vadd.xlane.f32.xlu0 %v3333_v49 }
 0x68e   :  { %v3342_v50 = vsel %vm35_vm0, %v3332_v22, 0.0  ;;  %v3331_v52 = vmul.f32 %v4868_v48, %v4868_v48 }
 0x68f   :  { %3343 = vadd.xlane.f32.xlu1 %v3342_v50 }
 0x690   :  { %v3339_v54 = vsel %vm35_vm0, %v3331_v52, 0.0 }
 0x691   :  { %3340 = vadd.xlane.f32.xlu0 %v3339_v54 }
 0x714   :  { %v3338_v21 = vpop.xlane.xlu1 %3337 }
 0x715   :  { %v3346_v29 = vmul.f32 0.03125, %v3338_v21  ;;  %v3554_v21 = vld [vmem:[%s4972_s7 + $0x48] sm:$0xff] }
 0x716   :  { %v3335_v1 = vpop.xlane.xlu0 %3334 }
 0x717   :  { %v3350_v35 = vadd.f32 1e-12, %v3346_v29  ;;  %v3345_v36 = vmul.f32 0.03125, %v3335_v1  ;;  %v3553_v29 = vld [vmem:[%s4972_s7 + $0x40] sm:$0xff]  ;;  %v3552_v1 = vld [vmem:[%s4972_s7 + $0x38] sm:$0xff] }
 0x718   :  { %v3344_v4 = vpop.xlane.xlu1 %3343 }
 0x719   :  { %4223 = vrsqrt.f32 %v3350_v35  ;;  %v3349_v57 = vadd.f32 1e-12, %v3345_v36  ;;  %v3348_v5 = vmul.f32 0.03125, %v3344_v4  ;;  %vm3362_vm11 = vcmp.eq.f32.partialorder %v3350_v35, inf  ;;  %v3550_v36 = vld [vmem:[%s4972_s7 + $0x28] sm:$0xff]  ;;  %v3549_v4 = vld [vmem:[%s4972_s7 + $0x20] sm:$0xff] }
 0x71a   :  { %v3341_v8 = vpop.xlane.xlu0 %3340  ;;  %v3365_v15 = vand.u32 2147483648, %v3350_v35  ;;  %vm3364_vm12 = vcmp.eq.f32.partialorder %v3350_v35, 0.0 }
 0x71b   :  { %v3347_v9 = vmul.f32 0.03125, %v3341_v8  ;;  %4225 = vrsqrt.f32 %v3349_v57  ;;  %v3352_v58 = vadd.f32 1e-12, %v3348_v5  ;;  %vm3355_vm13 = vcmp.eq.f32.partialorder %v3349_v57, inf  ;;  %v3547_v5 = vld [vmem:[%s4972_s7 + $0x10] sm:$0xff]  ;;  %v3546_v8 = vld [vmem:[%s4972_s7 + $0x8] sm:$0xff] }
 0x71c   :  { %v3358_v16 = vand.u32 2147483648, %v3349_v57  ;;  %vm3357_vm14 = vcmp.eq.f32.partialorder %v3349_v57, 0.0 }
 0x71d   :  { %v3351_v46 = vadd.f32 1e-12, %v3347_v9  ;;  %4227 = vrsqrt.f32 %v3352_v58  ;;  %vm3376_vm15 = vcmp.eq.f32.partialorder %v3352_v58, inf  ;;  %v3379_v6 = vand.u32 2147483648, %v3352_v58  ;;  %v3545_v9 = vld [vmem:[%s4972_s7] sm:$0xff] }
 0x71e   :  { %vm3378_vm1 = vcmp.eq.f32.partialorder %v3352_v58, 0.0 }
 0x71f   :  { %4229 = vrsqrt.f32 %v3351_v46  ;;  %vm3369_vm2 = vcmp.eq.f32.partialorder %v3351_v46, inf  ;;  %v3372_v23 = vand.u32 2147483648, %v3351_v46  ;;  %vm3371_vm3 = vcmp.eq.f32.partialorder %v3351_v46, 0.0 }
 0x726   :  { %v4224_v10 = vpop.eup %4223 }
 0x727   :  { %v3361_v11 = vmul.f32 %v4224_v10, %v3350_v35 }
 0x728   :  { %v4226_v45 = vpop.eup %4225 }
 0x729   :  { %v3363_v51 = vsel %vm3362_vm11, %v3350_v35, %v3361_v11  ;;  %v3354_v42 = vmul.f32 %v4226_v45, %v3349_v57  ;;  %v3551_v35 = vld [vmem:[%s4972_s7 + $0x30] sm:$0xff] }
 0x72a   :  { %v3366_v53 = vsel %vm3364_vm12, %v3365_v15, %v3363_v51  ;;  %v4228_v59 = vpop.eup %4227 }
 0x72b   :  { %4231 = vrcp.f32 %v3366_v53  ;;  %v3356_v18 = vsel %vm3355_vm13, %v3349_v57, %v3354_v42  ;;  %v3375_v56 = vmul.f32 %v4228_v59, %v3352_v58  ;;  %v3548_v57 = vld [vmem:[%s4972_s7 + $0x18] sm:$0xff] }
 0x72c   :  { %v4230_v0 = vpop.eup %4229  ;;  %v3359_v62 = vsel %vm3357_vm14, %v3358_v16, %v3356_v18 }
 0x72d   :  { %4233 = vrcp.f32 %v3359_v62  ;;  %v3368_v7 = vmul.f32 %v4230_v0, %v3351_v46  ;;  %v3377_v19 = vsel %vm3376_vm15, %v3352_v58, %v3375_v56  ;;  %v3746_v58 = vld [vmem:[%s4968_s3] ss:$0 sm:$0xff]  ;;  %s4289_s3 = smov [#allocation2]  }
 0x72e   :  { %v3380_v2 = vsel %vm3378_vm1, %v3379_v6, %v3377_v19 }
 0x72f   :  { %v3370_v20 = vsel %vm3369_vm2, %v3351_v46, %v3368_v7  ;;  %4235 = vrcp.f32 %v3380_v2 }
 0x730   :  { %v3373_v13 = vsel %vm3371_vm3, %v3372_v23, %v3370_v20 }
 0x731   :  { %4237 = vrcp.f32 %v3373_v13 }
 0x738   :  { %v4232_v27 = vpop.eup %4231 }
 0x739   :  { %v3384_v32 = vmul.f32 %v4232_v27, %v4854_v33 }
 0x73a   :  { %v4234_v34 = vpop.eup %4233 }
 0x73b   :  { %v3382_v37 = vmul.f32 %v4234_v34, %v4857_v38  ;;  %v3394_v40 = vmul.f32 %v3392_v28, %v3384_v32 }
 0x73c   :  { %v4236_v41 = vpop.eup %4235 }
 0x73d   :  { %v3393_v43 = vmul.f32 %v3392_v28, %v3382_v37  ;;  %v3388_v17 = vmul.f32 %v4236_v41, %v4862_v14  ;;  %v3402_v50 = vadd.f32 %v3400_v39, %v3394_v40  ;;  %v3560_v14 = vld [vmem:[%s4972_s7 + $0x78] sm:$0xff] }
 0x73e   :  { %v4238_v47 = vpop.eup %4237  ;;  %4095 = vmatprep.subr.mxu0 %v3560_v14 }
 0x73f   :  { %v3401_v49 = vadd.f32 %v3400_v39, %v3393_v43  ;;  %v3386_v22 = vmul.f32 %v4238_v47, %v4868_v48  ;;  %v3396_v52 = vmul.f32 %v3392_v28, %v3388_v17  ;;  %4096 = vmatpush3.msra.mxu0 %v3560_v14  ;;  %v3559_v48 = vld [vmem:[%s4972_s7 + $0x70] sm:$0xff]  ;;  %v3563_v47 = vsub.s32 5, %v4385_v60  ;;  %s3663_s7 = sshll.u32 %s4289_s3, 4  ;;  %s3664_s7 = int_to_ptr.vmem [resolvable:$true] %s3663_s7 }
 0x740   :  { %4097 = vmatprep.subr.mxu0 %v3559_v48  ;;  %s4260_s10 = scalar_lea.vmem %s3664_s7, 512  ;;  %p4265_p1 = scmp.lt.s32.totalorder %s3664_s7, %s3664_s7 }
 0x741   :  { %4089 = vmatprep.mubr.msk.f32.mxu1 %vm35_vm0, %v3401_v49  ;;  %v3395_v54 = vmul.f32 %v3392_v28, %v3386_v22  ;;  %v3404_v38 = vadd.f32 %v3400_v39, %v3396_v52  ;;  %4098 = vmatpush3.msra.mxu0 %v3559_v48  ;;  %v3564_v17 = vrot.slane %v4822_v44, %v3563_v47  ;;  %p4261_p0 = scmp.ne.s32.totalorder %s3664_s7, %s4260_s10  ;;  %p4266_p2 = scmp.lt.s32.totalorder %s4260_s10, %s4260_s10 }
 0x742   :  { %4090 = vmatmul.mubr.msk.f32.vlgmr.msra.gmra.mxu1 %vm35_vm0, %v3402_v50  ;;  %4099 = vmatprep.subr.mxu0 %v3558_v12 }
 0x743   :  { %v3403_v33 = vadd.f32 %v3400_v39, %v3395_v54  ;;  %4100 = vmatpush3.msra.mxu0 %v3558_v12  ;;  %p4267_p3 = por %p4266_p2, %p4265_p1 }
 0x744   :  { %4101 = vmatprep.subr.mxu0 %v3557_v25 }
 0x745   :  { %4092 = vmatprep.mubr.msk.f32.mxu1 %vm35_vm0, %v3403_v33  ;;  %4102 = vmatpush3.msra.mxu0 %v3557_v25  ;;  %p4268_p4 = pnand %p4267_p3, %p4261_p0 }
 0x746   :  { %4093 = vmatmul.mubr.msk.f32.gmra.mxu1 %vm35_vm0, %v3404_v38  ;;  %4103 = vmatprep.subr.mxu0 %v3556_v55 }
 0x747   :  { %4104 = vmatpush3.msra.mxu0 %v3556_v55 }
 0x748   :  { %4105 = vmatprep.subr.mxu0 %v3555_v63 }
 0x749   :  { %4106 = vmatpush3.msra.mxu0 %v3555_v63 }
 0x74a   :  { %4107 = vmatprep.subr.mxu0 %v3554_v21 }
 0x74b   :  { %4108 = vmatpush3.msra.mxu0 %v3554_v21 }
 0x74c   :  { %4109 = vmatprep.subr.mxu0 %v3553_v29 }
 0x74d   :  { %4110 = vmatpush3.msra.mxu0 %v3553_v29 }
 0x74e   :  { %4111 = vmatprep.subr.mxu0 %v3552_v1 }
 0x74f   :  { %4112 = vmatpush3.msra.mxu0 %v3552_v1 }
 0x750   :  { %4113 = vmatprep.subr.mxu0 %v3551_v35 }
 0x751   :  { %4114 = vmatpush3.msra.mxu0 %v3551_v35 }
 0x752   :  { %4115 = vmatprep.subr.mxu0 %v3550_v36 }
 0x753   :  { %4116 = vmatpush3.msra.mxu0 %v3550_v36 }
 0x754   :  { %4117 = vmatprep.subr.mxu0 %v3549_v4 }
 0x755   :  { %4118 = vmatpush3.msra.mxu0 %v3549_v4 }
 0x756   :  { %4119 = vmatprep.subr.mxu0 %v3548_v57 }
 0x757   :  { %4120 = vmatpush3.msra.mxu0 %v3548_v57 }
 0x758   :  { %4121 = vmatprep.subr.mxu0 %v3547_v5 }
 0x759   :  { %4122 = vmatpush3.msra.mxu0 %v3547_v5 }
 0x75a   :  { %4123 = vmatprep.subr.mxu0 %v3546_v8 }
 0x75b   :  { %4124 = vmatpush3.msra.mxu0 %v3546_v8 }
 0x75c   :  { %4125 = vmatprep.subr.mxu0 %v3545_v9 }
 0x75d   :  { %4126 = vmatpush3.msra.mxu0 %v3545_v9 }
 0x802   :  { %v4091_v46 = vpop.f32.mrf.mxu1 }
 0x803   :  { %v3500_v10 = vadd.f32 %v4091_v46, %v3746_v58 }
 0x804   :  { %v3494_v11 = vpop.f32.mrf.mxu1 }
 0x805   :  { %v3752_v15 = vmul.f32 -1.702, %v3500_v10  ;;  %v3495_v45 = vadd.f32 %v3746_v58, %v3494_v11 }
 0x806   :  { %v4094_v51 = vpop.f32.mrf.mxu1 }
 0x807   :  { %v3523_v53 = vmul.f32 1.442695, %v3752_v15  ;;  %v3751_v42 = vmul.f32 -1.702, %v3495_v45  ;;  %v3510_v16 = vadd.f32 %v4094_v51, %v3746_v58 }
 0x808   :  { %v3504_v59 = vpop.f32.mrf.mxu1 }
 0x809   :  { %4239 = vpow2.f32 %v3523_v53  ;;  %v3521_v18 = vmul.f32 1.442695, %v3751_v42  ;;  %v3754_v0 = vmul.f32 -1.702, %v3510_v16  ;;  %v3505_v62 = vadd.f32 %v3746_v58, %v3504_v59 }
 0x80b   :  { %4241 = vpow2.f32 %v3521_v18  ;;  %v3527_v56 = vmul.f32 1.442695, %v3754_v0  ;;  %v3753_v6 = vmul.f32 -1.702, %v3505_v62 }
 0x80d   :  { %4243 = vpow2.f32 %v3527_v56  ;;  %v3525_v7 = vmul.f32 1.442695, %v3753_v6 }
 0x80f   :  { %4245 = vpow2.f32 %v3525_v7 }
 0x816   :  { %v4240_v19 = vpop.eup %4239 }
 0x817   :  { %v3530_v23 = vadd.f32 1.0, %v4240_v19 }
 0x818   :  { %v4242_v2 = vpop.eup %4241 }
 0x819   :  { %v3529_v20 = vadd.f32 1.0, %v4242_v2  ;;  %4247 = vrcp.f32 %v3530_v23 }
 0x81a   :  { %v4244_v13 = vpop.eup %4243 }
 0x81b   :  { %4249 = vrcp.f32 %v3529_v20  ;;  %v3532_v31 = vadd.f32 1.0, %v4244_v13 }
 0x81c   :  { %v4246_v27 = vpop.eup %4245 }
 0x81d   :  { %v3531_v28 = vadd.f32 1.0, %v4246_v27  ;;  %4251 = vrcp.f32 %v3532_v31 }
 0x81f   :  { %4253 = vrcp.f32 %v3531_v28 }
 0x826   :  { %v4248_v30 = vpop.eup %4247 }
 0x827   :  { %v3542_v37 = vmul.f32 %v4248_v30, %v3500_v10 }
 0x828   :  { %v4250_v32 = vpop.eup %4249 }
 0x829   :  { %v3541_v34 = vmul.f32 %v4250_v32, %v3495_v45 }
 0x82a   :  { %v4252_v39 = vpop.eup %4251 }
 0x82b   :  { %4127 = vmatprep.mubr.f32.mxu0 %v3541_v34  ;;  %v3544_v43 = vmul.f32 %v4252_v39, %v3510_v16 }
 0x82c   :  { %v4254_v40 = vpop.eup %4253  ;;  %4128 = vmatmul.mubr.f32.vlgmr.msra.gmra.mxu0 %v3542_v37 }
 0x82d   :  { %v3543_v41 = vmul.f32 %v4254_v40, %v3505_v62 }
 0x82f   :  { %4130 = vmatprep.mubr.f32.mxu0 %v3543_v41 }
 0x830   :  { %4131 = vmatmul.mubr.f32.gmra.mxu0 %v3544_v43 }
 0x8ec   :  { %v4129_v49 = vpop.f32.mrf.mxu0 }
 0x8ed   :  { %v3637_v22 = vadd.f32 %v4129_v49, %v3564_v17 }
 0x8ee   :  { %v3631_v50 = vpop.f32.mrf.mxu0 }
 0x8ef   :  { %v3651_v52 = vadd.f32 %v3637_v22, %v4828_v61  ;;  %v3632_v54 = vadd.f32 %v3631_v50, %v3564_v17 }
 0x8f0   :  { %v4132_v33 = vpop.f32.mrf.mxu0 }
 0x8f1   :  { %3655 = vst.msk [vmem:[#allocation2 + $0x8] sm:$0xff] %vm35_vm0, %v3651_v52  ;;  %v3650_v38 = vadd.f32 %v3632_v54, %v4833_v3  ;;  %v3647_v14 = vadd.f32 %v4132_v33, %v3564_v17 }
 0x8f2   :  { %v3641_v48 = vpop.f32.mrf.mxu0 }
 0x8f3   :  { %3654 = vst.msk [vmem:[#allocation2] sm:$0xff] %vm35_vm0, %v3650_v38  ;;  %v3653_v60 = vadd.f32 %v3647_v14, %v4840_v24  ;;  %v3642_v44 = vadd.f32 %v3641_v48, %v3564_v17 }
 0x8f5   :  { %3657 = vst.msk [vmem:[#allocation2 + $0x18] sm:$0xff] %vm35_vm0, %v3653_v60  ;;  %v3652_v12 = vadd.f32 %v3642_v44, %v4847_v26 }
 0x8f7   :  { %3656 = vst.msk [vmem:[#allocation2 + $0x10] sm:$0xff] %vm35_vm0, %v3652_v12 }
 0x8f8   :  { %4271 = shalt.err (!%p4268_p4)
}
 0x8f9   :  { %s4290_s11 = smov 128   ;;  %s4291_s12 = smov 8  }
 0x8fa   :  { %3669 = dma.vmem_to_hbm [thread:$0]  %s3664_s7, 512, %s4973_s8, [#allocation3], %s4290_s11, %s4290_s11, %s4291_s12  }
 0x8fb   :  { %4280 = dma.done.wait [#allocation3], 512  }
 0x8fc   :  { %4281 = vsyncadd [#allocation3], 4294966784 }
 0x8fd   :  { %3673 = vsyncpa [#allocation3], 1 }

</bundles_post_ra>
